<compile_context>
chip_gen: v7x
topology: tpu7x:2x2x1
jax: 0.10.0
libtpu: 0.0.40
codegen_flags: <defaults>
</compile_context>

<pallas_src>
from functools import partial

import jax
import jax.numpy as jnp
from jax import lax
from jax.experimental import pallas as pl
from jax.experimental.pallas import tpu as pltpu


# ----------------------------------------------------------------------------
# Fused Pallas kernel: 2 bidirectional LSTM layers + Linear head
# ----------------------------------------------------------------------------
def _bilstm_kernel(x_ref,
                   win0_ref, b0_ref, whh0_ref,
                   win1_ref, b1_ref, whh1_ref,
                   wfc_ref, bfc_ref,
                   out_ref,
                   p_ref, stage_ref):
    """Shapes (Bp = padded batch, T = seq len, H = hidden, G = 2H):

    x_ref     : (T*Bp, Ip)  fp32   time-major, batch/lane padded input
    win*_ref  : (Fin, 4G)   bf16   merged fwd+bwd input->gate weights
    b*_ref    : (1, 4G)     fp32   merged gate bias (b_ih + b_hh, both dirs)
    whh*_ref  : (G, 4G)     bf16   block-diagonal combined recurrent weights
    wfc_ref   : (G, Op) bf16, bfc_ref: (1, Op) fp32
    out_ref   : (Bp, Op)    fp32
    p_ref     : (T*Bp, 4G)  fp32 VMEM  hoisted merged input projection
    stage_ref : (T*Bp, G)   fp32 VMEM  layer-0 output sequence (step order)
    """
    Bp = out_ref.shape[0]
    T = x_ref.shape[0] // Bp
    G = whh0_ref.shape[0]          # 2 * hidden_size ([fwd | bwd] lanes)
    H = G // 2
    G3 = 3 * G

    # Hoisted lane masks: fwd lanes of each gate group / of the state.
    fwd_gate = (lax.broadcasted_iota(jnp.int32, (Bp, 4 * G), 1) % G) < H
    fwd_state = lax.broadcasted_iota(jnp.int32, (Bp, G), 1) < H

    def bidir_layer(in_bf16, win_ref, b_ref, whh_ref, store_seq):
        # Hoisted merged fwd+bwd input projection (+ bias) for every timestep:
        # one dense bf16 MXU matmul instead of two half-zero ones.
        p_ref[...] = (jnp.dot(in_bf16, win_ref[...],
                              preferred_element_type=jnp.float32)
                      + b_ref[...])

        h = jnp.zeros((Bp, G), jnp.float32)    # [h_fwd | h_bwd], fp32 state
        c = jnp.zeros((Bp, G), jnp.float32)
        h_first = None
        # Fully unrolled (T small, static).  Per step on the serial chain:
        # one bf16 MXU matmul (both directions), one lane select, two wide
        # tanh EUP ops + tanh(c), and (layer 0 only) one unmasked 128-lane
        # store.
        # TODO(synk): holding whh in MXU weight-staging registers across steps
        # (pltpu.matmul_push_rhs / matmul_acc_lhs / matmul_pop) would remove
        # the per-step RHS re-push; omitted to keep lowering portable across
        # v5e/v6e/v7x.
        for s in range(T):
            rf = s * Bp                  # fwd direction consumes time s
            rb = (T - 1 - s) * Bp        # bwd direction consumes time T-1-s
            g_in = jnp.where(fwd_gate,
                             p_ref[rf:rf + Bp, :], p_ref[rb:rb + Bp, :])
            gates = g_in + jnp.dot(h.astype(jnp.bfloat16), whh_ref[...],
                                   preferred_element_type=jnp.float32)
            # Gate-lane layout [i | f | o | g]: one tanh-based sigmoid over the
            # contiguous 3G sigmoid gates, one tanh over the cell gate.
            ifo = 0.5 * jnp.tanh(0.5 * gates[:, :G3]) + 0.5
            g_cell = jnp.tanh(gates[:, G3:])
            c = ifo[:, G:2 * G] * c + ifo[:, 0:G] * g_cell
            h = ifo[:, 2 * G:G3] * jnp.tanh(c)
            if store_seq:
                stage_ref[rf:rf + Bp, :] = h   # full 128-lane unmasked store
            if s == 0:
                h_first = h
        return h, h_first

    # ---- layer 0 ----
    bidir_layer(x_ref[...].astype(jnp.bfloat16),
                win0_ref, b0_ref, whh0_ref, store_seq=True)
    # Time-reverse the backward half in place (off the serial chain); after
    # this, stage row t == [h_fwd(t) | h_bwd(t)] == PyTorch layer-0 output.
    for t in range(T // 2):
        lo = t * Bp
        hi = (T - 1 - t) * Bp
        a = stage_ref[lo:lo + Bp, H:G]
        b = stage_ref[hi:hi + Bp, H:G]
        stage_ref[lo:lo + Bp, H:G] = b
        stage_ref[hi:hi + Bp, H:G] = a

    # ---- layer 1 (sequence never materialized; only endpoint states) ----
    h_last, h_first = bidir_layer(stage_ref[...].astype(jnp.bfloat16),
                                  win1_ref, b1_ref, whh1_ref, store_seq=False)
    # PyTorch out[:, -1, :] == [h_fwd at step T-1 | h_bwd at step 0].
    last = jnp.where(fwd_state, h_last, h_first)

    # ---- FC head (output padded to a lane-dense width) ----
    out_ref[...] = (jnp.dot(last.astype(jnp.bfloat16), wfc_ref[...],
                            preferred_element_type=jnp.float32)
                    + bfc_ref[...])


# ----------------------------------------------------------------------------
# Wrapper
# ----------------------------------------------------------------------------
@partial(jax.jit, static_argnames=("out_size",))
def bilstm_forward(x, packed, *, out_size):
    """x: (B, T, input_size) float -> (B, out_size). Single pallas_call."""
    assert len(packed) == 8, "kernel is specialized to num_layers=2"
    win0, b0, whh0, win1, b1, whh1, wfc, bfc = packed
    B, T, I = x.shape
    Bp = ((B + 7) // 8) * 8                   # pad batch to sublane width
    Ip = win0.shape[0]                        # lane-padded input width
    G = whh0.shape[0]                         # 2 * hidden
    Op = wfc.shape[1]                         # lane-padded output width

    # Time-major, batch- and lane-padded, flattened to (T*Bp, Ip).
    # TODO(synk): for large B/T, accept a pre-laid-out time-major input to
    # avoid this small per-call transpose/pad XLA op.
    x_tm = jnp.zeros((T, Bp, Ip), jnp.float32)
    x_tm = x_tm.at[:, :B, :I].set(jnp.transpose(x.astype(jnp.float32), (1, 0, 2)))
    x2d = x_tm.reshape(T * Bp, Ip)

    flops = (2 * T * Bp * (Ip + G) * 4 * G        # hoisted input projections
             + 2 * 2 * T * Bp * G * 4 * G         # recurrent matmuls (2 layers)
             + 2 * Bp * G * Op)                   # FC head
    transcendentals = 2 * T * Bp * 5 * G
    bytes_accessed = (int(x2d.size) * 4
                      + sum(int(p.size) * p.dtype.itemsize for p in packed)
                      + Bp * Op * 4)

    vmem = pl.BlockSpec(memory_space=pltpu.MemorySpace.VMEM)
    out_p = pl.pallas_call(
        _bilstm_kernel,
        out_shape=jax.ShapeDtypeStruct((Bp, Op), jnp.float32),
        in_specs=[vmem] * 9,
        out_specs=vmem,
        scratch_shapes=[
            pltpu.VMEM((T * Bp, 4 * G), jnp.float32),   # merged input projection
            pltpu.VMEM((T * Bp, G), jnp.float32),       # layer-0 output sequence
        ],
        cost_estimate=pl.CostEstimate(flops=flops,
                                      transcendentals=transcendentals,
                                      bytes_accessed=bytes_accessed),
    )(x2d, *packed)
    return out_p[:B, :out_size]


# ----------------------------------------------------------------------------
# Parameter initialization (PyTorch-style tensors) and packing for the fused
# combined-direction / merged-projection layout used by the kernel.
# ----------------------------------------------------------------------------
def init_params(key, input_size, hidden_size, num_layers, output_size):
    params = {}
    k = 1.0 / float(hidden_size) ** 0.5
    for layer in range(num_layers):
        in_sz = input_size if layer == 0 else 2 * hidden_size
        for direction in ("fwd", "bwd"):
            key, k1, k2, k3, k4 = jax.random.split(key, 5)
            w_ih = jax.random.uniform(k1, (4 * hidden_size, in_sz),
                                      minval=-k, maxval=k)
            w_hh = jax.random.uniform(k2, (4 * hidden_size, hidden_size),
                                      minval=-k, maxval=k)
            b_ih = jax.random.uniform(k3, (4 * hidden_size,), minval=-k, maxval=k)
            b_hh = jax.random.uniform(k4, (4 * hidden_size,), minval=-k, maxval=k)
            params[f"l{layer}_{direction}"] = (
                jnp.asarray(w_ih, jnp.float32),          # (4H, Fin)
                jnp.asarray(w_hh, jnp.float32),          # (4H, H)
                jnp.asarray(b_ih + b_hh, jnp.float32),   # (4H,)
            )
    key, k1, k2 = jax.random.split(key, 3)
    kf = 1.0 / float(2 * hidden_size) ** 0.5
    params["fc_w"] = jnp.asarray(
        jax.random.uniform(k1, (output_size, 2 * hidden_size),
                           minval=-kf, maxval=kf), jnp.float32)
    params["fc_b"] = jnp.asarray(
        jax.random.uniform(k2, (output_size,), minval=-kf, maxval=kf),
        jnp.float32)
    return params


def pack_params(params, hidden_size, num_layers, output_size):
    """Build the merged-direction kernel weights (bf16) and biases (fp32).

    Gate-group lane layout (width 4*2H), kernel order [i, f, o, g]; within each
    group the first H lanes are the forward direction and the next H lanes the
    backward direction, matching the [h_fwd | h_bwd] state layout.
    """
    H = hidden_size
    G = 2 * H
    GATE_SRC = (0, 1, 3, 2)    # PyTorch rows are [i, f, g, o]

    def pad128(n):
        return ((n + 127) // 128) * 128

    def dense_in(w_f, w_b, b_f, b_b):
        fin = w_f.shape[1]
        fin_p = pad128(fin)
        W = jnp.zeros((fin_p, 4 * G), jnp.float32)
        bias = jnp.zeros((1, 4 * G), jnp.float32)
        for p, s in enumerate(GATE_SRC):
            col = p * G
            W = W.at[:fin, col:col + H].set(w_f[s * H:(s + 1) * H, :].T)
            W = W.at[:fin, col + H:col + G].set(w_b[s * H:(s + 1) * H, :].T)
            bias = bias.at[:, col:col + H].set(b_f[s * H:(s + 1) * H][None, :])
            bias = bias.at[:, col + H:col + G].set(b_b[s * H:(s + 1) * H][None, :])
        return W.astype(jnp.bfloat16), bias

    def dense_hh(whh_f, whh_b):
        W = jnp.zeros((G, 4 * G), jnp.float32)    # block diagonal per gate group
        for p, s in enumerate(GATE_SRC):
            col = p * G
            W = W.at[0:H, col:col + H].set(whh_f[s * H:(s + 1) * H, :].T)
            W = W.at[H:G, col + H:col + G].set(whh_b[s * H:(s + 1) * H, :].T)
        return W.astype(jnp.bfloat16)

    packed = []
    for layer in range(num_layers):
        w_ih_f, w_hh_f, b_f = params[f"l{layer}_fwd"]
        w_ih_b, w_hh_b, b_b = params[f"l{layer}_bwd"]
        win, bias = dense_in(w_ih_f, w_ih_b, b_f, b_b)
        packed += [win, bias, dense_hh(w_hh_f, w_hh_b)]

    Op = pad128(output_size)
    wfc = jnp.zeros((G, Op), jnp.float32).at[:, :output_size].set(params["fc_w"].T)
    bfc = jnp.zeros((1, Op), jnp.float32).at[:, :output_size].set(params["fc_b"][None, :])
    packed += [wfc.astype(jnp.bfloat16), bfc]
    return tuple(packed)


# ----------------------------------------------------------------------------
# Pure-JAX fp32 reference (PyTorch BiLSTM semantics) for a sanity check
# ----------------------------------------------------------------------------
def _ref_lstm_dir(x_tm, w_ih, w_hh, b):
    H = w_hh.shape[1]
    B = x_tm.shape[1]

    def step(carry, x_t):
        h, c = carry
        gates = x_t @ w_ih.T + h @ w_hh.T + b
        i = jax.nn.sigmoid(gates[:, :H])
        f = jax.nn.sigmoid(gates[:, H:2 * H])
        g = jnp.tanh(gates[:, 2 * H:3 * H])
        o = jax.nn.sigmoid(gates[:, 3 * H:])
        c = f * c + i * g
        h = o * jnp.tanh(c)
        return (h, c), h

    init = (jnp.zeros((B, H), jnp.float32), jnp.zeros((B, H), jnp.float32))
    _, hs = lax.scan(step, init, x_tm)
    return hs


def bilstm_reference(x, params, num_layers):
    inp = jnp.transpose(x.astype(jnp.float32), (1, 0, 2))
    for layer in range(num_layers):
        hf = _ref_lstm_dir(inp, *params[f"l{layer}_fwd"])
        hb = jnp.flip(_ref_lstm_dir(jnp.flip(inp, axis=0),
                                    *params[f"l{layer}_bwd"]), axis=0)
        inp = jnp.concatenate([hf, hb], axis=-1)
    return inp[-1] @ params["fc_w"].T + params["fc_b"]


# ----------------------------------------------------------------------------
if __name__ == "__main__":
    INPUT_SIZE = 2
    HIDDEN_SIZE = 64
    NUM_LAYERS = 2
    OUTPUT_SIZE = 2
    BATCH = 2
    SEQ = 8

    key = jax.random.PRNGKey(0)
    key, xk = jax.random.split(key)
    x = jax.random.normal(xk, (BATCH, SEQ, INPUT_SIZE), dtype=jnp.float32)

    params = init_params(key, INPUT_SIZE, HIDDEN_SIZE, NUM_LAYERS, OUTPUT_SIZE)
    packed = pack_params(params, HIDDEN_SIZE, NUM_LAYERS, OUTPUT_SIZE)

    out = jax.block_until_ready(bilstm_forward(x, packed, out_size=OUTPUT_SIZE))
    assert out.shape == (BATCH, OUTPUT_SIZE), out.shape

    ref = jax.block_until_ready(bilstm_reference(x, params, NUM_LAYERS))
    # Kernel uses bf16 weights with fp32 accumulation/state -> loosened tol.
    assert jnp.allclose(out, ref, atol=5e-2, rtol=5e-2), (out, ref)

    print("KERNEL_OK")
</pallas_src>

<mosaic_0001>
module attributes {stable_mosaic.version = 11 : i64} {
  func.func @_bilstm_kernel(%arg0: memref<64x128xf32, #tpu.memory_space<vmem>>, %arg1: memref<128x512xbf16, #tpu.memory_space<vmem>>, %arg2: memref<1x512xf32, #tpu.memory_space<vmem>>, %arg3: memref<128x512xbf16, #tpu.memory_space<vmem>>, %arg4: memref<128x512xbf16, #tpu.memory_space<vmem>>, %arg5: memref<1x512xf32, #tpu.memory_space<vmem>>, %arg6: memref<128x512xbf16, #tpu.memory_space<vmem>>, %arg7: memref<128x128xbf16, #tpu.memory_space<vmem>>, %arg8: memref<1x128xf32, #tpu.memory_space<vmem>>, %arg9: memref<8x128xf32, #tpu.memory_space<vmem>>, %arg10: memref<64x512xf32, #tpu.memory_space<vmem>>, %arg11: memref<64x128xf32, #tpu.memory_space<vmem>>) attributes {dimension_semantics = [], scalar_prefetch = 0 : i64, scratch_operands = 2 : i64, tpu.core_type = #tpu.core_type<tc>} {
    %0 = tpu.iota {dimensions = array<i32: 1>} : vector<8x512xi32>
    %c128_i32 = arith.constant 128 : i32
    %c0_i32 = arith.constant 0 : i32
    %1 = arith.cmpi eq, %c128_i32, %c0_i32 : i32
    %c1_i32 = arith.constant 1 : i32
    %2 = arith.select %1, %c1_i32, %c128_i32 : i32
    %3 = vector.broadcast %2 : i32 to vector<8x512xi32>
    %4 = arith.remsi %0, %3 : vector<8x512xi32>
    %c0_i32_0 = arith.constant 0 : i32
    %5 = vector.broadcast %c0_i32_0 : i32 to vector<8x512xi32>
    %6 = arith.cmpi ne, %4, %5 : vector<8x512xi32>
    %c0_i32_1 = arith.constant 0 : i32
    %7 = vector.broadcast %c0_i32_1 : i32 to vector<8x512xi32>
    %8 = arith.cmpi slt, %4, %7 : vector<8x512xi32>
    %c0_i32_2 = arith.constant 0 : i32
    %9 = arith.cmpi slt, %2, %c0_i32_2 : i32
    %10 = vector.broadcast %9 : i1 to vector<8x512xi1>
    %11 = vector.broadcast %10 : vector<8x512xi1> to vector<8x512xi1>
    %12 = arith.xori %8, %11 : vector<8x512xi1>
    %13 = arith.andi %12, %6 : vector<8x512xi1>
    %14 = vector.broadcast %2 : i32 to vector<8x512xi32>
    %15 = arith.addi %4, %14 : vector<8x512xi32>
    %16 = arith.select %13, %15, %4 : vector<8x512xi1>, vector<8x512xi32>
    %c64_i32 = arith.constant 64 : i32
    %17 = vector.broadcast %c64_i32 : i32 to vector<8x512xi32>
    %18 = arith.cmpi slt, %16, %17 : vector<8x512xi32>
    %19 = tpu.iota {dimensions = array<i32: 1>} : vector<8x128xi32>
    %c64_i32_3 = arith.constant 64 : i32
    %20 = vector.broadcast %c64_i32_3 : i32 to vector<8x128xi32>
    %21 = arith.cmpi slt, %19, %20 : vector<8x128xi32>
    %c0 = arith.constant 0 : index
    %c0_4 = arith.constant 0 : index
    %22 = vector.load %arg0[%c0, %c0_4] : memref<64x128xf32, #tpu.memory_space<vmem>>, vector<64x128xf32>
    %23 = arith.truncf %22 : vector<64x128xf32> to vector<64x128xbf16>
    %c0_5 = arith.constant 0 : index
    %c0_6 = arith.constant 0 : index
    %24 = vector.load %arg1[%c0_5, %c0_6] : memref<128x512xbf16, #tpu.memory_space<vmem>>, vector<128x512xbf16>
    %cst = arith.constant dense<0.000000e+00> : vector<64x512xf32>
    %25 = tpu.matmul %23, %24, %cst {dimension_numbers = #tpu.dot_dimension_numbers<[1], [0], [0], [1], [0, 0, 1, 1], [], []>} : vector<64x128xbf16>, vector<128x512xbf16>, vector<64x512xf32> -> vector<64x512xf32>
    %c0_7 = arith.constant 0 : index
    %c0_8 = arith.constant 0 : index
    %26 = vector.load %arg2[%c0_7, %c0_8] : memref<1x512xf32, #tpu.memory_space<vmem>>, vector<1x512xf32>
    %27 = vector.broadcast %26 : vector<1x512xf32> to vector<64x512xf32>
    %28 = arith.addf %25, %27 : vector<64x512xf32>
    %c0_9 = arith.constant 0 : index
    %c0_10 = arith.constant 0 : index
    %29 = vector.load %arg10[%c0_9, %c0_10] : memref<64x512xf32, #tpu.memory_space<vmem>>, vector<64x512xf32>
    tpu.vector_store %arg10[%c0_9, %c0_10], %28 {strides = array<i32>} : memref<64x512xf32, #tpu.memory_space<vmem>>, vector<64x512xf32>,
    %cst_11 = arith.constant 0.000000e+00 : f32
    %30 = vector.broadcast %cst_11 : f32 to vector<8x128xf32>
    %cst_12 = arith.constant 0.000000e+00 : f32
    %31 = vector.broadcast %cst_12 : f32 to vector<8x128xf32>
    %c0_13 = arith.constant 0 : index
    %c0_14 = arith.constant 0 : index
    %32 = vector.load %arg10[%c0_13, %c0_14] : memref<64x512xf32, #tpu.memory_space<vmem>>, vector<8x512xf32>
    %c56 = arith.constant 56 : index
    %c0_15 = arith.constant 0 : index
    %33 = vector.load %arg10[%c56, %c0_15] : memref<64x512xf32, #tpu.memory_space<vmem>>, vector<8x512xf32>
    %34 = arith.select %18, %32, %33 : vector<8x512xi1>, vector<8x512xf32>
    %35 = arith.truncf %30 : vector<8x128xf32> to vector<8x128xbf16>
    %c0_16 = arith.constant 0 : index
    %c0_17 = arith.constant 0 : index
    %36 = vector.load %arg3[%c0_16, %c0_17] : memref<128x512xbf16, #tpu.memory_space<vmem>>, vector<128x512xbf16>
    %cst_18 = arith.constant dense<0.000000e+00> : vector<8x512xf32>
    %37 = tpu.matmul %35, %36, %cst_18 {dimension_numbers = #tpu.dot_dimension_numbers<[1], [0], [0], [1], [0, 0, 1, 1], [], []>} : vector<8x128xbf16>, vector<128x512xbf16>, vector<8x512xf32> -> vector<8x512xf32>
    %38 = arith.addf %34, %37 : vector<8x512xf32>
    %39 = vector.extract_strided_slice %38 {offsets = [0, 0], sizes = [8, 384], strides = [1, 1]} : vector<8x512xf32> to vector<8x384xf32>
    %cst_19 = arith.constant 5.000000e-01 : f32
    %40 = vector.broadcast %cst_19 : f32 to vector<8x384xf32>
    %41 = arith.mulf %40, %39 : vector<8x384xf32>
    %42 = math.tanh %41 : vector<8x384xf32>
    %cst_20 = arith.constant 5.000000e-01 : f32
    %43 = vector.broadcast %cst_20 : f32 to vector<8x384xf32>
    %44 = arith.mulf %43, %42 : vector<8x384xf32>
    %cst_21 = arith.constant 5.000000e-01 : f32
    %45 = vector.broadcast %cst_21 : f32 to vector<8x384xf32>
    %46 = arith.addf %44, %45 : vector<8x384xf32>
    %47 = vector.extract_strided_slice %38 {offsets = [0, 384], sizes = [8, 128], strides = [1, 1]} : vector<8x512xf32> to vector<8x128xf32>
    %48 = math.tanh %47 : vector<8x128xf32>
    %49 = vector.extract_strided_slice %46 {offsets = [0, 128], sizes = [8, 128], strides = [1, 1]} : vector<8x384xf32> to vector<8x128xf32>
    %50 = arith.mulf %49, %31 : vector<8x128xf32>
    %51 = vector.extract_strided_slice %46 {offsets = [0, 0], sizes = [8, 128], strides = [1, 1]} : vector<8x384xf32> to vector<8x128xf32>
    %52 = arith.mulf %51, %48 : vector<8x128xf32>
    %53 = arith.addf %50, %52 : vector<8x128xf32>
    %54 = vector.extract_strided_slice %46 {offsets = [0, 256], sizes = [8, 128], strides = [1, 1]} : vector<8x384xf32> to vector<8x128xf32>
    %55 = math.tanh %53 : vector<8x128xf32>
    %56 = arith.mulf %54, %55 : vector<8x128xf32>
    %c0_22 = arith.constant 0 : index
    %c0_23 = arith.constant 0 : index
    %57 = vector.load %arg11[%c0_22, %c0_23] : memref<64x128xf32, #tpu.memory_space<vmem>>, vector<8x128xf32>
    tpu.vector_store %arg11[%c0_22, %c0_23], %56 {strides = array<i32>} : memref<64x128xf32, #tpu.memory_space<vmem>>, vector<8x128xf32>,
    %c8 = arith.constant 8 : index
    %c0_24 = arith.constant 0 : index
    %58 = vector.load %arg10[%c8, %c0_24] : memref<64x512xf32, #tpu.memory_space<vmem>>, vector<8x512xf32>
    %c48 = arith.constant 48 : index
    %c0_25 = arith.constant 0 : index
    %59 = vector.load %arg10[%c48, %c0_25] : memref<64x512xf32, #tpu.memory_space<vmem>>, vector<8x512xf32>
    %60 = arith.select %18, %58, %59 : vector<8x512xi1>, vector<8x512xf32>
    %61 = arith.truncf %56 : vector<8x128xf32> to vector<8x128xbf16>
    %c0_26 = arith.constant 0 : index
    %c0_27 = arith.constant 0 : index
    %62 = vector.load %arg3[%c0_26, %c0_27] : memref<128x512xbf16, #tpu.memory_space<vmem>>, vector<128x512xbf16>
    %cst_28 = arith.constant dense<0.000000e+00> : vector<8x512xf32>
    %63 = tpu.matmul %61, %62, %cst_28 {dimension_numbers = #tpu.dot_dimension_numbers<[1], [0], [0], [1], [0, 0, 1, 1], [], []>} : vector<8x128xbf16>, vector<128x512xbf16>, vector<8x512xf32> -> vector<8x512xf32>
    %64 = arith.addf %60, %63 : vector<8x512xf32>
    %65 = vector.extract_strided_slice %64 {offsets = [0, 0], sizes = [8, 384], strides = [1, 1]} : vector<8x512xf32> to vector<8x384xf32>
    %cst_29 = arith.constant 5.000000e-01 : f32
    %66 = vector.broadcast %cst_29 : f32 to vector<8x384xf32>
    %67 = arith.mulf %66, %65 : vector<8x384xf32>
    %68 = math.tanh %67 : vector<8x384xf32>
    %cst_30 = arith.constant 5.000000e-01 : f32
    %69 = vector.broadcast %cst_30 : f32 to vector<8x384xf32>
    %70 = arith.mulf %69, %68 : vector<8x384xf32>
    %cst_31 = arith.constant 5.000000e-01 : f32
    %71 = vector.broadcast %cst_31 : f32 to vector<8x384xf32>
    %72 = arith.addf %70, %71 : vector<8x384xf32>
    %73 = vector.extract_strided_slice %64 {offsets = [0, 384], sizes = [8, 128], strides = [1, 1]} : vector<8x512xf32> to vector<8x128xf32>
    %74 = math.tanh %73 : vector<8x128xf32>
    %75 = vector.extract_strided_slice %72 {offsets = [0, 128], sizes = [8, 128], strides = [1, 1]} : vector<8x384xf32> to vector<8x128xf32>
    %76 = arith.mulf %75, %53 : vector<8x128xf32>
    %77 = vector.extract_strided_slice %72 {offsets = [0, 0], sizes = [8, 128], strides = [1, 1]} : vector<8x384xf32> to vector<8x128xf32>
    %78 = arith.mulf %77, %74 : vector<8x128xf32>
    %79 = arith.addf %76, %78 : vector<8x128xf32>
    %80 = vector.extract_strided_slice %72 {offsets = [0, 256], sizes = [8, 128], strides = [1, 1]} : vector<8x384xf32> to vector<8x128xf32>
    %81 = math.tanh %79 : vector<8x128xf32>
    %82 = arith.mulf %80, %81 : vector<8x128xf32>
    %c8_32 = arith.constant 8 : index
    %c0_33 = arith.constant 0 : index
    %83 = vector.load %arg11[%c8_32, %c0_33] : memref<64x128xf32, #tpu.memory_space<vmem>>, vector<8x128xf32>
    tpu.vector_store %arg11[%c8_32, %c0_33], %82 {strides = array<i32>} : memref<64x128xf32, #tpu.memory_space<vmem>>, vector<8x128xf32>,
    %c16 = arith.constant 16 : index
    %c0_34 = arith.constant 0 : index
    %84 = vector.load %arg10[%c16, %c0_34] : memref<64x512xf32, #tpu.memory_space<vmem>>, vector<8x512xf32>
    %c40 = arith.constant 40 : index
    %c0_35 = arith.constant 0 : index
    %85 = vector.load %arg10[%c40, %c0_35] : memref<64x512xf32, #tpu.memory_space<vmem>>, vector<8x512xf32>
    %86 = arith.select %18, %84, %85 : vector<8x512xi1>, vector<8x512xf32>
    %87 = arith.truncf %82 : vector<8x128xf32> to vector<8x128xbf16>
    %c0_36 = arith.constant 0 : index
    %c0_37 = arith.constant 0 : index
    %88 = vector.load %arg3[%c0_36, %c0_37] : memref<128x512xbf16, #tpu.memory_space<vmem>>, vector<128x512xbf16>
    %cst_38 = arith.constant dense<0.000000e+00> : vector<8x512xf32>
    %89 = tpu.matmul %87, %88, %cst_38 {dimension_numbers = #tpu.dot_dimension_numbers<[1], [0], [0], [1], [0, 0, 1, 1], [], []>} : vector<8x128xbf16>, vector<128x512xbf16>, vector<8x512xf32> -> vector<8x512xf32>
    %90 = arith.addf %86, %89 : vector<8x512xf32>
    %91 = vector.extract_strided_slice %90 {offsets = [0, 0], sizes = [8, 384], strides = [1, 1]} : vector<8x512xf32> to vector<8x384xf32>
    %cst_39 = arith.constant 5.000000e-01 : f32
    %92 = vector.broadcast %cst_39 : f32 to vector<8x384xf32>
    %93 = arith.mulf %92, %91 : vector<8x384xf32>
    %94 = math.tanh %93 : vector<8x384xf32>
    %cst_40 = arith.constant 5.000000e-01 : f32
    %95 = vector.broadcast %cst_40 : f32 to vector<8x384xf32>
    %96 = arith.mulf %95, %94 : vector<8x384xf32>
    %cst_41 = arith.constant 5.000000e-01 : f32
    %97 = vector.broadcast %cst_41 : f32 to vector<8x384xf32>
    %98 = arith.addf %96, %97 : vector<8x384xf32>
    %99 = vector.extract_strided_slice %90 {offsets = [0, 384], sizes = [8, 128], strides = [1, 1]} : vector<8x512xf32> to vector<8x128xf32>
    %100 = math.tanh %99 : vector<8x128xf32>
    %101 = vector.extract_strided_slice %98 {offsets = [0, 128], sizes = [8, 128], strides = [1, 1]} : vector<8x384xf32> to vector<8x128xf32>
    %102 = arith.mulf %101, %79 : vector<8x128xf32>
    %103 = vector.extract_strided_slice %98 {offsets = [0, 0], sizes = [8, 128], strides = [1, 1]} : vector<8x384xf32> to vector<8x128xf32>
    %104 = arith.mulf %103, %100 : vector<8x128xf32>
    %105 = arith.addf %102, %104 : vector<8x128xf32>
    %106 = vector.extract_strided_slice %98 {offsets = [0, 256], sizes = [8, 128], strides = [1, 1]} : vector<8x384xf32> to vector<8x128xf32>
    %107 = math.tanh %105 : vector<8x128xf32>
    %108 = arith.mulf %106, %107 : vector<8x128xf32>
    %c16_42 = arith.constant 16 : index
    %c0_43 = arith.constant 0 : index
    %109 = vector.load %arg11[%c16_42, %c0_43] : memref<64x128xf32, #tpu.memory_space<vmem>>, vector<8x128xf32>
    tpu.vector_store %arg11[%c16_42, %c0_43], %108 {strides = array<i32>} : memref<64x128xf32, #tpu.memory_space<vmem>>, vector<8x128xf32>,
    %c24 = arith.constant 24 : index
    %c0_44 = arith.constant 0 : index
    %110 = vector.load %arg10[%c24, %c0_44] : memref<64x512xf32, #tpu.memory_space<vmem>>, vector<8x512xf32>
    %c32 = arith.constant 32 : index
    %c0_45 = arith.constant 0 : index
    %111 = vector.load %arg10[%c32, %c0_45] : memref<64x512xf32, #tpu.memory_space<vmem>>, vector<8x512xf32>
    %112 = arith.select %18, %110, %111 : vector<8x512xi1>, vector<8x512xf32>
    %113 = arith.truncf %108 : vector<8x128xf32> to vector<8x128xbf16>
    %c0_46 = arith.constant 0 : index
    %c0_47 = arith.constant 0 : index
    %114 = vector.load %arg3[%c0_46, %c0_47] : memref<128x512xbf16, #tpu.memory_space<vmem>>, vector<128x512xbf16>
    %cst_48 = arith.constant dense<0.000000e+00> : vector<8x512xf32>
    %115 = tpu.matmul %113, %114, %cst_48 {dimension_numbers = #tpu.dot_dimension_numbers<[1], [0], [0], [1], [0, 0, 1, 1], [], []>} : vector<8x128xbf16>, vector<128x512xbf16>, vector<8x512xf32> -> vector<8x512xf32>
    %116 = arith.addf %112, %115 : vector<8x512xf32>
    %117 = vector.extract_strided_slice %116 {offsets = [0, 0], sizes = [8, 384], strides = [1, 1]} : vector<8x512xf32> to vector<8x384xf32>
    %cst_49 = arith.constant 5.000000e-01 : f32
    %118 = vector.broadcast %cst_49 : f32 to vector<8x384xf32>
    %119 = arith.mulf %118, %117 : vector<8x384xf32>
    %120 = math.tanh %119 : vector<8x384xf32>
    %cst_50 = arith.constant 5.000000e-01 : f32
    %121 = vector.broadcast %cst_50 : f32 to vector<8x384xf32>
    %122 = arith.mulf %121, %120 : vector<8x384xf32>
    %cst_51 = arith.constant 5.000000e-01 : f32
    %123 = vector.broadcast %cst_51 : f32 to vector<8x384xf32>
    %124 = arith.addf %122, %123 : vector<8x384xf32>
    %125 = vector.extract_strided_slice %116 {offsets = [0, 384], sizes = [8, 128], strides = [1, 1]} : vector<8x512xf32> to vector<8x128xf32>
    %126 = math.tanh %125 : vector<8x128xf32>
    %127 = vector.extract_strided_slice %124 {offsets = [0, 128], sizes = [8, 128], strides = [1, 1]} : vector<8x384xf32> to vector<8x128xf32>
    %128 = arith.mulf %127, %105 : vector<8x128xf32>
    %129 = vector.extract_strided_slice %124 {offsets = [0, 0], sizes = [8, 128], strides = [1, 1]} : vector<8x384xf32> to vector<8x128xf32>
    %130 = arith.mulf %129, %126 : vector<8x128xf32>
    %131 = arith.addf %128, %130 : vector<8x128xf32>
    %132 = vector.extract_strided_slice %124 {offsets = [0, 256], sizes = [8, 128], strides = [1, 1]} : vector<8x384xf32> to vector<8x128xf32>
    %133 = math.tanh %131 : vector<8x128xf32>
    %134 = arith.mulf %132, %133 : vector<8x128xf32>
    %c24_52 = arith.constant 24 : index
    %c0_53 = arith.constant 0 : index
    %135 = vector.load %arg11[%c24_52, %c0_53] : memref<64x128xf32, #tpu.memory_space<vmem>>, vector<8x128xf32>
    tpu.vector_store %arg11[%c24_52, %c0_53], %134 {strides = array<i32>} : memref<64x128xf32, #tpu.memory_space<vmem>>, vector<8x128xf32>,
    %c32_54 = arith.constant 32 : index
    %c0_55 = arith.constant 0 : index
    %136 = vector.load %arg10[%c32_54, %c0_55] : memref<64x512xf32, #tpu.memory_space<vmem>>, vector<8x512xf32>
    %c24_56 = arith.constant 24 : index
    %c0_57 = arith.constant 0 : index
    %137 = vector.load %arg10[%c24_56, %c0_57] : memref<64x512xf32, #tpu.memory_space<vmem>>, vector<8x512xf32>
    %138 = arith.select %18, %136, %137 : vector<8x512xi1>, vector<8x512xf32>
    %139 = arith.truncf %134 : vector<8x128xf32> to vector<8x128xbf16>
    %c0_58 = arith.constant 0 : index
    %c0_59 = arith.constant 0 : index
    %140 = vector.load %arg3[%c0_58, %c0_59] : memref<128x512xbf16, #tpu.memory_space<vmem>>, vector<128x512xbf16>
    %cst_60 = arith.constant dense<0.000000e+00> : vector<8x512xf32>
    %141 = tpu.matmul %139, %140, %cst_60 {dimension_numbers = #tpu.dot_dimension_numbers<[1], [0], [0], [1], [0, 0, 1, 1], [], []>} : vector<8x128xbf16>, vector<128x512xbf16>, vector<8x512xf32> -> vector<8x512xf32>
    %142 = arith.addf %138, %141 : vector<8x512xf32>
    %143 = vector.extract_strided_slice %142 {offsets = [0, 0], sizes = [8, 384], strides = [1, 1]} : vector<8x512xf32> to vector<8x384xf32>
    %cst_61 = arith.constant 5.000000e-01 : f32
    %144 = vector.broadcast %cst_61 : f32 to vector<8x384xf32>
    %145 = arith.mulf %144, %143 : vector<8x384xf32>
    %146 = math.tanh %145 : vector<8x384xf32>
    %cst_62 = arith.constant 5.000000e-01 : f32
    %147 = vector.broadcast %cst_62 : f32 to vector<8x384xf32>
    %148 = arith.mulf %147, %146 : vector<8x384xf32>
    %cst_63 = arith.constant 5.000000e-01 : f32
    %149 = vector.broadcast %cst_63 : f32 to vector<8x384xf32>
    %150 = arith.addf %148, %149 : vector<8x384xf32>
    %151 = vector.extract_strided_slice %142 {offsets = [0, 384], sizes = [8, 128], strides = [1, 1]} : vector<8x512xf32> to vector<8x128xf32>
    %152 = math.tanh %151 : vector<8x128xf32>
    %153 = vector.extract_strided_slice %150 {offsets = [0, 128], sizes = [8, 128], strides = [1, 1]} : vector<8x384xf32> to vector<8x128xf32>
    %154 = arith.mulf %153, %131 : vector<8x128xf32>
    %155 = vector.extract_strided_slice %150 {offsets = [0, 0], sizes = [8, 128], strides = [1, 1]} : vector<8x384xf32> to vector<8x128xf32>
    %156 = arith.mulf %155, %152 : vector<8x128xf32>
    %157 = arith.addf %154, %156 : vector<8x128xf32>
    %158 = vector.extract_strided_slice %150 {offsets = [0, 256], sizes = [8, 128], strides = [1, 1]} : vector<8x384xf32> to vector<8x128xf32>
    %159 = math.tanh %157 : vector<8x128xf32>
    %160 = arith.mulf %158, %159 : vector<8x128xf32>
    %c32_64 = arith.constant 32 : index
    %c0_65 = arith.constant 0 : index
    %161 = vector.load %arg11[%c32_64, %c0_65] : memref<64x128xf32, #tpu.memory_space<vmem>>, vector<8x128xf32>
    tpu.vector_store %arg11[%c32_64, %c0_65], %160 {strides = array<i32>} : memref<64x128xf32, #tpu.memory_space<vmem>>, vector<8x128xf32>,
    %c40_66 = arith.constant 40 : index
    %c0_67 = arith.constant 0 : index
    %162 = vector.load %arg10[%c40_66, %c0_67] : memref<64x512xf32, #tpu.memory_space<vmem>>, vector<8x512xf32>
    %c16_68 = arith.constant 16 : index
    %c0_69 = arith.constant 0 : index
    %163 = vector.load %arg10[%c16_68, %c0_69] : memref<64x512xf32, #tpu.memory_space<vmem>>, vector<8x512xf32>
    %164 = arith.select %18, %162, %163 : vector<8x512xi1>, vector<8x512xf32>
    %165 = arith.truncf %160 : vector<8x128xf32> to vector<8x128xbf16>
    %c0_70 = arith.constant 0 : index
    %c0_71 = arith.constant 0 : index
    %166 = vector.load %arg3[%c0_70, %c0_71] : memref<128x512xbf16, #tpu.memory_space<vmem>>, vector<128x512xbf16>
    %cst_72 = arith.constant dense<0.000000e+00> : vector<8x512xf32>
    %167 = tpu.matmul %165, %166, %cst_72 {dimension_numbers = #tpu.dot_dimension_numbers<[1], [0], [0], [1], [0, 0, 1, 1], [], []>} : vector<8x128xbf16>, vector<128x512xbf16>, vector<8x512xf32> -> vector<8x512xf32>
    %168 = arith.addf %164, %167 : vector<8x512xf32>
    %169 = vector.extract_strided_slice %168 {offsets = [0, 0], sizes = [8, 384], strides = [1, 1]} : vector<8x512xf32> to vector<8x384xf32>
    %cst_73 = arith.constant 5.000000e-01 : f32
    %170 = vector.broadcast %cst_73 : f32 to vector<8x384xf32>
    %171 = arith.mulf %170, %169 : vector<8x384xf32>
    %172 = math.tanh %171 : vector<8x384xf32>
    %cst_74 = arith.constant 5.000000e-01 : f32
    %173 = vector.broadcast %cst_74 : f32 to vector<8x384xf32>
    %174 = arith.mulf %173, %172 : vector<8x384xf32>
    %cst_75 = arith.constant 5.000000e-01 : f32
    %175 = vector.broadcast %cst_75 : f32 to vector<8x384xf32>
    %176 = arith.addf %174, %175 : vector<8x384xf32>
    %177 = vector.extract_strided_slice %168 {offsets = [0, 384], sizes = [8, 128], strides = [1, 1]} : vector<8x512xf32> to vector<8x128xf32>
    %178 = math.tanh %177 : vector<8x128xf32>
    %179 = vector.extract_strided_slice %176 {offsets = [0, 128], sizes = [8, 128], strides = [1, 1]} : vector<8x384xf32> to vector<8x128xf32>
    %180 = arith.mulf %179, %157 : vector<8x128xf32>
    %181 = vector.extract_strided_slice %176 {offsets = [0, 0], sizes = [8, 128], strides = [1, 1]} : vector<8x384xf32> to vector<8x128xf32>
    %182 = arith.mulf %181, %178 : vector<8x128xf32>
    %183 = arith.addf %180, %182 : vector<8x128xf32>
    %184 = vector.extract_strided_slice %176 {offsets = [0, 256], sizes = [8, 128], strides = [1, 1]} : vector<8x384xf32> to vector<8x128xf32>
    %185 = math.tanh %183 : vector<8x128xf32>
    %186 = arith.mulf %184, %185 : vector<8x128xf32>
    %c40_76 = arith.constant 40 : index
    %c0_77 = arith.constant 0 : index
    %187 = vector.load %arg11[%c40_76, %c0_77] : memref<64x128xf32, #tpu.memory_space<vmem>>, vector<8x128xf32>
    tpu.vector_store %arg11[%c40_76, %c0_77], %186 {strides = array<i32>} : memref<64x128xf32, #tpu.memory_space<vmem>>, vector<8x128xf32>,
    %c48_78 = arith.constant 48 : index
    %c0_79 = arith.constant 0 : index
    %188 = vector.load %arg10[%c48_78, %c0_79] : memref<64x512xf32, #tpu.memory_space<vmem>>, vector<8x512xf32>
    %c8_80 = arith.constant 8 : index
    %c0_81 = arith.constant 0 : index
    %189 = vector.load %arg10[%c8_80, %c0_81] : memref<64x512xf32, #tpu.memory_space<vmem>>, vector<8x512xf32>
    %190 = arith.select %18, %188, %189 : vector<8x512xi1>, vector<8x512xf32>
    %191 = arith.truncf %186 : vector<8x128xf32> to vector<8x128xbf16>
    %c0_82 = arith.constant 0 : index
    %c0_83 = arith.constant 0 : index
    %192 = vector.load %arg3[%c0_82, %c0_83] : memref<128x512xbf16, #tpu.memory_space<vmem>>, vector<128x512xbf16>
    %cst_84 = arith.constant dense<0.000000e+00> : vector<8x512xf32>
    %193 = tpu.matmul %191, %192, %cst_84 {dimension_numbers = #tpu.dot_dimension_numbers<[1], [0], [0], [1], [0, 0, 1, 1], [], []>} : vector<8x128xbf16>, vector<128x512xbf16>, vector<8x512xf32> -> vector<8x512xf32>
    %194 = arith.addf %190, %193 : vector<8x512xf32>
    %195 = vector.extract_strided_slice %194 {offsets = [0, 0], sizes = [8, 384], strides = [1, 1]} : vector<8x512xf32> to vector<8x384xf32>
    %cst_85 = arith.constant 5.000000e-01 : f32
    %196 = vector.broadcast %cst_85 : f32 to vector<8x384xf32>
    %197 = arith.mulf %196, %195 : vector<8x384xf32>
    %198 = math.tanh %197 : vector<8x384xf32>
    %cst_86 = arith.constant 5.000000e-01 : f32
    %199 = vector.broadcast %cst_86 : f32 to vector<8x384xf32>
    %200 = arith.mulf %199, %198 : vector<8x384xf32>
    %cst_87 = arith.constant 5.000000e-01 : f32
    %201 = vector.broadcast %cst_87 : f32 to vector<8x384xf32>
    %202 = arith.addf %200, %201 : vector<8x384xf32>
    %203 = vector.extract_strided_slice %194 {offsets = [0, 384], sizes = [8, 128], strides = [1, 1]} : vector<8x512xf32> to vector<8x128xf32>
    %204 = math.tanh %203 : vector<8x128xf32>
    %205 = vector.extract_strided_slice %202 {offsets = [0, 128], sizes = [8, 128], strides = [1, 1]} : vector<8x384xf32> to vector<8x128xf32>
    %206 = arith.mulf %205, %183 : vector<8x128xf32>
    %207 = vector.extract_strided_slice %202 {offsets = [0, 0], sizes = [8, 128], strides = [1, 1]} : vector<8x384xf32> to vector<8x128xf32>
    %208 = arith.mulf %207, %204 : vector<8x128xf32>
    %209 = arith.addf %206, %208 : vector<8x128xf32>
    %210 = vector.extract_strided_slice %202 {offsets = [0, 256], sizes = [8, 128], strides = [1, 1]} : vector<8x384xf32> to vector<8x128xf32>
    %211 = math.tanh %209 : vector<8x128xf32>
    %212 = arith.mulf %210, %211 : vector<8x128xf32>
    %c48_88 = arith.constant 48 : index
    %c0_89 = arith.constant 0 : index
    %213 = vector.load %arg11[%c48_88, %c0_89] : memref<64x128xf32, #tpu.memory_space<vmem>>, vector<8x128xf32>
    tpu.vector_store %arg11[%c48_88, %c0_89], %212 {strides = array<i32>} : memref<64x128xf32, #tpu.memory_space<vmem>>, vector<8x128xf32>,
    %c56_90 = arith.constant 56 : index
    %c0_91 = arith.constant 0 : index
    %214 = vector.load %arg10[%c56_90, %c0_91] : memref<64x512xf32, #tpu.memory_space<vmem>>, vector<8x512xf32>
    %c0_92 = arith.constant 0 : index
    %c0_93 = arith.constant 0 : index
    %215 = vector.load %arg10[%c0_92, %c0_93] : memref<64x512xf32, #tpu.memory_space<vmem>>, vector<8x512xf32>
    %216 = arith.select %18, %214, %215 : vector<8x512xi1>, vector<8x512xf32>
    %217 = arith.truncf %212 : vector<8x128xf32> to vector<8x128xbf16>
    %c0_94 = arith.constant 0 : index
    %c0_95 = arith.constant 0 : index
    %218 = vector.load %arg3[%c0_94, %c0_95] : memref<128x512xbf16, #tpu.memory_space<vmem>>, vector<128x512xbf16>
    %cst_96 = arith.constant dense<0.000000e+00> : vector<8x512xf32>
    %219 = tpu.matmul %217, %218, %cst_96 {dimension_numbers = #tpu.dot_dimension_numbers<[1], [0], [0], [1], [0, 0, 1, 1], [], []>} : vector<8x128xbf16>, vector<128x512xbf16>, vector<8x512xf32> -> vector<8x512xf32>
    %220 = arith.addf %216, %219 : vector<8x512xf32>
    %221 = vector.extract_strided_slice %220 {offsets = [0, 0], sizes = [8, 384], strides = [1, 1]} : vector<8x512xf32> to vector<8x384xf32>
    %cst_97 = arith.constant 5.000000e-01 : f32
    %222 = vector.broadcast %cst_97 : f32 to vector<8x384xf32>
    %223 = arith.mulf %222, %221 : vector<8x384xf32>
    %224 = math.tanh %223 : vector<8x384xf32>
    %cst_98 = arith.constant 5.000000e-01 : f32
    %225 = vector.broadcast %cst_98 : f32 to vector<8x384xf32>
    %226 = arith.mulf %225, %224 : vector<8x384xf32>
    %cst_99 = arith.constant 5.000000e-01 : f32
    %227 = vector.broadcast %cst_99 : f32 to vector<8x384xf32>
    %228 = arith.addf %226, %227 : vector<8x384xf32>
    %229 = vector.extract_strided_slice %220 {offsets = [0, 384], sizes = [8, 128], strides = [1, 1]} : vector<8x512xf32> to vector<8x128xf32>
    %230 = math.tanh %229 : vector<8x128xf32>
    %231 = vector.extract_strided_slice %228 {offsets = [0, 128], sizes = [8, 128], strides = [1, 1]} : vector<8x384xf32> to vector<8x128xf32>
    %232 = arith.mulf %231, %209 : vector<8x128xf32>
    %233 = vector.extract_strided_slice %228 {offsets = [0, 0], sizes = [8, 128], strides = [1, 1]} : vector<8x384xf32> to vector<8x128xf32>
    %234 = arith.mulf %233, %230 : vector<8x128xf32>
    %235 = arith.addf %232, %234 : vector<8x128xf32>
    %236 = vector.extract_strided_slice %228 {offsets = [0, 256], sizes = [8, 128], strides = [1, 1]} : vector<8x384xf32> to vector<8x128xf32>
    %237 = math.tanh %235 : vector<8x128xf32>
    %238 = arith.mulf %236, %237 : vector<8x128xf32>
    %c56_100 = arith.constant 56 : index
    %c0_101 = arith.constant 0 : index
    %239 = vector.load %arg11[%c56_100, %c0_101] : memref<64x128xf32, #tpu.memory_space<vmem>>, vector<8x128xf32>
    tpu.vector_store %arg11[%c56_100, %c0_101], %238 {strides = array<i32>} : memref<64x128xf32, #tpu.memory_space<vmem>>, vector<8x128xf32>,
    %c0_102 = arith.constant 0 : index
    %c64 = arith.constant 64 : index
    %240 = vector.load %arg11[%c0_102, %c64] : memref<64x128xf32, #tpu.memory_space<vmem>>, vector<8x64xf32>
    %c56_103 = arith.constant 56 : index
    %c64_104 = arith.constant 64 : index
    %241 = vector.load %arg11[%c56_103, %c64_104] : memref<64x128xf32, #tpu.memory_space<vmem>>, vector<8x64xf32>
    %c0_105 = arith.constant 0 : index
    %c64_106 = arith.constant 64 : index
    %242 = vector.load %arg11[%c0_105, %c64_106] : memref<64x128xf32, #tpu.memory_space<vmem>>, vector<8x64xf32>
    tpu.vector_store %arg11[%c0_105, %c64_106], %241 {strides = array<i32>} : memref<64x128xf32, #tpu.memory_space<vmem>>, vector<8x64xf32>,
    %c56_107 = arith.constant 56 : index
    %c64_108 = arith.constant 64 : index
    %243 = vector.load %arg11[%c56_107, %c64_108] : memref<64x128xf32, #tpu.memory_space<vmem>>, vector<8x64xf32>
    tpu.vector_store %arg11[%c56_107, %c64_108], %240 {strides = array<i32>} : memref<64x128xf32, #tpu.memory_space<vmem>>, vector<8x64xf32>,
    %c8_109 = arith.constant 8 : index
    %c64_110 = arith.constant 64 : index
    %244 = vector.load %arg11[%c8_109, %c64_110] : memref<64x128xf32, #tpu.memory_space<vmem>>, vector<8x64xf32>
    %c48_111 = arith.constant 48 : index
    %c64_112 = arith.constant 64 : index
    %245 = vector.load %arg11[%c48_111, %c64_112] : memref<64x128xf32, #tpu.memory_space<vmem>>, vector<8x64xf32>
    %c8_113 = arith.constant 8 : index
    %c64_114 = arith.constant 64 : index
    %246 = vector.load %arg11[%c8_113, %c64_114] : memref<64x128xf32, #tpu.memory_space<vmem>>, vector<8x64xf32>
    tpu.vector_store %arg11[%c8_113, %c64_114], %245 {strides = array<i32>} : memref<64x128xf32, #tpu.memory_space<vmem>>, vector<8x64xf32>,
    %c48_115 = arith.constant 48 : index
    %c64_116 = arith.constant 64 : index
    %247 = vector.load %arg11[%c48_115, %c64_116] : memref<64x128xf32, #tpu.memory_space<vmem>>, vector<8x64xf32>
    tpu.vector_store %arg11[%c48_115, %c64_116], %244 {strides = array<i32>} : memref<64x128xf32, #tpu.memory_space<vmem>>, vector<8x64xf32>,
    %c16_117 = arith.constant 16 : index
    %c64_118 = arith.constant 64 : index
    %248 = vector.load %arg11[%c16_117, %c64_118] : memref<64x128xf32, #tpu.memory_space<vmem>>, vector<8x64xf32>
    %c40_119 = arith.constant 40 : index
    %c64_120 = arith.constant 64 : index
    %249 = vector.load %arg11[%c40_119, %c64_120] : memref<64x128xf32, #tpu.memory_space<vmem>>, vector<8x64xf32>
    %c16_121 = arith.constant 16 : index
    %c64_122 = arith.constant 64 : index
    %250 = vector.load %arg11[%c16_121, %c64_122] : memref<64x128xf32, #tpu.memory_space<vmem>>, vector<8x64xf32>
    tpu.vector_store %arg11[%c16_121, %c64_122], %249 {strides = array<i32>} : memref<64x128xf32, #tpu.memory_space<vmem>>, vector<8x64xf32>,
    %c40_123 = arith.constant 40 : index
    %c64_124 = arith.constant 64 : index
    %251 = vector.load %arg11[%c40_123, %c64_124] : memref<64x128xf32, #tpu.memory_space<vmem>>, vector<8x64xf32>
    tpu.vector_store %arg11[%c40_123, %c64_124], %248 {strides = array<i32>} : memref<64x128xf32, #tpu.memory_space<vmem>>, vector<8x64xf32>,
    %c24_125 = arith.constant 24 : index
    %c64_126 = arith.constant 64 : index
    %252 = vector.load %arg11[%c24_125, %c64_126] : memref<64x128xf32, #tpu.memory_space<vmem>>, vector<8x64xf32>
    %c32_127 = arith.constant 32 : index
    %c64_128 = arith.constant 64 : index
    %253 = vector.load %arg11[%c32_127, %c64_128] : memref<64x128xf32, #tpu.memory_space<vmem>>, vector<8x64xf32>
    %c24_129 = arith.constant 24 : index
    %c64_130 = arith.constant 64 : index
    %254 = vector.load %arg11[%c24_129, %c64_130] : memref<64x128xf32, #tpu.memory_space<vmem>>, vector<8x64xf32>
    tpu.vector_store %arg11[%c24_129, %c64_130], %253 {strides = array<i32>} : memref<64x128xf32, #tpu.memory_space<vmem>>, vector<8x64xf32>,
    %c32_131 = arith.constant 32 : index
    %c64_132 = arith.constant 64 : index
    %255 = vector.load %arg11[%c32_131, %c64_132] : memref<64x128xf32, #tpu.memory_space<vmem>>, vector<8x64xf32>
    tpu.vector_store %arg11[%c32_131, %c64_132], %252 {strides = array<i32>} : memref<64x128xf32, #tpu.memory_space<vmem>>, vector<8x64xf32>,
    %c0_133 = arith.constant 0 : index
    %c0_134 = arith.constant 0 : index
    %256 = vector.load %arg11[%c0_133, %c0_134] : memref<64x128xf32, #tpu.memory_space<vmem>>, vector<64x128xf32>
    %257 = arith.truncf %256 : vector<64x128xf32> to vector<64x128xbf16>
    %c0_135 = arith.constant 0 : index
    %c0_136 = arith.constant 0 : index
    %258 = vector.load %arg4[%c0_135, %c0_136] : memref<128x512xbf16, #tpu.memory_space<vmem>>, vector<128x512xbf16>
    %cst_137 = arith.constant dense<0.000000e+00> : vector<64x512xf32>
    %259 = tpu.matmul %257, %258, %cst_137 {dimension_numbers = #tpu.dot_dimension_numbers<[1], [0], [0], [1], [0, 0, 1, 1], [], []>} : vector<64x128xbf16>, vector<128x512xbf16>, vector<64x512xf32> -> vector<64x512xf32>
    %c0_138 = arith.constant 0 : index
    %c0_139 = arith.constant 0 : index
    %260 = vector.load %arg5[%c0_138, %c0_139] : memref<1x512xf32, #tpu.memory_space<vmem>>, vector<1x512xf32>
    %261 = vector.broadcast %260 : vector<1x512xf32> to vector<64x512xf32>
    %262 = arith.addf %259, %261 : vector<64x512xf32>
    %c0_140 = arith.constant 0 : index
    %c0_141 = arith.constant 0 : index
    %263 = vector.load %arg10[%c0_140, %c0_141] : memref<64x512xf32, #tpu.memory_space<vmem>>, vector<64x512xf32>
    tpu.vector_store %arg10[%c0_140, %c0_141], %262 {strides = array<i32>} : memref<64x512xf32, #tpu.memory_space<vmem>>, vector<64x512xf32>,
    %cst_142 = arith.constant 0.000000e+00 : f32
    %264 = vector.broadcast %cst_142 : f32 to vector<8x128xf32>
    %cst_143 = arith.constant 0.000000e+00 : f32
    %265 = vector.broadcast %cst_143 : f32 to vector<8x128xf32>
    %c0_144 = arith.constant 0 : index
    %c0_145 = arith.constant 0 : index
    %266 = vector.load %arg10[%c0_144, %c0_145] : memref<64x512xf32, #tpu.memory_space<vmem>>, vector<8x512xf32>
    %c56_146 = arith.constant 56 : index
    %c0_147 = arith.constant 0 : index
    %267 = vector.load %arg10[%c56_146, %c0_147] : memref<64x512xf32, #tpu.memory_space<vmem>>, vector<8x512xf32>
    %268 = arith.select %18, %266, %267 : vector<8x512xi1>, vector<8x512xf32>
    %269 = arith.truncf %264 : vector<8x128xf32> to vector<8x128xbf16>
    %c0_148 = arith.constant 0 : index
    %c0_149 = arith.constant 0 : index
    %270 = vector.load %arg6[%c0_148, %c0_149] : memref<128x512xbf16, #tpu.memory_space<vmem>>, vector<128x512xbf16>
    %cst_150 = arith.constant dense<0.000000e+00> : vector<8x512xf32>
    %271 = tpu.matmul %269, %270, %cst_150 {dimension_numbers = #tpu.dot_dimension_numbers<[1], [0], [0], [1], [0, 0, 1, 1], [], []>} : vector<8x128xbf16>, vector<128x512xbf16>, vector<8x512xf32> -> vector<8x512xf32>
    %272 = arith.addf %268, %271 : vector<8x512xf32>
    %273 = vector.extract_strided_slice %272 {offsets = [0, 0], sizes = [8, 384], strides = [1, 1]} : vector<8x512xf32> to vector<8x384xf32>
    %cst_151 = arith.constant 5.000000e-01 : f32
    %274 = vector.broadcast %cst_151 : f32 to vector<8x384xf32>
    %275 = arith.mulf %274, %273 : vector<8x384xf32>
    %276 = math.tanh %275 : vector<8x384xf32>
    %cst_152 = arith.constant 5.000000e-01 : f32
    %277 = vector.broadcast %cst_152 : f32 to vector<8x384xf32>
    %278 = arith.mulf %277, %276 : vector<8x384xf32>
    %cst_153 = arith.constant 5.000000e-01 : f32
    %279 = vector.broadcast %cst_153 : f32 to vector<8x384xf32>
    %280 = arith.addf %278, %279 : vector<8x384xf32>
    %281 = vector.extract_strided_slice %272 {offsets = [0, 384], sizes = [8, 128], strides = [1, 1]} : vector<8x512xf32> to vector<8x128xf32>
    %282 = math.tanh %281 : vector<8x128xf32>
    %283 = vector.extract_strided_slice %280 {offsets = [0, 128], sizes = [8, 128], strides = [1, 1]} : vector<8x384xf32> to vector<8x128xf32>
    %284 = arith.mulf %283, %265 : vector<8x128xf32>
    %285 = vector.extract_strided_slice %280 {offsets = [0, 0], sizes = [8, 128], strides = [1, 1]} : vector<8x384xf32> to vector<8x128xf32>
    %286 = arith.mulf %285, %282 : vector<8x128xf32>
    %287 = arith.addf %284, %286 : vector<8x128xf32>
    %288 = vector.extract_strided_slice %280 {offsets = [0, 256], sizes = [8, 128], strides = [1, 1]} : vector<8x384xf32> to vector<8x128xf32>
    %289 = math.tanh %287 : vector<8x128xf32>
    %290 = arith.mulf %288, %289 : vector<8x128xf32>
    %c8_154 = arith.constant 8 : index
    %c0_155 = arith.constant 0 : index
    %291 = vector.load %arg10[%c8_154, %c0_155] : memref<64x512xf32, #tpu.memory_space<vmem>>, vector<8x512xf32>
    %c48_156 = arith.constant 48 : index
    %c0_157 = arith.constant 0 : index
    %292 = vector.load %arg10[%c48_156, %c0_157] : memref<64x512xf32, #tpu.memory_space<vmem>>, vector<8x512xf32>
    %293 = arith.select %18, %291, %292 : vector<8x512xi1>, vector<8x512xf32>
    %294 = arith.truncf %290 : vector<8x128xf32> to vector<8x128xbf16>
    %c0_158 = arith.constant 0 : index
    %c0_159 = arith.constant 0 : index
    %295 = vector.load %arg6[%c0_158, %c0_159] : memref<128x512xbf16, #tpu.memory_space<vmem>>, vector<128x512xbf16>
    %cst_160 = arith.constant dense<0.000000e+00> : vector<8x512xf32>
    %296 = tpu.matmul %294, %295, %cst_160 {dimension_numbers = #tpu.dot_dimension_numbers<[1], [0], [0], [1], [0, 0, 1, 1], [], []>} : vector<8x128xbf16>, vector<128x512xbf16>, vector<8x512xf32> -> vector<8x512xf32>
    %297 = arith.addf %293, %296 : vector<8x512xf32>
    %298 = vector.extract_strided_slice %297 {offsets = [0, 0], sizes = [8, 384], strides = [1, 1]} : vector<8x512xf32> to vector<8x384xf32>
    %cst_161 = arith.constant 5.000000e-01 : f32
    %299 = vector.broadcast %cst_161 : f32 to vector<8x384xf32>
    %300 = arith.mulf %299, %298 : vector<8x384xf32>
    %301 = math.tanh %300 : vector<8x384xf32>
    %cst_162 = arith.constant 5.000000e-01 : f32
    %302 = vector.broadcast %cst_162 : f32 to vector<8x384xf32>
    %303 = arith.mulf %302, %301 : vector<8x384xf32>
    %cst_163 = arith.constant 5.000000e-01 : f32
    %304 = vector.broadcast %cst_163 : f32 to vector<8x384xf32>
    %305 = arith.addf %303, %304 : vector<8x384xf32>
    %306 = vector.extract_strided_slice %297 {offsets = [0, 384], sizes = [8, 128], strides = [1, 1]} : vector<8x512xf32> to vector<8x128xf32>
    %307 = math.tanh %306 : vector<8x128xf32>
    %308 = vector.extract_strided_slice %305 {offsets = [0, 128], sizes = [8, 128], strides = [1, 1]} : vector<8x384xf32> to vector<8x128xf32>
    %309 = arith.mulf %308, %287 : vector<8x128xf32>
    %310 = vector.extract_strided_slice %305 {offsets = [0, 0], sizes = [8, 128], strides = [1, 1]} : vector<8x384xf32> to vector<8x128xf32>
    %311 = arith.mulf %310, %307 : vector<8x128xf32>
    %312 = arith.addf %309, %311 : vector<8x128xf32>
    %313 = vector.extract_strided_slice %305 {offsets = [0, 256], sizes = [8, 128], strides = [1, 1]} : vector<8x384xf32> to vector<8x128xf32>
    %314 = math.tanh %312 : vector<8x128xf32>
    %315 = arith.mulf %313, %314 : vector<8x128xf32>
    %c16_164 = arith.constant 16 : index
    %c0_165 = arith.constant 0 : index
    %316 = vector.load %arg10[%c16_164, %c0_165] : memref<64x512xf32, #tpu.memory_space<vmem>>, vector<8x512xf32>
    %c40_166 = arith.constant 40 : index
    %c0_167 = arith.constant 0 : index
    %317 = vector.load %arg10[%c40_166, %c0_167] : memref<64x512xf32, #tpu.memory_space<vmem>>, vector<8x512xf32>
    %318 = arith.select %18, %316, %317 : vector<8x512xi1>, vector<8x512xf32>
    %319 = arith.truncf %315 : vector<8x128xf32> to vector<8x128xbf16>
    %c0_168 = arith.constant 0 : index
    %c0_169 = arith.constant 0 : index
    %320 = vector.load %arg6[%c0_168, %c0_169] : memref<128x512xbf16, #tpu.memory_space<vmem>>, vector<128x512xbf16>
    %cst_170 = arith.constant dense<0.000000e+00> : vector<8x512xf32>
    %321 = tpu.matmul %319, %320, %cst_170 {dimension_numbers = #tpu.dot_dimension_numbers<[1], [0], [0], [1], [0, 0, 1, 1], [], []>} : vector<8x128xbf16>, vector<128x512xbf16>, vector<8x512xf32> -> vector<8x512xf32>
    %322 = arith.addf %318, %321 : vector<8x512xf32>
    %323 = vector.extract_strided_slice %322 {offsets = [0, 0], sizes = [8, 384], strides = [1, 1]} : vector<8x512xf32> to vector<8x384xf32>
    %cst_171 = arith.constant 5.000000e-01 : f32
    %324 = vector.broadcast %cst_171 : f32 to vector<8x384xf32>
    %325 = arith.mulf %324, %323 : vector<8x384xf32>
    %326 = math.tanh %325 : vector<8x384xf32>
    %cst_172 = arith.constant 5.000000e-01 : f32
    %327 = vector.broadcast %cst_172 : f32 to vector<8x384xf32>
    %328 = arith.mulf %327, %326 : vector<8x384xf32>
    %cst_173 = arith.constant 5.000000e-01 : f32
    %329 = vector.broadcast %cst_173 : f32 to vector<8x384xf32>
    %330 = arith.addf %328, %329 : vector<8x384xf32>
    %331 = vector.extract_strided_slice %322 {offsets = [0, 384], sizes = [8, 128], strides = [1, 1]} : vector<8x512xf32> to vector<8x128xf32>
    %332 = math.tanh %331 : vector<8x128xf32>
    %333 = vector.extract_strided_slice %330 {offsets = [0, 128], sizes = [8, 128], strides = [1, 1]} : vector<8x384xf32> to vector<8x128xf32>
    %334 = arith.mulf %333, %312 : vector<8x128xf32>
    %335 = vector.extract_strided_slice %330 {offsets = [0, 0], sizes = [8, 128], strides = [1, 1]} : vector<8x384xf32> to vector<8x128xf32>
    %336 = arith.mulf %335, %332 : vector<8x128xf32>
    %337 = arith.addf %334, %336 : vector<8x128xf32>
    %338 = vector.extract_strided_slice %330 {offsets = [0, 256], sizes = [8, 128], strides = [1, 1]} : vector<8x384xf32> to vector<8x128xf32>
    %339 = math.tanh %337 : vector<8x128xf32>
    %340 = arith.mulf %338, %339 : vector<8x128xf32>
    %c24_174 = arith.constant 24 : index
    %c0_175 = arith.constant 0 : index
    %341 = vector.load %arg10[%c24_174, %c0_175] : memref<64x512xf32, #tpu.memory_space<vmem>>, vector<8x512xf32>
    %c32_176 = arith.constant 32 : index
    %c0_177 = arith.constant 0 : index
    %342 = vector.load %arg10[%c32_176, %c0_177] : memref<64x512xf32, #tpu.memory_space<vmem>>, vector<8x512xf32>
    %343 = arith.select %18, %341, %342 : vector<8x512xi1>, vector<8x512xf32>
    %344 = arith.truncf %340 : vector<8x128xf32> to vector<8x128xbf16>
    %c0_178 = arith.constant 0 : index
    %c0_179 = arith.constant 0 : index
    %345 = vector.load %arg6[%c0_178, %c0_179] : memref<128x512xbf16, #tpu.memory_space<vmem>>, vector<128x512xbf16>
    %cst_180 = arith.constant dense<0.000000e+00> : vector<8x512xf32>
    %346 = tpu.matmul %344, %345, %cst_180 {dimension_numbers = #tpu.dot_dimension_numbers<[1], [0], [0], [1], [0, 0, 1, 1], [], []>} : vector<8x128xbf16>, vector<128x512xbf16>, vector<8x512xf32> -> vector<8x512xf32>
    %347 = arith.addf %343, %346 : vector<8x512xf32>
    %348 = vector.extract_strided_slice %347 {offsets = [0, 0], sizes = [8, 384], strides = [1, 1]} : vector<8x512xf32> to vector<8x384xf32>
    %cst_181 = arith.constant 5.000000e-01 : f32
    %349 = vector.broadcast %cst_181 : f32 to vector<8x384xf32>
    %350 = arith.mulf %349, %348 : vector<8x384xf32>
    %351 = math.tanh %350 : vector<8x384xf32>
    %cst_182 = arith.constant 5.000000e-01 : f32
    %352 = vector.broadcast %cst_182 : f32 to vector<8x384xf32>
    %353 = arith.mulf %352, %351 : vector<8x384xf32>
    %cst_183 = arith.constant 5.000000e-01 : f32
    %354 = vector.broadcast %cst_183 : f32 to vector<8x384xf32>
    %355 = arith.addf %353, %354 : vector<8x384xf32>
    %356 = vector.extract_strided_slice %347 {offsets = [0, 384], sizes = [8, 128], strides = [1, 1]} : vector<8x512xf32> to vector<8x128xf32>
    %357 = math.tanh %356 : vector<8x128xf32>
    %358 = vector.extract_strided_slice %355 {offsets = [0, 128], sizes = [8, 128], strides = [1, 1]} : vector<8x384xf32> to vector<8x128xf32>
    %359 = arith.mulf %358, %337 : vector<8x128xf32>
    %360 = vector.extract_strided_slice %355 {offsets = [0, 0], sizes = [8, 128], strides = [1, 1]} : vector<8x384xf32> to vector<8x128xf32>
    %361 = arith.mulf %360, %357 : vector<8x128xf32>
    %362 = arith.addf %359, %361 : vector<8x128xf32>
    %363 = vector.extract_strided_slice %355 {offsets = [0, 256], sizes = [8, 128], strides = [1, 1]} : vector<8x384xf32> to vector<8x128xf32>
    %364 = math.tanh %362 : vector<8x128xf32>
    %365 = arith.mulf %363, %364 : vector<8x128xf32>
    %c32_184 = arith.constant 32 : index
    %c0_185 = arith.constant 0 : index
    %366 = vector.load %arg10[%c32_184, %c0_185] : memref<64x512xf32, #tpu.memory_space<vmem>>, vector<8x512xf32>
    %c24_186 = arith.constant 24 : index
    %c0_187 = arith.constant 0 : index
    %367 = vector.load %arg10[%c24_186, %c0_187] : memref<64x512xf32, #tpu.memory_space<vmem>>, vector<8x512xf32>
    %368 = arith.select %18, %366, %367 : vector<8x512xi1>, vector<8x512xf32>
    %369 = arith.truncf %365 : vector<8x128xf32> to vector<8x128xbf16>
    %c0_188 = arith.constant 0 : index
    %c0_189 = arith.constant 0 : index
    %370 = vector.load %arg6[%c0_188, %c0_189] : memref<128x512xbf16, #tpu.memory_space<vmem>>, vector<128x512xbf16>
    %cst_190 = arith.constant dense<0.000000e+00> : vector<8x512xf32>
    %371 = tpu.matmul %369, %370, %cst_190 {dimension_numbers = #tpu.dot_dimension_numbers<[1], [0], [0], [1], [0, 0, 1, 1], [], []>} : vector<8x128xbf16>, vector<128x512xbf16>, vector<8x512xf32> -> vector<8x512xf32>
    %372 = arith.addf %368, %371 : vector<8x512xf32>
    %373 = vector.extract_strided_slice %372 {offsets = [0, 0], sizes = [8, 384], strides = [1, 1]} : vector<8x512xf32> to vector<8x384xf32>
    %cst_191 = arith.constant 5.000000e-01 : f32
    %374 = vector.broadcast %cst_191 : f32 to vector<8x384xf32>
    %375 = arith.mulf %374, %373 : vector<8x384xf32>
    %376 = math.tanh %375 : vector<8x384xf32>
    %cst_192 = arith.constant 5.000000e-01 : f32
    %377 = vector.broadcast %cst_192 : f32 to vector<8x384xf32>
    %378 = arith.mulf %377, %376 : vector<8x384xf32>
    %cst_193 = arith.constant 5.000000e-01 : f32
    %379 = vector.broadcast %cst_193 : f32 to vector<8x384xf32>
    %380 = arith.addf %378, %379 : vector<8x384xf32>
    %381 = vector.extract_strided_slice %372 {offsets = [0, 384], sizes = [8, 128], strides = [1, 1]} : vector<8x512xf32> to vector<8x128xf32>
    %382 = math.tanh %381 : vector<8x128xf32>
    %383 = vector.extract_strided_slice %380 {offsets = [0, 128], sizes = [8, 128], strides = [1, 1]} : vector<8x384xf32> to vector<8x128xf32>
    %384 = arith.mulf %383, %362 : vector<8x128xf32>
    %385 = vector.extract_strided_slice %380 {offsets = [0, 0], sizes = [8, 128], strides = [1, 1]} : vector<8x384xf32> to vector<8x128xf32>
    %386 = arith.mulf %385, %382 : vector<8x128xf32>
    %387 = arith.addf %384, %386 : vector<8x128xf32>
    %388 = vector.extract_strided_slice %380 {offsets = [0, 256], sizes = [8, 128], strides = [1, 1]} : vector<8x384xf32> to vector<8x128xf32>
    %389 = math.tanh %387 : vector<8x128xf32>
    %390 = arith.mulf %388, %389 : vector<8x128xf32>
    %c40_194 = arith.constant 40 : index
    %c0_195 = arith.constant 0 : index
    %391 = vector.load %arg10[%c40_194, %c0_195] : memref<64x512xf32, #tpu.memory_space<vmem>>, vector<8x512xf32>
    %c16_196 = arith.constant 16 : index
    %c0_197 = arith.constant 0 : index
    %392 = vector.load %arg10[%c16_196, %c0_197] : memref<64x512xf32, #tpu.memory_space<vmem>>, vector<8x512xf32>
    %393 = arith.select %18, %391, %392 : vector<8x512xi1>, vector<8x512xf32>
    %394 = arith.truncf %390 : vector<8x128xf32> to vector<8x128xbf16>
    %c0_198 = arith.constant 0 : index
    %c0_199 = arith.constant 0 : index
    %395 = vector.load %arg6[%c0_198, %c0_199] : memref<128x512xbf16, #tpu.memory_space<vmem>>, vector<128x512xbf16>
    %cst_200 = arith.constant dense<0.000000e+00> : vector<8x512xf32>
    %396 = tpu.matmul %394, %395, %cst_200 {dimension_numbers = #tpu.dot_dimension_numbers<[1], [0], [0], [1], [0, 0, 1, 1], [], []>} : vector<8x128xbf16>, vector<128x512xbf16>, vector<8x512xf32> -> vector<8x512xf32>
    %397 = arith.addf %393, %396 : vector<8x512xf32>
    %398 = vector.extract_strided_slice %397 {offsets = [0, 0], sizes = [8, 384], strides = [1, 1]} : vector<8x512xf32> to vector<8x384xf32>
    %cst_201 = arith.constant 5.000000e-01 : f32
    %399 = vector.broadcast %cst_201 : f32 to vector<8x384xf32>
    %400 = arith.mulf %399, %398 : vector<8x384xf32>
    %401 = math.tanh %400 : vector<8x384xf32>
    %cst_202 = arith.constant 5.000000e-01 : f32
    %402 = vector.broadcast %cst_202 : f32 to vector<8x384xf32>
    %403 = arith.mulf %402, %401 : vector<8x384xf32>
    %cst_203 = arith.constant 5.000000e-01 : f32
    %404 = vector.broadcast %cst_203 : f32 to vector<8x384xf32>
    %405 = arith.addf %403, %404 : vector<8x384xf32>
    %406 = vector.extract_strided_slice %397 {offsets = [0, 384], sizes = [8, 128], strides = [1, 1]} : vector<8x512xf32> to vector<8x128xf32>
    %407 = math.tanh %406 : vector<8x128xf32>
    %408 = vector.extract_strided_slice %405 {offsets = [0, 128], sizes = [8, 128], strides = [1, 1]} : vector<8x384xf32> to vector<8x128xf32>
    %409 = arith.mulf %408, %387 : vector<8x128xf32>
    %410 = vector.extract_strided_slice %405 {offsets = [0, 0], sizes = [8, 128], strides = [1, 1]} : vector<8x384xf32> to vector<8x128xf32>
    %411 = arith.mulf %410, %407 : vector<8x128xf32>
    %412 = arith.addf %409, %411 : vector<8x128xf32>
    %413 = vector.extract_strided_slice %405 {offsets = [0, 256], sizes = [8, 128], strides = [1, 1]} : vector<8x384xf32> to vector<8x128xf32>
    %414 = math.tanh %412 : vector<8x128xf32>
    %415 = arith.mulf %413, %414 : vector<8x128xf32>
    %c48_204 = arith.constant 48 : index
    %c0_205 = arith.constant 0 : index
    %416 = vector.load %arg10[%c48_204, %c0_205] : memref<64x512xf32, #tpu.memory_space<vmem>>, vector<8x512xf32>
    %c8_206 = arith.constant 8 : index
    %c0_207 = arith.constant 0 : index
    %417 = vector.load %arg10[%c8_206, %c0_207] : memref<64x512xf32, #tpu.memory_space<vmem>>, vector<8x512xf32>
    %418 = arith.select %18, %416, %417 : vector<8x512xi1>, vector<8x512xf32>
    %419 = arith.truncf %415 : vector<8x128xf32> to vector<8x128xbf16>
    %c0_208 = arith.constant 0 : index
    %c0_209 = arith.constant 0 : index
    %420 = vector.load %arg6[%c0_208, %c0_209] : memref<128x512xbf16, #tpu.memory_space<vmem>>, vector<128x512xbf16>
    %cst_210 = arith.constant dense<0.000000e+00> : vector<8x512xf32>
    %421 = tpu.matmul %419, %420, %cst_210 {dimension_numbers = #tpu.dot_dimension_numbers<[1], [0], [0], [1], [0, 0, 1, 1], [], []>} : vector<8x128xbf16>, vector<128x512xbf16>, vector<8x512xf32> -> vector<8x512xf32>
    %422 = arith.addf %418, %421 : vector<8x512xf32>
    %423 = vector.extract_strided_slice %422 {offsets = [0, 0], sizes = [8, 384], strides = [1, 1]} : vector<8x512xf32> to vector<8x384xf32>
    %cst_211 = arith.constant 5.000000e-01 : f32
    %424 = vector.broadcast %cst_211 : f32 to vector<8x384xf32>
    %425 = arith.mulf %424, %423 : vector<8x384xf32>
    %426 = math.tanh %425 : vector<8x384xf32>
    %cst_212 = arith.constant 5.000000e-01 : f32
    %427 = vector.broadcast %cst_212 : f32 to vector<8x384xf32>
    %428 = arith.mulf %427, %426 : vector<8x384xf32>
    %cst_213 = arith.constant 5.000000e-01 : f32
    %429 = vector.broadcast %cst_213 : f32 to vector<8x384xf32>
    %430 = arith.addf %428, %429 : vector<8x384xf32>
    %431 = vector.extract_strided_slice %422 {offsets = [0, 384], sizes = [8, 128], strides = [1, 1]} : vector<8x512xf32> to vector<8x128xf32>
    %432 = math.tanh %431 : vector<8x128xf32>
    %433 = vector.extract_strided_slice %430 {offsets = [0, 128], sizes = [8, 128], strides = [1, 1]} : vector<8x384xf32> to vector<8x128xf32>
    %434 = arith.mulf %433, %412 : vector<8x128xf32>
    %435 = vector.extract_strided_slice %430 {offsets = [0, 0], sizes = [8, 128], strides = [1, 1]} : vector<8x384xf32> to vector<8x128xf32>
    %436 = arith.mulf %435, %432 : vector<8x128xf32>
    %437 = arith.addf %434, %436 : vector<8x128xf32>
    %438 = vector.extract_strided_slice %430 {offsets = [0, 256], sizes = [8, 128], strides = [1, 1]} : vector<8x384xf32> to vector<8x128xf32>
    %439 = math.tanh %437 : vector<8x128xf32>
    %440 = arith.mulf %438, %439 : vector<8x128xf32>
    %c56_214 = arith.constant 56 : index
    %c0_215 = arith.constant 0 : index
    %441 = vector.load %arg10[%c56_214, %c0_215] : memref<64x512xf32, #tpu.memory_space<vmem>>, vector<8x512xf32>
    %c0_216 = arith.constant 0 : index
    %c0_217 = arith.constant 0 : index
    %442 = vector.load %arg10[%c0_216, %c0_217] : memref<64x512xf32, #tpu.memory_space<vmem>>, vector<8x512xf32>
    %443 = arith.select %18, %441, %442 : vector<8x512xi1>, vector<8x512xf32>
    %444 = arith.truncf %440 : vector<8x128xf32> to vector<8x128xbf16>
    %c0_218 = arith.constant 0 : index
    %c0_219 = arith.constant 0 : index
    %445 = vector.load %arg6[%c0_218, %c0_219] : memref<128x512xbf16, #tpu.memory_space<vmem>>, vector<128x512xbf16>
    %cst_220 = arith.constant dense<0.000000e+00> : vector<8x512xf32>
    %446 = tpu.matmul %444, %445, %cst_220 {dimension_numbers = #tpu.dot_dimension_numbers<[1], [0], [0], [1], [0, 0, 1, 1], [], []>} : vector<8x128xbf16>, vector<128x512xbf16>, vector<8x512xf32> -> vector<8x512xf32>
    %447 = arith.addf %443, %446 : vector<8x512xf32>
    %448 = vector.extract_strided_slice %447 {offsets = [0, 0], sizes = [8, 384], strides = [1, 1]} : vector<8x512xf32> to vector<8x384xf32>
    %cst_221 = arith.constant 5.000000e-01 : f32
    %449 = vector.broadcast %cst_221 : f32 to vector<8x384xf32>
    %450 = arith.mulf %449, %448 : vector<8x384xf32>
    %451 = math.tanh %450 : vector<8x384xf32>
    %cst_222 = arith.constant 5.000000e-01 : f32
    %452 = vector.broadcast %cst_222 : f32 to vector<8x384xf32>
    %453 = arith.mulf %452, %451 : vector<8x384xf32>
    %cst_223 = arith.constant 5.000000e-01 : f32
    %454 = vector.broadcast %cst_223 : f32 to vector<8x384xf32>
    %455 = arith.addf %453, %454 : vector<8x384xf32>
    %456 = vector.extract_strided_slice %447 {offsets = [0, 384], sizes = [8, 128], strides = [1, 1]} : vector<8x512xf32> to vector<8x128xf32>
    %457 = math.tanh %456 : vector<8x128xf32>
    %458 = vector.extract_strided_slice %455 {offsets = [0, 128], sizes = [8, 128], strides = [1, 1]} : vector<8x384xf32> to vector<8x128xf32>
    %459 = arith.mulf %458, %437 : vector<8x128xf32>
    %460 = vector.extract_strided_slice %455 {offsets = [0, 0], sizes = [8, 128], strides = [1, 1]} : vector<8x384xf32> to vector<8x128xf32>
    %461 = arith.mulf %460, %457 : vector<8x128xf32>
    %462 = arith.addf %459, %461 : vector<8x128xf32>
    %463 = vector.extract_strided_slice %455 {offsets = [0, 256], sizes = [8, 128], strides = [1, 1]} : vector<8x384xf32> to vector<8x128xf32>
    %464 = math.tanh %462 : vector<8x128xf32>
    %465 = arith.mulf %463, %464 : vector<8x128xf32>
    %466 = arith.select %21, %465, %290 : vector<8x128xi1>, vector<8x128xf32>
    %467 = arith.truncf %466 : vector<8x128xf32> to vector<8x128xbf16>
    %c0_224 = arith.constant 0 : index
    %c0_225 = arith.constant 0 : index
    %468 = vector.load %arg7[%c0_224, %c0_225] : memref<128x128xbf16, #tpu.memory_space<vmem>>, vector<128x128xbf16>
    %cst_226 = arith.constant dense<0.000000e+00> : vector<8x128xf32>
    %469 = tpu.matmul %467, %468, %cst_226 {dimension_numbers = #tpu.dot_dimension_numbers<[1], [0], [0], [1], [0, 0, 1, 1], [], []>} : vector<8x128xbf16>, vector<128x128xbf16>, vector<8x128xf32> -> vector<8x128xf32>
    %c0_227 = arith.constant 0 : index
    %c0_228 = arith.constant 0 : index
    %470 = vector.load %arg8[%c0_227, %c0_228] : memref<1x128xf32, #tpu.memory_space<vmem>>, vector<1x128xf32>
    %471 = vector.broadcast %470 : vector<1x128xf32> to vector<8x128xf32>
    %472 = arith.addf %469, %471 : vector<8x128xf32>
    %c0_229 = arith.constant 0 : index
    %c0_230 = arith.constant 0 : index
    %473 = vector.load %arg9[%c0_229, %c0_230] : memref<8x128xf32, #tpu.memory_space<vmem>>, vector<8x128xf32>
    tpu.vector_store %arg9[%c0_229, %c0_230], %472 {strides = array<i32>} : memref<8x128xf32, #tpu.memory_space<vmem>>, vector<8x128xf32>,
    return
  }
}

</mosaic_0001>

<bundles_post_ra>
// kernel: bilstm_forward.1
= control target key start
LH: loop header
LB: loop body
LE: loop exit
PB: predicated region body
PF: predicated region fallthrough
CT: control target
= control target key end

     0   :  { %14 = vsyncpa [#allocation5], 0  ;;  %s7401_s0 = inlined_call_operand.vmem [shape: f32[64,128], index: 0, kind: input, shape index: {}]   ;;  %s7402_s1 = inlined_call_operand.hbm [shape: bf16[128,512], index: 1, kind: input, shape index: {}]   ;;  %s7403_s2 = inlined_call_operand.vmem [shape: f32[1,512], index: 2, kind: input, shape index: {}]   ;;  %s7404_s3 = inlined_call_operand.hbm [shape: bf16[128,512], index: 3, kind: input, shape index: {}]   ;;  %s7405_s4 = inlined_call_operand.hbm [shape: bf16[128,512], index: 4, kind: input, shape index: {}]   ;;  %s7406_s5 = inlined_call_operand.vmem [shape: f32[1,512], index: 5, kind: input, shape index: {}]   ;;  %s7407_s6 = inlined_call_operand.hbm [shape: bf16[128,512], index: 6, kind: input, shape index: {}]   ;;  %s7408_s7 = inlined_call_operand.vmem [shape: bf16[128,128], index: 7, kind: input, shape index: {}]   ;;  %s7409_s8 = inlined_call_operand.vmem [shape: f32[1,128], index: 8, kind: input, shape index: {}]   ;;  %s7410_s9 = inlined_call_operand.vmem [shape: f32[8,128], index: 9, kind: output, shape index: {}]  }
   0x1   :  { %15 = vsyncpa [#allocation7], 0 }
   0x2   :  { %16 = vsyncpa [#allocation10], 0  ;;  %s5599_s30 = smov [#allocation6]   ;;  %s5600_s11 = smov [#allocation4]  }
   0x3   :  { %s38_s10 = sshll.u32 %s5599_s30, 4  ;;  %s24_s12 = sshll.u32 %s5600_s11, 4  ;;  %s39_s10 = int_to_ptr.vmem [resolvable:$true] %s38_s10  ;;  %s5658_s12 = int_to_ptr.vmem [resolvable:$true] %s24_s12 }
   0x4   :  { %s5505_s15 = scalar_lea.hbm %s7404_s3, 4096 }
   0x5   :  { %p5506_p0 = scmp.ne.s32.totalorder %s7404_s3, %s5505_s15  ;;  %p5509_p1 = scmp.lt.u32.totalorder %s5505_s15, %s7404_s3 }
   0x7   :  { %p5511_p2 = pnand %p5509_p1, %p5506_p0 }
   0x9   :  { %5514 = shalt.err (!%p5511_p2)
}
   0xa   :  { %s5515_s20 = scalar_lea.vmem %s39_s10, 4096  ;;  %p5520_p4 = scmp.lt.s32.totalorder %s39_s10, %s39_s10 }
   0xb   :  { %p5516_p3 = scmp.ne.s32.totalorder %s39_s10, %s5515_s20  ;;  %p5521_p5 = scmp.lt.s32.totalorder %s5515_s20, %s5515_s20 }
   0xd   :  { %p5522_p6 = por %p5521_p5, %p5520_p4 }
   0xf   :  { %p5523_p7 = pnand %p5522_p6, %p5516_p3 }
  0x11   :  { %5526 = shalt.err (!%p5523_p7)
}
  0x12   :  { %s5601_s21 = smov 256   ;;  %s5602_s22 = smov 16  }
  0x13   :  { %44 = dma.hbm_to_vmem [thread:$0]  %s7404_s3, 4096, %s39_s10, [#allocation7], %s5601_s21, %s5601_s21, %s5602_s22  }
  0x14   :  { %s5527_s27 = scalar_lea.hbm %s7402_s1, 4096 }
  0x15   :  { %p5528_p8 = scmp.ne.s32.totalorder %s7402_s1, %s5527_s27  ;;  %p5531_p9 = scmp.lt.u32.totalorder %s5527_s27, %s7402_s1 }
  0x17   :  { %p5533_p10 = pnand %p5531_p9, %p5528_p8 }
  0x19   :  { %5536 = shalt.err (!%p5533_p10)
}
  0x1a   :  { %s5537_s13 = scalar_lea.vmem %s5658_s12, 4096  ;;  %p5542_p12 = scmp.lt.s32.totalorder %s5658_s12, %s5658_s12 }
  0x1b   :  { %p5538_p11 = scmp.ne.s32.totalorder %s5658_s12, %s5537_s13  ;;  %p5543_p13 = scmp.lt.s32.totalorder %s5537_s13, %s5537_s13 }
  0x1d   :  { %p5544_p0 = por %p5543_p13, %p5542_p12 }
  0x1f   :  { %p5545_p1 = pnand %p5544_p0, %p5538_p11 }
  0x21   :  { %5548 = shalt.err (!%p5545_p1)
}
  0x22   :  { %30 = dma.hbm_to_vmem [thread:$0]  %s7402_s1, 4096, %s5658_s12, [#allocation5], %s5601_s21, %s5601_s21, %s5602_s22  }
  0x23   :  { %s5603_s14 = smov [#allocation8]   ;;  %s5604_s16 = smov [#allocation9]  }
  0x24   :  { %s50_s15 = sshll.u32 %s5603_s14, 4  ;;  %s64_s17 = sshll.u32 %s5604_s16, 4  ;;  %s51_s15 = int_to_ptr.vmem [resolvable:$true] %s50_s15  ;;  %s5695_s17 = int_to_ptr.vmem [resolvable:$true] %s64_s17 }
  0x25   :  { %s5549_s20 = scalar_lea.hbm %s7405_s4, 4096 }
  0x26   :  { %p5550_p2 = scmp.ne.s32.totalorder %s7405_s4, %s5549_s20  ;;  %p5553_p3 = scmp.lt.u32.totalorder %s5549_s20, %s7405_s4 }
  0x28   :  { %p5555_p4 = pnand %p5553_p3, %p5550_p2 }
  0x2a   :  { %5558 = shalt.err (!%p5555_p4)
}
  0x2b   :  { %s5559_s1 = scalar_lea.vmem %s51_s15, 4096  ;;  %p5564_p6 = scmp.lt.s32.totalorder %s51_s15, %s51_s15 }
  0x2c   :  { %p5560_p5 = scmp.ne.s32.totalorder %s51_s15, %s5559_s1  ;;  %p5565_p7 = scmp.lt.s32.totalorder %s5559_s1, %s5559_s1 }
  0x2e   :  { %p5566_p8 = por %p5565_p7, %p5564_p6 }
  0x30   :  { %p5567_p9 = pnand %p5566_p8, %p5560_p5 }
  0x32   :  { %5570 = shalt.err (!%p5567_p9)
}
  0x33   :  { %56 = dma.hbm_to_vmem [thread:$0]  %s7405_s4, 4096, %s51_s15, [#allocation7], %s5601_s21, %s5601_s21, %s5602_s22  }
  0x34   :  { %s5571_s30 = scalar_lea.hbm %s7407_s6, 4096 }
  0x35   :  { %p5572_p10 = scmp.ne.s32.totalorder %s7407_s6, %s5571_s30  ;;  %p5575_p11 = scmp.lt.u32.totalorder %s5571_s30, %s7407_s6 }
  0x37   :  { %p5577_p12 = pnand %p5575_p11, %p5572_p10 }
  0x39   :  { %5580 = shalt.err (!%p5577_p12)
}
  0x3a   :  { %s5581_s14 = scalar_lea.vmem %s5695_s17, 4096  ;;  %p5586_p0 = scmp.lt.s32.totalorder %s5695_s17, %s5695_s17 }
  0x3b   :  { %p5582_p13 = scmp.ne.s32.totalorder %s5695_s17, %s5581_s14  ;;  %p5587_p1 = scmp.lt.s32.totalorder %s5581_s14, %s5581_s14 }
  0x3d   :  { %p5588_p2 = por %p5587_p1, %p5586_p0 }
  0x3f   :  { %p5589_p3 = pnand %p5588_p2, %p5582_p13 }
  0x41   :  { %5592 = shalt.err (!%p5589_p3)
}
  0x42   :  { %70 = dma.hbm_to_vmem [thread:$0]  %s7407_s6, 4096, %s5695_s17, [#allocation10], %s5601_s21, %s5601_s21, %s5602_s22  }
  0x43   :  { %5593 = dma.done.wait [#allocation5], 4096  }
  0x44   :  { %5594 = vsyncadd [#allocation5], 4294963200 }
  0x45   :  { %5595 = dma.done.wait [#allocation7], 8192  }
  0x46   :  { %5596 = vsyncadd [#allocation7], 4294959104 }
  0x47   :  { %5597 = dma.done.wait [#allocation10], 4096  }
  0x48   :  { %5598 = vsyncadd [#allocation10], 4294963200  ;;  %v7415_v0 = vmov 0   ;;  %v5065_v1 = vld [vmem:[#allocation4 + $0x4] ss:$16 sps:$4 sm:$0xff]   ;;  %v147_v34 = vld [vmem:[%s7401_s0 + $0x8] sm:$0xff] }
  0x49   :  { %404 = vmatprep.mubr.bf16.mxu0 %v7415_v0  ;;  %477 = vmatprep.mubr.bf16.mxu1 %v7415_v0  ;;  %v5067_v2 = vld [vmem:[#allocation4 + $0xc] ss:$16 sps:$4 sm:$0xff]   ;;  %v5069_v3 = vld [vmem:[#allocation4] ss:$16 sps:$4 sm:$0xff]   ;;  %v5070_v4 = vld [vmem:[#allocation4 + $0x8] ss:$16 sps:$4 sm:$0xff]  }
  0x4a   :  { %372 = vmatprep.subr.bf16.mxu0 %v5065_v1  ;;  %445 = vmatprep.subr.bf16.mxu1 %v5067_v2  ;;  %v5071_v5 = vld [vmem:[#allocation4 + $0x24] ss:$16 sps:$4 sm:$0xff]   ;;  %v5073_v6 = vld [vmem:[#allocation4 + $0x2c] ss:$16 sps:$4 sm:$0xff]   ;;  %v5075_v7 = vld [vmem:[#allocation4 + $0x20] ss:$16 sps:$4 sm:$0xff]  }
  0x4b   :  { %373 = vmatpush1.bf16.msra.mxu0 %v5069_v3  ;;  %446 = vmatpush1.bf16.msra.mxu1 %v5070_v4  ;;  %v5076_v8 = vld [vmem:[#allocation4 + $0x28] ss:$16 sps:$4 sm:$0xff]   ;;  %v5077_v9 = vld [vmem:[#allocation4 + $0x44] ss:$16 sps:$4 sm:$0xff]   ;;  %v5079_v10 = vld [vmem:[#allocation4 + $0x4c] ss:$16 sps:$4 sm:$0xff]  }
  0x4c   :  { %374 = vmatprep.subr.bf16.mxu0 %v5071_v5  ;;  %447 = vmatprep.subr.bf16.mxu1 %v5073_v6  ;;  %v5081_v11 = vld [vmem:[#allocation4 + $0x40] ss:$16 sps:$4 sm:$0xff]   ;;  %v5082_v12 = vld [vmem:[#allocation4 + $0x48] ss:$16 sps:$4 sm:$0xff]   ;;  %v5083_v13 = vld [vmem:[#allocation4 + $0x64] ss:$16 sps:$4 sm:$0xff]  }
  0x4d   :  { %v5085_v14 = vld [vmem:[#allocation4 + $0x6c] ss:$16 sps:$4 sm:$0xff]   ;;  %v5087_v15 = vld [vmem:[#allocation4 + $0x60] ss:$16 sps:$4 sm:$0xff]   ;;  %v5088_v16 = vld [vmem:[#allocation4 + $0x68] ss:$16 sps:$4 sm:$0xff]  }
  0x4e   :  { %v5089_v17 = vld [vmem:[#allocation4 + $0x84] ss:$16 sps:$4 sm:$0xff]   ;;  %v5091_v18 = vld [vmem:[#allocation4 + $0x8c] ss:$16 sps:$4 sm:$0xff]   ;;  %v5093_v19 = vld [vmem:[#allocation4 + $0x80] ss:$16 sps:$4 sm:$0xff]  }
  0x4f   :  { %375 = vmatpush1.bf16.msra.mxu0 %v5075_v7  ;;  %448 = vmatpush1.bf16.msra.mxu1 %v5076_v8  ;;  %v5094_v20 = vld [vmem:[#allocation4 + $0x88] ss:$16 sps:$4 sm:$0xff]   ;;  %v5095_v21 = vld [vmem:[#allocation4 + $0xa4] ss:$16 sps:$4 sm:$0xff]   ;;  %v5097_v22 = vld [vmem:[#allocation4 + $0xac] ss:$16 sps:$4 sm:$0xff]  }
  0x50   :  { %376 = vmatprep.subr.bf16.mxu0 %v5077_v9  ;;  %449 = vmatprep.subr.bf16.mxu1 %v5079_v10  ;;  %v5099_v23 = vld [vmem:[#allocation4 + $0xa0] ss:$16 sps:$4 sm:$0xff]   ;;  %v5100_v24 = vld [vmem:[#allocation4 + $0xa8] ss:$16 sps:$4 sm:$0xff]   ;;  %v5101_v25 = vld [vmem:[#allocation4 + $0xc4] ss:$16 sps:$4 sm:$0xff]  }
  0x51   :  { %v5103_v26 = vld [vmem:[#allocation4 + $0xcc] ss:$16 sps:$4 sm:$0xff]   ;;  %v5105_v27 = vld [vmem:[#allocation4 + $0xc0] ss:$16 sps:$4 sm:$0xff]   ;;  %v5106_v28 = vld [vmem:[#allocation4 + $0xc8] ss:$16 sps:$4 sm:$0xff]  }
  0x52   :  { %v5107_v29 = vld [vmem:[#allocation4 + $0xe4] ss:$16 sps:$4 sm:$0xff]   ;;  %v5109_v30 = vld [vmem:[#allocation4 + $0xec] ss:$16 sps:$4 sm:$0xff]   ;;  %v5111_v31 = vld [vmem:[#allocation4 + $0xe0] ss:$16 sps:$4 sm:$0xff]  }
  0x53   :  { %377 = vmatpush1.bf16.msra.mxu0 %v5081_v11  ;;  %450 = vmatpush1.bf16.msra.mxu1 %v5082_v12  ;;  %v5112_v32 = vld [vmem:[#allocation4 + $0xe8] ss:$16 sps:$4 sm:$0xff]   ;;  %v146_v33 = vld [vmem:[%s7401_s0] sm:$0xff]  ;;  %v5742_v36 = vld [vmem:[#allocation6 + $0xc] ss:$16 sps:$4 sm:$0xff]   ;;  %vm3031_vm4 = vcmask 1048064  }
  0x54   :  { %378 = vmatprep.subr.bf16.mxu0 %v5083_v13  ;;  %451 = vmatprep.subr.bf16.mxu1 %v5085_v14  ;;  %v5740_v35 = vld [vmem:[#allocation6 + $0x4] ss:$16 sps:$4 sm:$0xff]   ;;  %7513 = vst [vmem:[#allocation15_spill] sm:$0xff] %v5742_v36  ;;  %v154_v37 = vpack.c.bf16 %v147_v34, %v146_v33  ;;  %v5744_v38 = vld [vmem:[#allocation6] ss:$16 sps:$4 sm:$0xff]   ;;  %v149_v45 = vld [vmem:[%s7401_s0 + $0x18] sm:$0xff]  ;;  %v88_v14 = vlaneseq }
  0x55   :  { %7512 = vst [vmem:[#allocation14_spill] sm:$0xff] %v5740_v35  ;;  %v5746_v39 = vld [vmem:[#allocation6 + $0x8] ss:$16 sps:$4 sm:$0xff]   ;;  %v5750_v40 = vld [vmem:[#allocation6 + $0x24] ss:$16 sps:$4 sm:$0xff]   ;;  %vm5607_vm5 = vmmov 0  }
  0x56   :  { %v5752_v41 = vld [vmem:[#allocation6 + $0x2c] ss:$16 sps:$4 sm:$0xff]   ;;  %v5754_v42 = vld [vmem:[#allocation6 + $0x20] ss:$16 sps:$4 sm:$0xff]   ;;  %v5756_v43 = vld [vmem:[#allocation6 + $0x28] ss:$16 sps:$4 sm:$0xff]  }
  0x57   :  { %379 = vmatpush1.bf16.msra.mxu0 %v5087_v15  ;;  %452 = vmatpush1.bf16.msra.mxu1 %v5088_v16  ;;  %v148_v44 = vld [vmem:[%s7401_s0 + $0x10] sm:$0xff]  ;;  %v5770_v47 = vld [vmem:[#allocation6 + $0x4c] ss:$16 sps:$4 sm:$0xff]   ;;  %v5776_v50 = vld [vmem:[#allocation6 + $0x48] ss:$16 sps:$4 sm:$0xff]   ;;  %v5900_v15 = vshrl.u32 %v88_v14, 7 }
  0x58   :  { %380 = vmatprep.subr.bf16.mxu0 %v5089_v17  ;;  %453 = vmatprep.subr.bf16.mxu1 %v5091_v18  ;;  %v5768_v46 = vld [vmem:[#allocation6 + $0x44] ss:$16 sps:$4 sm:$0xff]   ;;  %v155_v48 = vpack.c.bf16 %v149_v45, %v148_v44  ;;  %v5774_v49 = vld [vmem:[#allocation6 + $0x40] ss:$16 sps:$4 sm:$0xff]   ;;  %v5784_v52 = vld [vmem:[#allocation6 + $0x6c] ss:$16 sps:$4 sm:$0xff]  }
  0x59   :  { %v5780_v51 = vld [vmem:[#allocation6 + $0x64] ss:$16 sps:$4 sm:$0xff]   ;;  %v5786_v53 = vld [vmem:[#allocation6 + $0x60] ss:$16 sps:$4 sm:$0xff]   ;;  %v5788_v54 = vld [vmem:[#allocation6 + $0x68] ss:$16 sps:$4 sm:$0xff]  }
  0x5a   :  { %v150_v55 = vld [vmem:[%s7401_s0 + $0x20] sm:$0xff]  ;;  %v151_v56 = vld [vmem:[%s7401_s0 + $0x28] sm:$0xff]  ;;  %v152_v3 = vld [vmem:[%s7401_s0 + $0x30] sm:$0xff]  ;;  %7518 = vst [vmem:[#allocation20_spill] sm:$0xff] %v5900_v15  ;;  %v7413_v16 = vsub.s32 2, %v5900_v15  ;;  %v7411_v17 = vsub.s32 3, %v5900_v15 }
  0x5b   :  { %381 = vmatpush1.bf16.msra.mxu0 %v5093_v19  ;;  %454 = vmatpush1.bf16.msra.mxu1 %v5094_v20  ;;  %v5800_v57 = vld [vmem:[#allocation6 + $0x84] ss:$16 sps:$4 sm:$0xff]   ;;  %v5802_v58 = vld [vmem:[#allocation6 + $0x8c] ss:$16 sps:$4 sm:$0xff]   ;;  %v5806_v59 = vld [vmem:[#allocation6 + $0x80] ss:$16 sps:$4 sm:$0xff]   ;;  %v156_v61 = vpack.c.bf16 %v151_v56, %v150_v55 }
  0x5c   :  { %382 = vmatprep.subr.bf16.mxu0 %v5095_v21  ;;  %455 = vmatprep.subr.bf16.mxu1 %v5097_v22  ;;  %v5808_v60 = vld [vmem:[#allocation6 + $0x88] ss:$16 sps:$4 sm:$0xff]   ;;  %v5810_v62 = vld [vmem:[#allocation6 + $0xa4] ss:$16 sps:$4 sm:$0xff]   ;;  %v5812_v63 = vld [vmem:[#allocation6 + $0xac] ss:$16 sps:$4 sm:$0xff]  }
  0x5d   :  { %v5818_v1 = vld [vmem:[#allocation6 + $0xa0] ss:$16 sps:$4 sm:$0xff]   ;;  %v5820_v2 = vld [vmem:[#allocation6 + $0xa8] ss:$16 sps:$4 sm:$0xff]   ;;  %v5828_v5 = vld [vmem:[#allocation6 + $0xc4] ss:$16 sps:$4 sm:$0xff]  }
  0x5e   :  { %v153_v4 = vld [vmem:[%s7401_s0 + $0x38] sm:$0xff]  ;;  %v5838_v7 = vld [vmem:[#allocation6 + $0xc0] ss:$16 sps:$4 sm:$0xff]   ;;  %v5842_v10 = vld [vmem:[#allocation6 + $0xe4] ss:$16 sps:$4 sm:$0xff]   ;;  %v7414_v18 = vsub.s32 0, %v5900_v15 }
  0x5f   :  { %383 = vmatpush1.bf16.msra.mxu0 %v5099_v23  ;;  %456 = vmatpush1.bf16.msra.mxu1 %v5100_v24  ;;  %v5830_v6 = vld [vmem:[#allocation6 + $0xcc] ss:$16 sps:$4 sm:$0xff]   ;;  %v5840_v8 = vld [vmem:[#allocation6 + $0xc8] ss:$16 sps:$4 sm:$0xff]   ;;  %v157_v9 = vpack.c.bf16 %v153_v4, %v152_v3  ;;  %7514 = vst [vmem:[#allocation16_spill] sm:$0xff] %v5842_v10  ;;  %v7412_v20 = vsub.s32 1, %v5900_v15 }
  0x60   :  { %384 = vmatprep.subr.bf16.mxu0 %v5101_v25  ;;  %457 = vmatprep.subr.bf16.mxu1 %v5103_v26  ;;  %v5844_v11 = vld [vmem:[#allocation6 + $0xec] ss:$16 sps:$4 sm:$0xff]   ;;  %v5850_v12 = vld [vmem:[#allocation6 + $0xe0] ss:$16 sps:$4 sm:$0xff]   ;;  %v5852_v13 = vld [vmem:[#allocation6 + $0xe8] ss:$16 sps:$4 sm:$0xff]  }
  0x61   :  { %7515 = vst [vmem:[#allocation17_spill] sm:$0xff] %v5844_v11  ;;  %7516 = vst [vmem:[#allocation18_spill] sm:$0xff] %v5850_v12  ;;  %v190_v19 = vld [vmem:[%s7403_s2] sm:$0xf]  ;;  %v5942_v44 = vand.u32 127, %v88_v14 }
  0x62   :  { %7517 = vst [vmem:[#allocation19_spill] sm:$0xff] %v5852_v13  ;;  %v5911_v21 = vrot.slane %v190_v19, %v7413_v16  ;;  %v5919_v24 = vrot.slane %v190_v19, %v7411_v17  ;;  %v5923_v25 = vrot.slane %v190_v19, %v7414_v18 }
  0x63   :  { %385 = vmatpush1.bf16.msra.mxu0 %v5105_v27  ;;  %458 = vmatpush1.bf16.msra.mxu1 %v5106_v28  ;;  %v5931_v28 = vrot.slane %v190_v19, %v7412_v20  ;;  %7521 = vst [vmem:[#allocation23_spill] sm:$0xff] %v5942_v44  ;;  %v92_v3 = vadd.s32 384, %v5942_v44  ;;  %vm141_vm0 = vcmp.lt.s32.totalorder %v5942_v44, 64 }
  0x64   :  { %386 = vmatprep.subr.bf16.mxu0 %v5107_v29  ;;  %459 = vmatprep.subr.bf16.mxu1 %v5109_v30 }
  0x65   :  { %v118_v15 = vand.u32 127, %v92_v3 }
  0x67   :  { %387 = vmatpush1.bf16.msra.mxu0 %v5111_v31  ;;  %460 = vmatpush1.bf16.msra.mxu1 %v5112_v32  ;;  %vm5979_vm3 = vcmp.lt.s32.totalorder %v118_v15, 64 }
  0x68   :  { %754 = vmatprep.subr.bf16.mxu0 %v5740_v35  ;;  %795 = vmatprep.subr.bf16.mxu1 %v5742_v36 }
  0x6a   :  { %405 = vmatmul.mubr.bf16.vlgmr.msra.gmra.mrb[0].mxu0 %v154_v37  ;;  %478 = vmatmul.mubr.bf16.vlgmr.msra.gmra.mrb[0].mxu1 %v154_v37 }
  0x6b   :  { %755 = vmatpush1.bf16.msra.mxu0 %v5744_v38  ;;  %796 = vmatpush1.bf16.msra.mxu1 %v5746_v39 }
  0x6c   :  { %756 = vmatprep.subr.bf16.mxu0 %v5750_v40  ;;  %797 = vmatprep.subr.bf16.mxu1 %v5752_v41 }
  0x6d   :  { %414 = vmatprep.mubr.bf16.mxu0 %v7415_v0  ;;  %487 = vmatprep.mubr.bf16.mxu1 %v7415_v0 }
  0x6f   :  { %757 = vmatpush1.bf16.msra.mxu0 %v5754_v42  ;;  %798 = vmatpush1.bf16.msra.mxu1 %v5756_v43 }
  0x70   :  { %758 = vmatprep.subr.bf16.mxu0 %v5768_v46  ;;  %799 = vmatprep.subr.bf16.mxu1 %v5770_v47 }
  0x72   :  { %415 = vmatmul.mubr.bf16.gmra.mrb[4].mxu0 %v155_v48  ;;  %488 = vmatmul.mubr.bf16.gmra.mrb[4].mxu1 %v155_v48  ;;  %v91_v48 = vadd.s32 256, %v5942_v44 }
  0x73   :  { %759 = vmatpush1.bf16.msra.mxu0 %v5774_v49  ;;  %800 = vmatpush1.bf16.msra.mxu1 %v5776_v50 }
  0x74   :  { %760 = vmatprep.subr.bf16.mxu0 %v5780_v51  ;;  %801 = vmatprep.subr.bf16.mxu1 %v5784_v52  ;;  %v111_v18 = vand.u32 127, %v91_v48 }
  0x75   :  { %424 = vmatprep.mubr.bf16.mxu0 %v7415_v0  ;;  %497 = vmatprep.mubr.bf16.mxu1 %v7415_v0 }
  0x76   :  { %vm5971_vm1 = vcmp.lt.s32.totalorder %v111_v18, 64 }
  0x77   :  { %761 = vmatpush1.bf16.msra.mxu0 %v5786_v53  ;;  %802 = vmatpush1.bf16.msra.mxu1 %v5788_v54 }
  0x78   :  { %762 = vmatprep.subr.bf16.mxu0 %v5800_v57  ;;  %803 = vmatprep.subr.bf16.mxu1 %v5802_v58 }
  0x7a   :  { %425 = vmatmul.mubr.bf16.gmra.mrb[8].mxu0 %v156_v61  ;;  %498 = vmatmul.mubr.bf16.gmra.mrb[8].mxu1 %v156_v61  ;;  %v90_v61 = vadd.s32 128, %v5942_v44 }
  0x7b   :  { %763 = vmatpush1.bf16.msra.mxu0 %v5806_v59  ;;  %804 = vmatpush1.bf16.msra.mxu1 %v5808_v60 }
  0x7c   :  { %764 = vmatprep.subr.bf16.mxu0 %v5810_v62  ;;  %805 = vmatprep.subr.bf16.mxu1 %v5812_v63 }
  0x7d   :  { %434 = vmatprep.mubr.bf16.mxu0 %v7415_v0  ;;  %507 = vmatprep.mubr.bf16.mxu1 %v7415_v0 }
  0x7f   :  { %765 = vmatpush1.bf16.msra.mxu0 %v5818_v1  ;;  %806 = vmatpush1.bf16.msra.mxu1 %v5820_v2 }
  0x80   :  { %766 = vmatprep.subr.bf16.mxu0 %v5828_v5  ;;  %807 = vmatprep.subr.bf16.mxu1 %v5830_v6 }
  0x82   :  { %435 = vmatmul.mubr.bf16.gmra.mrb[12].mxu0 %v157_v9  ;;  %508 = vmatmul.mubr.bf16.gmra.mrb[12].mxu1 %v157_v9 }
  0x83   :  { %767 = vmatpush1.bf16.msra.mxu0 %v5838_v7  ;;  %808 = vmatpush1.bf16.msra.mxu1 %v5840_v8 }
  0x84   :  { %768 = vmatprep.subr.bf16.mxu0 %v5842_v10  ;;  %809 = vmatprep.subr.bf16.mxu1 %v5844_v11 }
  0x85   :  { %786 = vmatprep.mubr.bf16.mxu0 %v7415_v0  ;;  %827 = vmatprep.mubr.bf16.mxu1 %v7415_v0 }
  0x87   :  { %769 = vmatpush1.bf16.msra.mxu0 %v5850_v12  ;;  %810 = vmatpush1.bf16.msra.mxu1 %v5852_v13 }
  0x88   :  { %1064 = vmatprep.subr.bf16.mxu0 %v5740_v35  ;;  %1105 = vmatprep.subr.bf16.mxu1 %v5742_v36 }
  0x8a   :  { %787 = vmatmul.mubr.bf16.vlgmr.msra.gmra.mrb[16].mxu0 %v7415_v0  ;;  %828 = vmatmul.mubr.bf16.vlgmr.msra.gmra.mrb[16].mxu1 %v7415_v0 }
  0x8b   :  { %1065 = vmatpush1.bf16.msra.mxu0 %v5744_v38  ;;  %1106 = vmatpush1.bf16.msra.mxu1 %v5746_v39 }
  0x8c   :  { %1066 = vmatprep.subr.bf16.mxu0 %v5750_v40  ;;  %1107 = vmatprep.subr.bf16.mxu1 %v5752_v41 }
  0x8d   :  { %1096 = vmatprep.mubr.bf16.mxu0 %v7415_v0  ;;  %1137 = vmatprep.mubr.bf16.mxu1 %v7415_v0 }
  0x8f   :  { %1067 = vmatpush1.bf16.msra.mxu0 %v5754_v42  ;;  %1108 = vmatpush1.bf16.msra.mxu1 %v5756_v43 }
  0x90   :  { %1068 = vmatprep.subr.bf16.mxu0 %v5768_v46  ;;  %1109 = vmatprep.subr.bf16.mxu1 %v5770_v47 }
  0x93   :  { %1069 = vmatpush1.bf16.msra.mxu0 %v5774_v49  ;;  %1110 = vmatpush1.bf16.msra.mxu1 %v5776_v50 }
  0x94   :  { %1070 = vmatprep.subr.bf16.mxu0 %v5780_v51  ;;  %1111 = vmatprep.subr.bf16.mxu1 %v5784_v52 }
  0x97   :  { %1071 = vmatpush1.bf16.msra.mxu0 %v5786_v53  ;;  %1112 = vmatpush1.bf16.msra.mxu1 %v5788_v54 }
  0x98   :  { %1072 = vmatprep.subr.bf16.mxu0 %v5800_v57  ;;  %1113 = vmatprep.subr.bf16.mxu1 %v5802_v58 }
  0x9b   :  { %1073 = vmatpush1.bf16.msra.mxu0 %v5806_v59  ;;  %1114 = vmatpush1.bf16.msra.mxu1 %v5808_v60 }
  0x9c   :  { %1074 = vmatprep.subr.bf16.mxu0 %v5810_v62  ;;  %1115 = vmatprep.subr.bf16.mxu1 %v5812_v63 }
  0x9f   :  { %1075 = vmatpush1.bf16.msra.mxu0 %v5818_v1  ;;  %1116 = vmatpush1.bf16.msra.mxu1 %v5820_v2 }
  0xa0   :  { %1076 = vmatprep.subr.bf16.mxu0 %v5828_v5  ;;  %1117 = vmatprep.subr.bf16.mxu1 %v5830_v6 }
  0xa3   :  { %1077 = vmatpush1.bf16.msra.mxu0 %v5838_v7  ;;  %1118 = vmatpush1.bf16.msra.mxu1 %v5840_v8 }
  0xa4   :  { %1078 = vmatprep.subr.bf16.mxu0 %v5842_v10  ;;  %1119 = vmatprep.subr.bf16.mxu1 %v5844_v11 }
  0xa7   :  { %1079 = vmatpush1.bf16.msra.mxu0 %v5850_v12  ;;  %1120 = vmatpush1.bf16.msra.mxu1 %v5852_v13 }
  0xa8   :  { %1374 = vmatprep.subr.bf16.mxu0 %v5740_v35  ;;  %1415 = vmatprep.subr.bf16.mxu1 %v5742_v36 }
 0x13d   :  { %v5913_v22 = vpop.f32.mrb[0].mxu0  ;;  %v5915_v23 = vpop.f32.mrb[0].mxu1 }
 0x13e   :  { %v5925_v26 = vpop.f32.mrb[1].mxu0  ;;  %v5927_v27 = vpop.f32.mrb[1].mxu1 }
 0x13f   :  { %v410_v29 = vpop.f32.mrb[2].mxu0  ;;  %v483_v30 = vpop.f32.mrb[2].mxu1 }
 0x140   :  { %v5934_v31 = vadd.f32 %v410_v29, %v5923_v25  ;;  %v412_v32 = vpop.f32.mrb[3].mxu0  ;;  %v5937_v33 = vadd.f32 %v483_v30, %v5911_v21  ;;  %v485_v34 = vpop.f32.mrb[3].mxu1 }
 0x141   :  { %v5940_v37 = vadd.f32 %v412_v32, %v5931_v28  ;;  %v5945_v45 = vadd.f32 %v485_v34, %v5919_v24 }
 0x142   :  { %7519 = vst [vmem:[#allocation21_spill] sm:$0xff] %v5937_v33 }
 0x143   :  { %7520 = vst [vmem:[#allocation22_spill] sm:$0xff] %v5940_v37  ;;  %7522 = vst [vmem:[#allocation24_spill] sm:$0xff] %v5945_v45 }
 0x145   :  { %v416_v55 = vpop.f32.mrb[4].mxu0  ;;  %v489_v56 = vpop.f32.mrb[4].mxu1 }
 0x146   :  { %v417_v4 = vadd.f32 %v416_v55, %v5923_v25  ;;  %v418_v9 = vpop.f32.mrb[5].mxu0  ;;  %v5952_v19 = vadd.f32 %v489_v56, %v5911_v21  ;;  %v491_v29 = vpop.f32.mrb[5].mxu1 }
 0x147   :  { %v5955_v14 = vadd.f32 %v418_v9, %v5931_v28  ;;  %v420_v30 = vpop.f32.mrb[6].mxu0  ;;  %v5958_v32 = vadd.f32 %v491_v29, %v5919_v24  ;;  %v493_v34 = vpop.f32.mrb[6].mxu1  ;;  %v104_v9 = vand.u32 127, %v90_v61 }
 0x148   :  { %7523 = vst [vmem:[#allocation25_spill] sm:$0xff] %v5952_v19  ;;  %v421_v17 = vadd.f32 %v420_v30, %v5923_v25  ;;  %v422_v20 = vpop.f32.mrb[7].mxu0  ;;  %v5962_v16 = vadd.f32 %v493_v34, %v5911_v21  ;;  %v495_v55 = vpop.f32.mrb[7].mxu1 }
 0x149   :  { %7524 = vst [vmem:[#allocation26_spill] sm:$0xff] %v5955_v14  ;;  %7525 = vst [vmem:[#allocation27_spill] sm:$0xff] %v5958_v32  ;;  %v5965_v56 = vadd.f32 %v422_v20, %v5931_v28  ;;  %v5968_v0 = vadd.f32 %v495_v55, %v5919_v24  ;;  %vm5975_vm2 = vcmp.lt.s32.totalorder %v104_v9, 64 }
 0x14a   :  { %7526 = vst [vmem:[#allocation28_spill] sm:$0xff] %v5962_v16 }
 0x14b   :  { %7527 = vst [vmem:[#allocation29_spill] sm:$0xff] %v5965_v56  ;;  %7528 = vst [vmem:[#allocation30_spill] sm:$0xff] %v5968_v0 }
 0x14d   :  { %v426_v30 = vpop.f32.mrb[8].mxu0  ;;  %v499_v36 = vpop.f32.mrb[8].mxu1 }
 0x14e   :  { %v427_v48 = vadd.f32 %v426_v30, %v5923_v25  ;;  %v5985_v61 = vadd.f32 %v499_v36, %v5911_v21  ;;  %v428_v3 = vpop.f32.mrb[9].mxu0  ;;  %v501_v18 = vpop.f32.mrb[9].mxu1 }
 0x14f   :  { %v5988_v55 = vadd.f32 %v428_v3, %v5931_v28  ;;  %v5991_v35 = vadd.f32 %v501_v18, %v5919_v24  ;;  %v430_v9 = vpop.f32.mrb[10].mxu0  ;;  %v503_v13 = vpop.f32.mrb[10].mxu1 }
 0x150   :  { %7535 = vst [vmem:[#allocation31_spill] sm:$0xff] %v5985_v61  ;;  %v431_v15 = vadd.f32 %v430_v9, %v5923_v25  ;;  %v5995_v12 = vadd.f32 %v503_v13, %v5911_v21  ;;  %v432_v11 = vpop.f32.mrb[11].mxu0  ;;  %v505_v30 = vpop.f32.mrb[11].mxu1  ;;  %v5999_v36 = vsel %vm141_vm0, %v421_v17, %v427_v48 }
 0x151   :  { %7536 = vst [vmem:[#allocation32_spill] sm:$0xff] %v5988_v55  ;;  %7537 = vst [vmem:[#allocation33_spill] sm:$0xff] %v5991_v35  ;;  %v6006_v18 = vadd.f32 %v432_v11, %v5931_v28  ;;  %v6009_v10 = vadd.f32 %v505_v30, %v5919_v24  ;;  %v6029_v30 = vsel %vm141_vm0, %v427_v48, %v421_v17 }
 0x152   :  { %7538 = vst [vmem:[#allocation34_spill] sm:$0xff] %v5995_v12  ;;  %7539 = vst [vmem:[#allocation35_spill] sm:$0xff] %v5999_v36  ;;  %v6021_v36 = vsel %vm141_vm0, %v417_v4, %v431_v15  ;;  %v6053_v13 = vsel %vm141_vm0, %v431_v15, %v417_v4  ;;  %v407_v4 = vadd.f32 %v5913_v22, %v5923_v25 }
 0x153   :  { %7540 = vst [vmem:[#allocation36_spill] sm:$0xff] %v6006_v18  ;;  %7541 = vst [vmem:[#allocation37_spill] sm:$0xff] %v6009_v10  ;;  %v6071_v15 = vadd.f32 %v5915_v23, %v5911_v21  ;;  %v6079_v35 = vadd.f32 %v5925_v26, %v5931_v28  ;;  %v6083_v17 = vadd.f32 %v5927_v27, %v5919_v24 }
 0x154   :  { %7542 = vst [vmem:[#allocation38_spill] sm:$0xff] %v6029_v30  ;;  %7543 = vst [vmem:[#allocation39_spill] sm:$0xff] %v6053_v13 }
 0x155   :  { %v436_v48 = vpop.f32.mrb[12].mxu0  ;;  %v509_v11 = vpop.f32.mrb[12].mxu1  ;;  %7544 = vst [vmem:[#allocation40_spill] sm:$0xff] %v6071_v15  ;;  %7546 = vst [vmem:[#allocation42_spill] sm:$0xff] %v6079_v35 }
 0x156   :  { %v437_v9 = vadd.f32 %v436_v48, %v5923_v25  ;;  %v6075_v13 = vadd.f32 %v509_v11, %v5911_v21  ;;  %v438_v3 = vpop.f32.mrb[13].mxu0  ;;  %v511_v30 = vpop.f32.mrb[13].mxu1  ;;  %7547 = vst [vmem:[#allocation43_spill] sm:$0xff] %v6083_v17 }
 0x157   :  { %v6086_v22 = vadd.f32 %v438_v3, %v5931_v28  ;;  %v6089_v23 = vadd.f32 %v511_v30, %v5919_v24  ;;  %v440_v48 = vpop.f32.mrb[14].mxu0  ;;  %v513_v0 = vpop.f32.mrb[14].mxu1 }
 0x158   :  { %7545 = vst [vmem:[#allocation41_spill] sm:$0xff] %v6075_v13  ;;  %v441_v11 = vadd.f32 %v440_v48, %v5923_v25  ;;  %v6093_v55 = vadd.f32 %v513_v0, %v5911_v21  ;;  %v442_v56 = vpop.f32.mrb[15].mxu0  ;;  %v515_v26 = vpop.f32.mrb[15].mxu1  ;;  %v6098_v27 = vsel %vm141_vm0, %v5934_v31, %v437_v9 }
 0x159   :  { %7548 = vst [vmem:[#allocation44_spill] sm:$0xff] %v6086_v22  ;;  %7549 = vst [vmem:[#allocation45_spill] sm:$0xff] %v6089_v23  ;;  %v6105_v30 = vadd.f32 %v442_v56, %v5931_v28  ;;  %v6108_v25 = vadd.f32 %v515_v26, %v5919_v24  ;;  %v6127_v24 = vsel %vm141_vm0, %v437_v9, %v5934_v31 }
 0x15a   :  { %7550 = vst [vmem:[#allocation46_spill] sm:$0xff] %v6093_v55  ;;  %v558_v48 = vsel %vm141_vm0, %v407_v4, %v441_v11  ;;  %v560_v28 = vsel %vm5971_vm1, %v6071_v15, %v6093_v55  ;;  %7553 = vst [vmem:[#allocation49_spill] sm:$0xff] %v6127_v24  ;;  %v6151_v56 = vsel %vm141_vm0, %v441_v11, %v407_v4 }
 0x15b   :  { %7551 = vst [vmem:[#allocation47_spill] sm:$0xff] %v6105_v30  ;;  %7552 = vst [vmem:[#allocation48_spill] sm:$0xff] %v6108_v25  ;;  %v559_v26 = vsel %vm5975_vm2, %v6079_v35, %v6105_v30  ;;  %v561_v21 = vsel %vm5979_vm3, %v6083_v17, %v6108_v25 }
 0x15c   :  { %7554 = vst [vmem:[#allocation50_spill] sm:$0xff] %v6151_v56 }
 0x15d   :  { %v788_v9 = vpop.f32.mrb[16].mxu0  ;;  %v829_v24 = vpop.f32.mrb[16].mxu1 }
 0x15e   :  { %v836_v44 = vadd.f32 %v788_v9, %v558_v48  ;;  %v838_v4 = vadd.f32 %v829_v24, %v560_v28  ;;  %v790_v11 = vpop.f32.mrb[17].mxu0  ;;  %v831_v56 = vpop.f32.mrb[17].mxu1 }
 0x15f   :  { %v837_v61 = vadd.f32 %v790_v11, %v559_v26  ;;  %v839_v16 = vadd.f32 %v831_v56, %v561_v21  ;;  %v792_v10 = vpop.f32.mrb[18].mxu0  ;;  %v833_v0 = vpop.f32.mrb[18].mxu1  ;;  %v7561_v56 = vld [vmem:[#allocation15_spill] sm:$0xff]  ;;  %v7562_v11 = vsel %vm5971_vm1, %v5937_v33, %v6075_v13 }
 0x160   :  { %v840_v15 = vmul.f32 0.5, %v836_v44  ;;  %v793_v55 = vpop.f32.mrb[19].mxu0  ;;  %v834_v32 = vpop.f32.mrb[19].mxu1  ;;  %v842_v3 = vmul.f32 0.5, %v838_v4  ;;  %v7560_v0 = vld [vmem:[#allocation14_spill] sm:$0xff] }
 0x161   :  { %v841_v18 = vmul.f32 0.5, %v837_v61 }
 0x162   :  { %5313 = vtanh.f32 %v840_v15  ;;  %v7557_v15 = vld [vmem:[#allocation17_spill] sm:$0xff] }
 0x163   :  { %5315 = vtanh.f32 %v841_v18 }
 0x164   :  { %5317 = vtanh.f32 %v839_v16 }
 0x165   :  { %5319 = vtanh.f32 %v842_v3  ;;  %v7558_v3 = vld [vmem:[#allocation18_spill] sm:$0xff] }
 0x16c   :  { %v5314_v35 = vpop.eup %5313 }
 0x16d   :  { %v846_v31 = vmul.f32 0.5, %v5314_v35  ;;  %v5316_v17 = vpop.eup %5315  ;;  %v7555_v35 = vmov 0  }
 0x16e   :  { %v847_v48 = vmul.f32 0.5, %v5316_v17  ;;  %v5318_v28 = vpop.eup %5317  ;;  %v7556_v17 = vld [vmem:[#allocation16_spill] sm:$0xff] }
 0x16f   :  { %v849_v25 = vadd.f32 0.5, %v846_v31  ;;  %v5320_v44 = vpop.eup %5319 }
 0x170   :  { %v850_v24 = vadd.f32 0.5, %v847_v48  ;;  %v848_v32 = vmul.f32 0.5, %v5320_v44  ;;  %v7564_v44 = vsel %vm5979_vm3, %v5945_v45, %v6089_v23 }
 0x171   :  { %v854_v26 = vmul.f32 %v5318_v28, %v849_v25  ;;  %v7559_v25 = vld [vmem:[#allocation19_spill] sm:$0xff] }
 0x172   :  { %v853_v21 = vmul.f32 0.0, %v850_v24  ;;  %v851_v61 = vadd.f32 0.5, %v848_v32 }
 0x174   :  { %v6165_v10 = vadd.f32 %v854_v26, %v853_v21  ;;  %v7563_v26 = vsel %vm5975_vm2, %v5940_v37, %v6086_v22 }
 0x176   :  { %5321 = vtanh.f32 %v6165_v10 }
 0x180   :  { %v5322_v55 = vpop.eup %5321 }
 0x181   :  { %v857_v16 = vmul.f32 %v5322_v55, %v851_v61 }
 0x183   :  { %858 = vst [vmem:[#allocation3] sm:$0xff] %v857_v16  ;;  %v871_v18 = vpack.c.bf16 %v857_v16, %v857_v16 }
 0x185   :  { %1097 = vmatmul.mubr.bf16.vlgmr.msra.gmra.mrb[20].mxu0 %v871_v18  ;;  %1138 = vmatmul.mubr.bf16.vlgmr.msra.gmra.mrb[20].mxu1 %v871_v18 }
 0x186   :  { %1375 = vmatpush1.bf16.msra.mxu0 %v5744_v38  ;;  %1416 = vmatpush1.bf16.msra.mxu1 %v5746_v39 }
 0x187   :  { %1376 = vmatprep.subr.bf16.mxu0 %v5750_v40  ;;  %1417 = vmatprep.subr.bf16.mxu1 %v5752_v41 }
 0x188   :  { %1406 = vmatprep.mubr.bf16.mxu0 %v7555_v35  ;;  %1447 = vmatprep.mubr.bf16.mxu1 %v7555_v35 }
 0x18a   :  { %1377 = vmatpush1.bf16.msra.mxu0 %v5754_v42  ;;  %1418 = vmatpush1.bf16.msra.mxu1 %v5756_v43 }
 0x18b   :  { %1378 = vmatprep.subr.bf16.mxu0 %v5768_v46  ;;  %1419 = vmatprep.subr.bf16.mxu1 %v5770_v47 }
 0x18e   :  { %1379 = vmatpush1.bf16.msra.mxu0 %v5774_v49  ;;  %1420 = vmatpush1.bf16.msra.mxu1 %v5776_v50 }
 0x18f   :  { %1380 = vmatprep.subr.bf16.mxu0 %v5780_v51  ;;  %1421 = vmatprep.subr.bf16.mxu1 %v5784_v52 }
 0x192   :  { %1381 = vmatpush1.bf16.msra.mxu0 %v5786_v53  ;;  %1422 = vmatpush1.bf16.msra.mxu1 %v5788_v54 }
 0x193   :  { %1382 = vmatprep.subr.bf16.mxu0 %v5800_v57  ;;  %1423 = vmatprep.subr.bf16.mxu1 %v5802_v58 }
 0x196   :  { %1383 = vmatpush1.bf16.msra.mxu0 %v5806_v59  ;;  %1424 = vmatpush1.bf16.msra.mxu1 %v5808_v60 }
 0x197   :  { %1384 = vmatprep.subr.bf16.mxu0 %v5810_v62  ;;  %1425 = vmatprep.subr.bf16.mxu1 %v5812_v63 }
 0x19a   :  { %1385 = vmatpush1.bf16.msra.mxu0 %v5818_v1  ;;  %1426 = vmatpush1.bf16.msra.mxu1 %v5820_v2 }
 0x19b   :  { %1386 = vmatprep.subr.bf16.mxu0 %v5828_v5  ;;  %1427 = vmatprep.subr.bf16.mxu1 %v5830_v6 }
 0x19e   :  { %1387 = vmatpush1.bf16.msra.mxu0 %v5838_v7  ;;  %1428 = vmatpush1.bf16.msra.mxu1 %v5840_v8 }
 0x19f   :  { %1388 = vmatprep.subr.bf16.mxu0 %v7556_v17  ;;  %1429 = vmatprep.subr.bf16.mxu1 %v7557_v15 }
 0x1a2   :  { %1389 = vmatpush1.bf16.msra.mxu0 %v7558_v3  ;;  %1430 = vmatpush1.bf16.msra.mxu1 %v7559_v25 }
 0x1a3   :  { %1684 = vmatprep.subr.bf16.mxu0 %v7560_v0  ;;  %1725 = vmatprep.subr.bf16.mxu1 %v7561_v56 }
 0x258   :  { %v1098_v31 = vpop.f32.mrb[20].mxu0  ;;  %v1139_v9 = vpop.f32.mrb[20].mxu1 }
 0x259   :  { %v1146_v4 = vadd.f32 %v1098_v31, %v6098_v27  ;;  %v1148_v48 = vadd.f32 %v1139_v9, %v7562_v11  ;;  %v1100_v28 = vpop.f32.mrb[21].mxu0  ;;  %v1141_v24 = vpop.f32.mrb[21].mxu1 }
 0x25a   :  { %v1147_v21 = vadd.f32 %v1100_v28, %v7563_v26  ;;  %v1149_v27 = vadd.f32 %v1141_v24, %v7564_v44  ;;  %v1102_v32 = vpop.f32.mrb[22].mxu0  ;;  %v1143_v61 = vpop.f32.mrb[22].mxu1 }
 0x25b   :  { %v1150_v55 = vmul.f32 0.5, %v1146_v4  ;;  %v1103_v16 = vpop.f32.mrb[23].mxu0  ;;  %v1144_v18 = vpop.f32.mrb[23].mxu1  ;;  %v1152_v56 = vmul.f32 0.5, %v1148_v48 }
 0x25c   :  { %v1151_v0 = vmul.f32 0.5, %v1147_v21  ;;  %v6281_v18 = vld [vmem:[#allocation6 + $0x4] ss:$16 sps:$4 sm:$0xff]  }
 0x25d   :  { %5323 = vtanh.f32 %v1150_v55 }
 0x25e   :  { %5325 = vtanh.f32 %v1151_v0  ;;  %v6283_v0 = vld [vmem:[#allocation6 + $0xc] ss:$16 sps:$4 sm:$0xff]  }
 0x25f   :  { %5327 = vtanh.f32 %v1149_v27 }
 0x260   :  { %5329 = vtanh.f32 %v1152_v56  ;;  %v6285_v56 = vld [vmem:[#allocation6] ss:$16 sps:$4 sm:$0xff]  }
 0x267   :  { %v5324_v31 = vpop.eup %5323 }
 0x268   :  { %v1156_v9 = vmul.f32 0.5, %v5324_v31  ;;  %v5326_v11 = vpop.eup %5325  ;;  %v6287_v31 = vld [vmem:[#allocation6 + $0x8] ss:$16 sps:$4 sm:$0xff]  }
 0x269   :  { %v1157_v26 = vmul.f32 0.5, %v5326_v11  ;;  %v5328_v30 = vpop.eup %5327  ;;  %v6295_v11 = vld [vmem:[#allocation6 + $0x2c] ss:$16 sps:$4 sm:$0xff]  }
 0x26a   :  { %v1159_v28 = vadd.f32 0.5, %v1156_v9  ;;  %v5330_v4 = vpop.eup %5329  ;;  %v6293_v9 = vld [vmem:[#allocation6 + $0x24] ss:$16 sps:$4 sm:$0xff]  }
 0x26b   :  { %v1160_v37 = vadd.f32 0.5, %v1157_v26  ;;  %v1158_v21 = vmul.f32 0.5, %v5330_v4  ;;  %v6299_v26 = vld [vmem:[#allocation6 + $0x28] ss:$16 sps:$4 sm:$0xff]   ;;  %v6309_v4 = vld [vmem:[#allocation6 + $0x40] ss:$16 sps:$4 sm:$0xff]  }
 0x26c   :  { %v1164_v45 = vmul.f32 %v5328_v30, %v1159_v28  ;;  %v6297_v28 = vld [vmem:[#allocation6 + $0x20] ss:$16 sps:$4 sm:$0xff]  }
 0x26d   :  { %v1163_v24 = vmul.f32 %v1160_v37, %v6165_v10  ;;  %v1161_v32 = vadd.f32 0.5, %v1158_v21  ;;  %v6311_v21 = vld [vmem:[#allocation6 + $0x48] ss:$16 sps:$4 sm:$0xff]  }
 0x26f   :  { %v6219_v44 = vadd.f32 %v1164_v45, %v1163_v24  ;;  %v6305_v24 = vld [vmem:[#allocation6 + $0x44] ss:$16 sps:$4 sm:$0xff]  }
 0x271   :  { %5331 = vtanh.f32 %v6219_v44 }
 0x27b   :  { %v5332_v27 = vpop.eup %5331 }
 0x27c   :  { %v1167_v48 = vmul.f32 %v5332_v27, %v1161_v32  ;;  %v6317_v32 = vld [vmem:[#allocation6 + $0x64] ss:$16 sps:$4 sm:$0xff]   ;;  %v6319_v27 = vld [vmem:[#allocation6 + $0x6c] ss:$16 sps:$4 sm:$0xff]  }
 0x27e   :  { %1168 = vst [vmem:[#allocation3 + $0x8] sm:$0xff] %v1167_v48  ;;  %v1181_v61 = vpack.c.bf16 %v1167_v48, %v1167_v48  ;;  %v6321_v48 = vld [vmem:[#allocation6 + $0x60] ss:$16 sps:$4 sm:$0xff]  }
 0x280   :  { %1407 = vmatmul.mubr.bf16.vlgmr.msra.gmra.mrb[24].mxu0 %v1181_v61  ;;  %1448 = vmatmul.mubr.bf16.vlgmr.msra.gmra.mrb[24].mxu1 %v1181_v61  ;;  %v6323_v61 = vld [vmem:[#allocation6 + $0x68] ss:$16 sps:$4 sm:$0xff]  }
 0x281   :  { %1685 = vmatpush1.bf16.msra.mxu0 %v5744_v38  ;;  %1726 = vmatpush1.bf16.msra.mxu1 %v5746_v39 }
 0x282   :  { %1686 = vmatprep.subr.bf16.mxu0 %v5750_v40  ;;  %1727 = vmatprep.subr.bf16.mxu1 %v5752_v41  ;;  %v7565_v41 = vsel %vm5971_vm1, %v5952_v19, %v5995_v12 }
 0x283   :  { %1716 = vmatprep.mubr.bf16.mxu0 %v7555_v35  ;;  %1757 = vmatprep.mubr.bf16.mxu1 %v7555_v35 }
 0x285   :  { %1687 = vmatpush1.bf16.msra.mxu0 %v5754_v42  ;;  %1728 = vmatpush1.bf16.msra.mxu1 %v5756_v43 }
 0x286   :  { %1688 = vmatprep.subr.bf16.mxu0 %v5768_v46  ;;  %1729 = vmatprep.subr.bf16.mxu1 %v5770_v47  ;;  %v7566_v47 = vld [vmem:[#allocation36_spill] sm:$0xff] }
 0x289   :  { %1689 = vmatpush1.bf16.msra.mxu0 %v5774_v49  ;;  %1730 = vmatpush1.bf16.msra.mxu1 %v5776_v50  ;;  %v7567_v49 = vsel %vm5975_vm2, %v5955_v14, %v7566_v47 }
 0x28a   :  { %1690 = vmatprep.subr.bf16.mxu0 %v5780_v51  ;;  %1731 = vmatprep.subr.bf16.mxu1 %v5784_v52  ;;  %v7568_v51 = vld [vmem:[#allocation27_spill] sm:$0xff]  ;;  %v7569_v52 = vld [vmem:[#allocation37_spill] sm:$0xff] }
 0x28d   :  { %1691 = vmatpush1.bf16.msra.mxu0 %v5786_v53  ;;  %1732 = vmatpush1.bf16.msra.mxu1 %v5788_v54  ;;  %v7570_v53 = vsel %vm5979_vm3, %v7568_v51, %v7569_v52 }
 0x28e   :  { %1692 = vmatprep.subr.bf16.mxu0 %v5800_v57  ;;  %1733 = vmatprep.subr.bf16.mxu1 %v5802_v58 }
 0x291   :  { %1693 = vmatpush1.bf16.msra.mxu0 %v5806_v59  ;;  %1734 = vmatpush1.bf16.msra.mxu1 %v5808_v60 }
 0x292   :  { %1694 = vmatprep.subr.bf16.mxu0 %v5810_v62  ;;  %1735 = vmatprep.subr.bf16.mxu1 %v5812_v63 }
 0x295   :  { %1695 = vmatpush1.bf16.msra.mxu0 %v5818_v1  ;;  %1736 = vmatpush1.bf16.msra.mxu1 %v5820_v2 }
 0x296   :  { %1696 = vmatprep.subr.bf16.mxu0 %v5828_v5  ;;  %1737 = vmatprep.subr.bf16.mxu1 %v5830_v6 }
 0x299   :  { %1697 = vmatpush1.bf16.msra.mxu0 %v5838_v7  ;;  %1738 = vmatpush1.bf16.msra.mxu1 %v5840_v8 }
 0x29a   :  { %1698 = vmatprep.subr.bf16.mxu0 %v7556_v17  ;;  %1739 = vmatprep.subr.bf16.mxu1 %v7557_v15 }
 0x29d   :  { %1699 = vmatpush1.bf16.msra.mxu0 %v7558_v3  ;;  %1740 = vmatpush1.bf16.msra.mxu1 %v7559_v25 }
 0x29e   :  { %1994 = vmatprep.subr.bf16.mxu0 %v6281_v18  ;;  %2035 = vmatprep.subr.bf16.mxu1 %v6283_v0 }
 0x353   :  { %v1408_v38 = vpop.f32.mrb[24].mxu0  ;;  %v1449_v39 = vpop.f32.mrb[24].mxu1 }
 0x354   :  { %v1456_v40 = vadd.f32 %v1408_v38, %v6021_v36  ;;  %v1458_v42 = vadd.f32 %v1449_v39, %v7565_v41  ;;  %v1410_v43 = vpop.f32.mrb[25].mxu0  ;;  %v1451_v46 = vpop.f32.mrb[25].mxu1  ;;  %v6329_v38 = vld [vmem:[#allocation6 + $0x84] ss:$16 sps:$4 sm:$0xff]   ;;  %v6331_v39 = vld [vmem:[#allocation6 + $0x8c] ss:$16 sps:$4 sm:$0xff]  }
 0x355   :  { %v1457_v50 = vadd.f32 %v1410_v43, %v7567_v49  ;;  %v1459_v54 = vadd.f32 %v1451_v46, %v7570_v53  ;;  %v1412_v57 = vpop.f32.mrb[26].mxu0  ;;  %v1453_v58 = vpop.f32.mrb[26].mxu1  ;;  %v6335_v41 = vld [vmem:[#allocation6 + $0x88] ss:$16 sps:$4 sm:$0xff]   ;;  %v6343_v43 = vld [vmem:[#allocation6 + $0xa4] ss:$16 sps:$4 sm:$0xff]  }
 0x356   :  { %v1460_v59 = vmul.f32 0.5, %v1456_v40  ;;  %v1413_v60 = vpop.f32.mrb[27].mxu0  ;;  %v1454_v62 = vpop.f32.mrb[27].mxu1  ;;  %v1462_v1 = vmul.f32 0.5, %v1458_v42  ;;  %v6333_v40 = vld [vmem:[#allocation6 + $0x80] ss:$16 sps:$4 sm:$0xff]  }
 0x357   :  { %v1461_v63 = vmul.f32 0.5, %v1457_v50  ;;  %v6341_v42 = vld [vmem:[#allocation6 + $0xa0] ss:$16 sps:$4 sm:$0xff]   ;;  %v6345_v46 = vld [vmem:[#allocation6 + $0xa8] ss:$16 sps:$4 sm:$0xff]  }
 0x358   :  { %5333 = vtanh.f32 %v1460_v59  ;;  %v6347_v49 = vld [vmem:[#allocation6 + $0xac] ss:$16 sps:$4 sm:$0xff]   ;;  %v6349_v50 = vld [vmem:[#allocation6 + $0xc4] ss:$16 sps:$4 sm:$0xff]   ;;  %v6359_v57 = vld [vmem:[#allocation6 + $0xc8] ss:$16 sps:$4 sm:$0xff]  }
 0x359   :  { %5335 = vtanh.f32 %v1461_v63  ;;  %v6352_v53 = vld [vmem:[#allocation6 + $0xcc] ss:$16 sps:$4 sm:$0xff]   ;;  %v6363_v58 = vld [vmem:[#allocation6 + $0xe4] ss:$16 sps:$4 sm:$0xff]   ;;  %v6369_v60 = vld [vmem:[#allocation6 + $0xe0] ss:$16 sps:$4 sm:$0xff]  }
 0x35a   :  { %5337 = vtanh.f32 %v1459_v54  ;;  %v6357_v54 = vld [vmem:[#allocation6 + $0xc0] ss:$16 sps:$4 sm:$0xff]   ;;  %v6365_v59 = vld [vmem:[#allocation6 + $0xec] ss:$16 sps:$4 sm:$0xff]   ;;  %v6371_v62 = vld [vmem:[#allocation6 + $0xe8] ss:$16 sps:$4 sm:$0xff]  }
 0x35b   :  { %5339 = vtanh.f32 %v1462_v1 }
 0x362   :  { %v5334_v2 = vpop.eup %5333 }
 0x363   :  { %v1466_v5 = vmul.f32 0.5, %v5334_v2  ;;  %v5336_v6 = vpop.eup %5335  ;;  %v7572_v2 = vld [vmem:[#allocation35_spill] sm:$0xff] }
 0x364   :  { %v1467_v8 = vmul.f32 0.5, %v5336_v6  ;;  %v5338_v37 = vpop.eup %5337  ;;  %v7573_v6 = vld [vmem:[#allocation28_spill] sm:$0xff] }
 0x365   :  { %v1469_v7 = vadd.f32 0.5, %v1466_v5  ;;  %v5340_v17 = vpop.eup %5339 }
 0x366   :  { %v1470_v45 = vadd.f32 0.5, %v1467_v8  ;;  %v1468_v15 = vmul.f32 0.5, %v5340_v17  ;;  %v7577_v17 = vld [vmem:[#allocation32_spill] sm:$0xff] }
 0x367   :  { %v1474_v36 = vmul.f32 %v5338_v37, %v1469_v7  ;;  %v7574_v7 = vld [vmem:[#allocation31_spill] sm:$0xff] }
 0x368   :  { %v1473_v30 = vmul.f32 %v1470_v45, %v6219_v44  ;;  %v1471_v3 = vadd.f32 0.5, %v1468_v15  ;;  %v6307_v44 = vld [vmem:[#allocation6 + $0x4c] ss:$16 sps:$4 sm:$0xff]   ;;  %v7575_v8 = vsel %vm5971_vm1, %v7573_v6, %v7574_v7 }
 0x36a   :  { %v6271_v10 = vadd.f32 %v1474_v36, %v1473_v30  ;;  %v7576_v30 = vld [vmem:[#allocation29_spill] sm:$0xff] }
 0x36b   :  { %v7578_v15 = vsel %vm5975_vm2, %v7576_v30, %v7577_v17 }
 0x36c   :  { %5341 = vtanh.f32 %v6271_v10 }
 0x376   :  { %v5342_v25 = vpop.eup %5341 }
 0x377   :  { %v6274_v55 = vmul.f32 %v5342_v25, %v1471_v3  ;;  %v7579_v25 = vld [vmem:[#allocation30_spill] sm:$0xff] }
 0x379   :  { %7571 = vst [vmem:[#allocation16_spill] sm:$0xff] %v6274_v55  ;;  %1478 = vst [vmem:[#allocation3 + $0x10] sm:$0xff] %v6274_v55  ;;  %v1491_v16 = vpack.c.bf16 %v6274_v55, %v6274_v55 }
 0x37b   :  { %1717 = vmatmul.mubr.bf16.vlgmr.msra.gmra.mrb[28].mxu0 %v1491_v16  ;;  %1758 = vmatmul.mubr.bf16.vlgmr.msra.gmra.mrb[28].mxu1 %v1491_v16  ;;  %v7580_v16 = vld [vmem:[#allocation33_spill] sm:$0xff] }
 0x37c   :  { %2026 = vmatprep.mubr.bf16.mxu0 %v7555_v35  ;;  %2067 = vmatprep.mubr.bf16.mxu1 %v7555_v35  ;;  %v7581_v23 = vsel %vm5979_vm3, %v7579_v25, %v7580_v16 }
 0x37d   :  { %1995 = vmatpush1.bf16.msra.mxu0 %v6285_v56  ;;  %2036 = vmatpush1.bf16.msra.mxu1 %v6287_v31 }
 0x37e   :  { %1996 = vmatprep.subr.bf16.mxu0 %v6293_v9  ;;  %2037 = vmatprep.subr.bf16.mxu1 %v6295_v11 }
 0x381   :  { %1997 = vmatpush1.bf16.msra.mxu0 %v6297_v28  ;;  %2038 = vmatpush1.bf16.msra.mxu1 %v6299_v26 }
 0x382   :  { %1998 = vmatprep.subr.bf16.mxu0 %v6305_v24  ;;  %2039 = vmatprep.subr.bf16.mxu1 %v6307_v44 }
 0x385   :  { %1999 = vmatpush1.bf16.msra.mxu0 %v6309_v4  ;;  %2040 = vmatpush1.bf16.msra.mxu1 %v6311_v21 }
 0x386   :  { %2000 = vmatprep.subr.bf16.mxu0 %v6317_v32  ;;  %2041 = vmatprep.subr.bf16.mxu1 %v6319_v27 }
 0x389   :  { %2001 = vmatpush1.bf16.msra.mxu0 %v6321_v48  ;;  %2042 = vmatpush1.bf16.msra.mxu1 %v6323_v61 }
 0x38a   :  { %2002 = vmatprep.subr.bf16.mxu0 %v6329_v38  ;;  %2043 = vmatprep.subr.bf16.mxu1 %v6331_v39 }
 0x38d   :  { %2003 = vmatpush1.bf16.msra.mxu0 %v6333_v40  ;;  %2044 = vmatpush1.bf16.msra.mxu1 %v6335_v41 }
 0x38e   :  { %2004 = vmatprep.subr.bf16.mxu0 %v6343_v43  ;;  %2045 = vmatprep.subr.bf16.mxu1 %v6347_v49 }
 0x391   :  { %2005 = vmatpush1.bf16.msra.mxu0 %v6341_v42  ;;  %2046 = vmatpush1.bf16.msra.mxu1 %v6345_v46 }
 0x392   :  { %2006 = vmatprep.subr.bf16.mxu0 %v6349_v50  ;;  %2047 = vmatprep.subr.bf16.mxu1 %v6352_v53 }
 0x395   :  { %2007 = vmatpush1.bf16.msra.mxu0 %v6357_v54  ;;  %2048 = vmatpush1.bf16.msra.mxu1 %v6359_v57 }
 0x396   :  { %2008 = vmatprep.subr.bf16.mxu0 %v6363_v58  ;;  %2049 = vmatprep.subr.bf16.mxu1 %v6365_v59 }
 0x399   :  { %2009 = vmatpush1.bf16.msra.mxu0 %v6369_v60  ;;  %2050 = vmatpush1.bf16.msra.mxu1 %v6371_v62 }
 0x39a   :  { %2304 = vmatprep.subr.bf16.mxu0 %v6281_v18  ;;  %2345 = vmatprep.subr.bf16.mxu1 %v6283_v0 }
 0x44e   :  { %v1718_v63 = vpop.f32.mrb[28].mxu0  ;;  %v1759_v1 = vpop.f32.mrb[28].mxu1 }
 0x44f   :  { %v1766_v5 = vadd.f32 %v1718_v63, %v7572_v2  ;;  %v1768_v37 = vadd.f32 %v1759_v1, %v7575_v8  ;;  %v1720_v45 = vpop.f32.mrb[29].mxu0  ;;  %v1761_v36 = vpop.f32.mrb[29].mxu1 }
 0x450   :  { %v1767_v3 = vadd.f32 %v1720_v45, %v7578_v15  ;;  %v1769_v63 = vadd.f32 %v1761_v36, %v7581_v23  ;;  %v1722_v2 = vpop.f32.mrb[30].mxu0  ;;  %v1763_v22 = vpop.f32.mrb[30].mxu1 }
 0x451   :  { %v1770_v33 = vmul.f32 0.5, %v1766_v5  ;;  %v1723_v13 = vpop.f32.mrb[31].mxu0  ;;  %v1764_v55 = vpop.f32.mrb[31].mxu1  ;;  %v1772_v8 = vmul.f32 0.5, %v1768_v37 }
 0x452   :  { %v1771_v1 = vmul.f32 0.5, %v1767_v3 }
 0x453   :  { %5343 = vtanh.f32 %v1770_v33 }
 0x454   :  { %5345 = vtanh.f32 %v1771_v1  ;;  %v7585_v1 = vsel %vm5979_vm3, %v7580_v16, %v7579_v25 }
 0x455   :  { %5347 = vtanh.f32 %v1769_v63  ;;  %v7584_v63 = vsel %vm5975_vm2, %v7577_v17, %v7576_v30 }
 0x456   :  { %5349 = vtanh.f32 %v1772_v8 }
 0x45d   :  { %v5344_v51 = vpop.eup %5343 }
 0x45e   :  { %v1776_v52 = vmul.f32 0.5, %v5344_v51  ;;  %v5346_v14 = vpop.eup %5345 }
 0x45f   :  { %v1777_v15 = vmul.f32 0.5, %v5346_v14  ;;  %v5348_v47 = vpop.eup %5347 }
 0x460   :  { %v1779_v45 = vadd.f32 0.5, %v1776_v52  ;;  %v5350_v13 = vpop.eup %5349  ;;  %v7583_v52 = vsel %vm5971_vm1, %v7574_v7, %v7573_v6 }
 0x461   :  { %v1780_v19 = vadd.f32 0.5, %v1777_v15  ;;  %v1778_v33 = vmul.f32 0.5, %v5350_v13 }
 0x462   :  { %v1784_v12 = vmul.f32 %v5348_v47, %v1779_v45  ;;  %v7582_v47 = vld [vmem:[#allocation38_spill] sm:$0xff] }
 0x463   :  { %v1783_v23 = vmul.f32 %v1780_v19, %v6271_v10  ;;  %v1781_v55 = vadd.f32 0.5, %v1778_v33 }
 0x465   :  { %v6396_v22 = vadd.f32 %v1784_v12, %v1783_v23 }
 0x467   :  { %5351 = vtanh.f32 %v6396_v22 }
 0x471   :  { %v5352_v5 = vpop.eup %5351 }
 0x472   :  { %v6399_v37 = vmul.f32 %v5352_v5, %v1781_v55 }
 0x474   :  { %1788 = vst [vmem:[#allocation3 + $0x18] sm:$0xff] %v6399_v37  ;;  %v1801_v14 = vpack.c.bf16 %v6399_v37, %v6399_v37 }
 0x476   :  { %2027 = vmatmul.mubr.bf16.vlgmr.msra.gmra.mrb[32].mxu0 %v1801_v14  ;;  %2068 = vmatmul.mubr.bf16.vlgmr.msra.gmra.mrb[32].mxu1 %v1801_v14 }
 0x477   :  { %2305 = vmatpush1.bf16.msra.mxu0 %v6285_v56  ;;  %2346 = vmatpush1.bf16.msra.mxu1 %v6287_v31 }
 0x478   :  { %2306 = vmatprep.subr.bf16.mxu0 %v6293_v9  ;;  %2347 = vmatprep.subr.bf16.mxu1 %v6295_v11 }
 0x479   :  { %2336 = vmatprep.mubr.bf16.mxu0 %v7555_v35  ;;  %2377 = vmatprep.mubr.bf16.mxu1 %v7555_v35 }
 0x47b   :  { %2307 = vmatpush1.bf16.msra.mxu0 %v6297_v28  ;;  %2348 = vmatpush1.bf16.msra.mxu1 %v6299_v26 }
 0x47c   :  { %2308 = vmatprep.subr.bf16.mxu0 %v6305_v24  ;;  %2349 = vmatprep.subr.bf16.mxu1 %v6307_v44 }
 0x47f   :  { %2309 = vmatpush1.bf16.msra.mxu0 %v6309_v4  ;;  %2350 = vmatpush1.bf16.msra.mxu1 %v6311_v21 }
 0x480   :  { %2310 = vmatprep.subr.bf16.mxu0 %v6317_v32  ;;  %2351 = vmatprep.subr.bf16.mxu1 %v6319_v27 }
 0x483   :  { %2311 = vmatpush1.bf16.msra.mxu0 %v6321_v48  ;;  %2352 = vmatpush1.bf16.msra.mxu1 %v6323_v61 }
 0x484   :  { %2312 = vmatprep.subr.bf16.mxu0 %v6329_v38  ;;  %2353 = vmatprep.subr.bf16.mxu1 %v6331_v39 }
 0x487   :  { %2313 = vmatpush1.bf16.msra.mxu0 %v6333_v40  ;;  %2354 = vmatpush1.bf16.msra.mxu1 %v6335_v41 }
 0x488   :  { %2314 = vmatprep.subr.bf16.mxu0 %v6343_v43  ;;  %2355 = vmatprep.subr.bf16.mxu1 %v6347_v49 }
 0x48b   :  { %2315 = vmatpush1.bf16.msra.mxu0 %v6341_v42  ;;  %2356 = vmatpush1.bf16.msra.mxu1 %v6345_v46 }
 0x48c   :  { %2316 = vmatprep.subr.bf16.mxu0 %v6349_v50  ;;  %2357 = vmatprep.subr.bf16.mxu1 %v6352_v53 }
 0x48f   :  { %2317 = vmatpush1.bf16.msra.mxu0 %v6357_v54  ;;  %2358 = vmatpush1.bf16.msra.mxu1 %v6359_v57 }
 0x490   :  { %2318 = vmatprep.subr.bf16.mxu0 %v6363_v58  ;;  %2359 = vmatprep.subr.bf16.mxu1 %v6365_v59 }
 0x493   :  { %2319 = vmatpush1.bf16.msra.mxu0 %v6369_v60  ;;  %2360 = vmatpush1.bf16.msra.mxu1 %v6371_v62 }
 0x494   :  { %2614 = vmatprep.subr.bf16.mxu0 %v6281_v18  ;;  %2655 = vmatprep.subr.bf16.mxu1 %v6283_v0 }
 0x549   :  { %v2028_v12 = vpop.f32.mrb[32].mxu0  ;;  %v2069_v19 = vpop.f32.mrb[32].mxu1 }
 0x54a   :  { %v2076_v51 = vadd.f32 %v2028_v12, %v7582_v47  ;;  %v2078_v10 = vadd.f32 %v2069_v19, %v7583_v52  ;;  %v2030_v36 = vpop.f32.mrb[33].mxu0  ;;  %v2071_v3 = vpop.f32.mrb[33].mxu1 }
 0x54b   :  { %v2077_v2 = vadd.f32 %v2030_v36, %v7584_v63  ;;  %v2079_v8 = vadd.f32 %v2071_v3, %v7585_v1  ;;  %v2032_v45 = vpop.f32.mrb[34].mxu0  ;;  %v2073_v15 = vpop.f32.mrb[34].mxu1 }
 0x54c   :  { %v2080_v23 = vmul.f32 0.5, %v2076_v51  ;;  %v2033_v13 = vpop.f32.mrb[35].mxu0  ;;  %v2074_v6 = vpop.f32.mrb[35].mxu1  ;;  %v2082_v33 = vmul.f32 0.5, %v2078_v10  ;;  %v7588_v45 = vld [vmem:[#allocation25_spill] sm:$0xff] }
 0x54d   :  { %v2081_v7 = vmul.f32 0.5, %v2077_v2  ;;  %v7586_v2 = vld [vmem:[#allocation39_spill] sm:$0xff] }
 0x54e   :  { %5353 = vtanh.f32 %v2080_v23 }
 0x54f   :  { %5355 = vtanh.f32 %v2081_v7  ;;  %v7590_v7 = vld [vmem:[#allocation36_spill] sm:$0xff] }
 0x550   :  { %5357 = vtanh.f32 %v2079_v8  ;;  %v7587_v8 = vld [vmem:[#allocation34_spill] sm:$0xff] }
 0x551   :  { %5359 = vtanh.f32 %v2082_v33  ;;  %v7589_v15 = vsel %vm5971_vm1, %v7587_v8, %v7588_v45  ;;  %v7591_v33 = vld [vmem:[#allocation26_spill] sm:$0xff] }
 0x558   :  { %v5354_v55 = vpop.eup %5353 }
 0x559   :  { %v2086_v5 = vmul.f32 0.5, %v5354_v55  ;;  %v5356_v30 = vpop.eup %5355  ;;  %v7592_v55 = vsel %vm5975_vm2, %v7590_v7, %v7591_v33 }
 0x55a   :  { %v2087_v14 = vmul.f32 0.5, %v5356_v30  ;;  %v5358_v12 = vpop.eup %5357 }
 0x55b   :  { %v2089_v17 = vadd.f32 0.5, %v2086_v5  ;;  %v5360_v51 = vpop.eup %5359  ;;  %v7594_v5 = vld [vmem:[#allocation27_spill] sm:$0xff] }
 0x55c   :  { %v2090_v19 = vadd.f32 0.5, %v2087_v14  ;;  %v2088_v52 = vmul.f32 0.5, %v5360_v51 }
 0x55d   :  { %v2094_v25 = vmul.f32 %v5358_v12, %v2089_v17 }
 0x55e   :  { %v2093_v16 = vmul.f32 %v2090_v19, %v6396_v22  ;;  %v2091_v36 = vadd.f32 0.5, %v2088_v52 }
 0x560   :  { %v6455_v47 = vadd.f32 %v2094_v25, %v2093_v16 }
 0x562   :  { %5361 = vtanh.f32 %v6455_v47 }
 0x56c   :  { %v5362_v3 = vpop.eup %5361 }
 0x56d   :  { %v2097_v10 = vmul.f32 %v5362_v3, %v2091_v36 }
 0x56f   :  { %2098 = vst [vmem:[#allocation3 + $0x20] sm:$0xff] %v2097_v10  ;;  %v2111_v63 = vpack.c.bf16 %v2097_v10, %v2097_v10  ;;  %3044 = vst.msk [vmem:[#allocation3 + $0x18] sm:$0xff] %vm3031_vm4, %v2097_v10 }
 0x570   :  { %3045 = vst.msk [vmem:[#allocation3 + $0x20] sm:$0xff] %vm3031_vm4, %v6399_v37 }
 0x571   :  { %2337 = vmatmul.mubr.bf16.vlgmr.msra.gmra.mrb[36].mxu0 %v2111_v63  ;;  %2378 = vmatmul.mubr.bf16.vlgmr.msra.gmra.mrb[36].mxu1 %v2111_v63 }
 0x572   :  { %2615 = vmatpush1.bf16.msra.mxu0 %v6285_v56  ;;  %2656 = vmatpush1.bf16.msra.mxu1 %v6287_v31 }
 0x573   :  { %2616 = vmatprep.subr.bf16.mxu0 %v6293_v9  ;;  %2657 = vmatprep.subr.bf16.mxu1 %v6295_v11 }
 0x574   :  { %2646 = vmatprep.mubr.bf16.mxu0 %v7555_v35  ;;  %2687 = vmatprep.mubr.bf16.mxu1 %v7555_v35 }
 0x576   :  { %2617 = vmatpush1.bf16.msra.mxu0 %v6297_v28  ;;  %2658 = vmatpush1.bf16.msra.mxu1 %v6299_v26 }
 0x577   :  { %2618 = vmatprep.subr.bf16.mxu0 %v6305_v24  ;;  %2659 = vmatprep.subr.bf16.mxu1 %v6307_v44 }
 0x57a   :  { %2619 = vmatpush1.bf16.msra.mxu0 %v6309_v4  ;;  %2660 = vmatpush1.bf16.msra.mxu1 %v6311_v21 }
 0x57b   :  { %2620 = vmatprep.subr.bf16.mxu0 %v6317_v32  ;;  %2661 = vmatprep.subr.bf16.mxu1 %v6319_v27 }
 0x57e   :  { %2621 = vmatpush1.bf16.msra.mxu0 %v6321_v48  ;;  %2662 = vmatpush1.bf16.msra.mxu1 %v6323_v61 }
 0x57f   :  { %2622 = vmatprep.subr.bf16.mxu0 %v6329_v38  ;;  %2663 = vmatprep.subr.bf16.mxu1 %v6331_v39 }
 0x582   :  { %2623 = vmatpush1.bf16.msra.mxu0 %v6333_v40  ;;  %2664 = vmatpush1.bf16.msra.mxu1 %v6335_v41 }
 0x583   :  { %2624 = vmatprep.subr.bf16.mxu0 %v6343_v43  ;;  %2665 = vmatprep.subr.bf16.mxu1 %v6347_v49 }
 0x586   :  { %2625 = vmatpush1.bf16.msra.mxu0 %v6341_v42  ;;  %2666 = vmatpush1.bf16.msra.mxu1 %v6345_v46 }
 0x587   :  { %2626 = vmatprep.subr.bf16.mxu0 %v6349_v50  ;;  %2667 = vmatprep.subr.bf16.mxu1 %v6352_v53 }
 0x58a   :  { %2627 = vmatpush1.bf16.msra.mxu0 %v6357_v54  ;;  %2668 = vmatpush1.bf16.msra.mxu1 %v6359_v57 }
 0x58b   :  { %2628 = vmatprep.subr.bf16.mxu0 %v6363_v58  ;;  %2669 = vmatprep.subr.bf16.mxu1 %v6365_v59 }
 0x58e   :  { %2629 = vmatpush1.bf16.msra.mxu0 %v6369_v60  ;;  %2670 = vmatpush1.bf16.msra.mxu1 %v6371_v62 }
 0x58f   :  { %2924 = vmatprep.subr.bf16.mxu0 %v6281_v18  ;;  %2965 = vmatprep.subr.bf16.mxu1 %v6283_v0  ;;  %v7593_v0 = vld [vmem:[#allocation37_spill] sm:$0xff] }
 0x590   :  { %v7595_v30 = vsel %vm5979_vm3, %v7593_v0, %v7594_v5 }
 0x644   :  { %v2338_v22 = vpop.f32.mrb[36].mxu0  ;;  %v2379_v37 = vpop.f32.mrb[36].mxu1 }
 0x645   :  { %v2386_v1 = vadd.f32 %v2338_v22, %v7586_v2  ;;  %v2388_v23 = vadd.f32 %v2379_v37, %v7589_v15  ;;  %v2340_v13 = vpop.f32.mrb[37].mxu0  ;;  %v2381_v6 = vpop.f32.mrb[37].mxu1 }
 0x646   :  { %v2387_v18 = vadd.f32 %v2340_v13, %v7592_v55  ;;  %v2389_v17 = vadd.f32 %v2381_v6, %v7595_v30  ;;  %v2342_v14 = vpop.f32.mrb[38].mxu0  ;;  %v2383_v12 = vpop.f32.mrb[38].mxu1  ;;  %v7596_v55 = vld [vmem:[#allocation16_spill] sm:$0xff] }
 0x647   :  { %v2390_v19 = vmul.f32 0.5, %v2386_v1  ;;  %v2343_v25 = vpop.f32.mrb[39].mxu0  ;;  %v2384_v16 = vpop.f32.mrb[39].mxu1  ;;  %v2392_v52 = vmul.f32 0.5, %v2388_v23 }
 0x648   :  { %v2391_v51 = vmul.f32 0.5, %v2387_v18  ;;  %v3034_v16 = vld [vmem:[#allocation3 + $0x8] sm:$0xff] }
 0x649   :  { %5363 = vtanh.f32 %v2390_v19 }
 0x64a   :  { %5365 = vtanh.f32 %v2391_v51 }
 0x64b   :  { %5367 = vtanh.f32 %v2389_v17 }
 0x64c   :  { %5369 = vtanh.f32 %v2392_v52  ;;  %v5211_v52 = vld [vmem:[#allocation8 + $0x4] ss:$16 sps:$4 sm:$0xff]  }
 0x653   :  { %v5364_v36 = vpop.eup %5363 }
 0x654   :  { %v2396_v3 = vmul.f32 0.5, %v5364_v36  ;;  %v5366_v10 = vpop.eup %5365  ;;  %v5214_v36 = vld [vmem:[#allocation8 + $0xc] ss:$16 sps:$4 sm:$0xff]  }
 0x655   :  { %v2397_v22 = vmul.f32 0.5, %v5366_v10  ;;  %v5368_v37 = vpop.eup %5367  ;;  %v5212_v10 = vld [vmem:[#allocation8 + $0x8] ss:$16 sps:$4 sm:$0xff]  }
 0x656   :  { %v2399_v63 = vadd.f32 0.5, %v2396_v3  ;;  %v5370_v1 = vpop.eup %5369  ;;  %v5209_v3 = vld [vmem:[#allocation8] ss:$16 sps:$4 sm:$0xff]  }
 0x657   :  { %v2400_v2 = vadd.f32 0.5, %v2397_v22  ;;  %v2398_v13 = vmul.f32 0.5, %v5370_v1  ;;  %v5220_v22 = vld [vmem:[#allocation8 + $0x2c] ss:$16 sps:$4 sm:$0xff]   ;;  %v5224_v1 = vld [vmem:[#allocation8 + $0x48] ss:$16 sps:$4 sm:$0xff]  }
 0x658   :  { %v2404_v8 = vmul.f32 %v5368_v37, %v2399_v63  ;;  %v5217_v63 = vld [vmem:[#allocation8 + $0x24] ss:$16 sps:$4 sm:$0xff]   ;;  %v5215_v37 = vld [vmem:[#allocation8 + $0x20] ss:$16 sps:$4 sm:$0xff]  }
 0x659   :  { %v2403_v45 = vmul.f32 %v2400_v2, %v6455_v47  ;;  %v2401_v6 = vadd.f32 0.5, %v2398_v13  ;;  %v5218_v2 = vld [vmem:[#allocation8 + $0x28] ss:$16 sps:$4 sm:$0xff]   ;;  %v5229_v13 = vld [vmem:[#allocation8 + $0x64] ss:$16 sps:$4 sm:$0xff]  }
 0x65b   :  { %v6512_v15 = vadd.f32 %v2404_v8, %v2403_v45  ;;  %v5223_v8 = vld [vmem:[#allocation8 + $0x44] ss:$16 sps:$4 sm:$0xff]   ;;  %v5226_v45 = vld [vmem:[#allocation8 + $0x4c] ss:$16 sps:$4 sm:$0xff]  }
 0x65d   :  { %5371 = vtanh.f32 %v6512_v15 }
 0x667   :  { %v5372_v7 = vpop.eup %5371 }
 0x668   :  { %v2407_v23 = vmul.f32 %v5372_v7, %v2401_v6  ;;  %v5232_v6 = vld [vmem:[#allocation8 + $0x6c] ss:$16 sps:$4 sm:$0xff]   ;;  %v5227_v7 = vld [vmem:[#allocation8 + $0x60] ss:$16 sps:$4 sm:$0xff]  }
 0x66a   :  { %2408 = vst [vmem:[#allocation3 + $0x28] sm:$0xff] %v2407_v23  ;;  %v2421_v33 = vpack.c.bf16 %v2407_v23, %v2407_v23  ;;  %3040 = vst.msk [vmem:[#allocation3 + $0x10] sm:$0xff] %vm3031_vm4, %v2407_v23  ;;  %v5230_v23 = vld [vmem:[#allocation8 + $0x68] ss:$16 sps:$4 sm:$0xff]  }
 0x66b   :  { %3041 = vst.msk [vmem:[#allocation3 + $0x28] sm:$0xff] %vm3031_vm4, %v7596_v55  ;;  %v5238_v55 = vld [vmem:[#allocation8 + $0x8c] ss:$16 sps:$4 sm:$0xff]  }
 0x66c   :  { %2647 = vmatmul.mubr.bf16.vlgmr.msra.gmra.mrb[40].mxu0 %v2421_v33  ;;  %2688 = vmatmul.mubr.bf16.vlgmr.msra.gmra.mrb[40].mxu1 %v2421_v33  ;;  %v5235_v33 = vld [vmem:[#allocation8 + $0x84] ss:$16 sps:$4 sm:$0xff]  }
 0x66d   :  { %2925 = vmatpush1.bf16.msra.mxu0 %v6285_v56  ;;  %2966 = vmatpush1.bf16.msra.mxu1 %v6287_v31 }
 0x66e   :  { %2926 = vmatprep.subr.bf16.mxu0 %v6293_v9  ;;  %2967 = vmatprep.subr.bf16.mxu1 %v6295_v11  ;;  %v7597_v9 = vld [vmem:[#allocation49_spill] sm:$0xff] }
 0x66f   :  { %2956 = vmatprep.mubr.bf16.mxu0 %v7555_v35  ;;  %2997 = vmatprep.mubr.bf16.mxu1 %v7555_v35 }
 0x671   :  { %2927 = vmatpush1.bf16.msra.mxu0 %v6297_v28  ;;  %2968 = vmatpush1.bf16.msra.mxu1 %v6299_v26  ;;  %v7598_v28 = vld [vmem:[#allocation41_spill] sm:$0xff] }
 0x672   :  { %2928 = vmatprep.subr.bf16.mxu0 %v6305_v24  ;;  %2969 = vmatprep.subr.bf16.mxu1 %v6307_v44  ;;  %v7599_v26 = vld [vmem:[#allocation21_spill] sm:$0xff] }
 0x673   :  { %v7600_v24 = vsel %vm5971_vm1, %v7598_v28, %v7599_v26  ;;  %v5239_v28 = vld [vmem:[#allocation8 + $0xa0] ss:$16 sps:$4 sm:$0xff]   ;;  %v5242_v26 = vld [vmem:[#allocation8 + $0xa8] ss:$16 sps:$4 sm:$0xff]  }
 0x675   :  { %2929 = vmatpush1.bf16.msra.mxu0 %v6309_v4  ;;  %2970 = vmatpush1.bf16.msra.mxu1 %v6311_v21 }
 0x676   :  { %2930 = vmatprep.subr.bf16.mxu0 %v6317_v32  ;;  %2971 = vmatprep.subr.bf16.mxu1 %v6319_v27  ;;  %v7601_v32 = vld [vmem:[#allocation44_spill] sm:$0xff]  ;;  %v7602_v27 = vld [vmem:[#allocation22_spill] sm:$0xff] }
 0x679   :  { %2931 = vmatpush1.bf16.msra.mxu0 %v6321_v48  ;;  %2972 = vmatpush1.bf16.msra.mxu1 %v6323_v61  ;;  %v7603_v48 = vsel %vm5975_vm2, %v7601_v32, %v7602_v27  ;;  %v5253_v32 = vld [vmem:[#allocation8 + $0xe4] ss:$16 sps:$4 sm:$0xff]   ;;  %v5256_v27 = vld [vmem:[#allocation8 + $0xec] ss:$16 sps:$4 sm:$0xff]  }
 0x67a   :  { %2932 = vmatprep.subr.bf16.mxu0 %v6329_v38  ;;  %2973 = vmatprep.subr.bf16.mxu1 %v6331_v39  ;;  %v7604_v38 = vld [vmem:[#allocation45_spill] sm:$0xff]  ;;  %v7605_v39 = vld [vmem:[#allocation24_spill] sm:$0xff] }
 0x67d   :  { %2933 = vmatpush1.bf16.msra.mxu0 %v6333_v40  ;;  %2974 = vmatpush1.bf16.msra.mxu1 %v6335_v41  ;;  %v7606_v40 = vsel %vm5979_vm3, %v7604_v38, %v7605_v39  ;;  %v6574_v38 = vld [vmem:[#allocation9 + $0x4] ss:$16 sps:$4 sm:$0xff]   ;;  %v6576_v39 = vld [vmem:[#allocation9 + $0xc] ss:$16 sps:$4 sm:$0xff]  }
 0x67e   :  { %2934 = vmatprep.subr.bf16.mxu0 %v6343_v43  ;;  %2975 = vmatprep.subr.bf16.mxu1 %v6347_v49  ;;  %7607 = vst [vmem:[#allocation17_spill] sm:$0xff] %v6574_v38  ;;  %7608 = vst [vmem:[#allocation18_spill] sm:$0xff] %v6576_v39 }
 0x681   :  { %2935 = vmatpush1.bf16.msra.mxu0 %v6341_v42  ;;  %2976 = vmatpush1.bf16.msra.mxu1 %v6345_v46 }
 0x682   :  { %2936 = vmatprep.subr.bf16.mxu0 %v6349_v50  ;;  %2977 = vmatprep.subr.bf16.mxu1 %v6352_v53 }
 0x685   :  { %2937 = vmatpush1.bf16.msra.mxu0 %v6357_v54  ;;  %2978 = vmatpush1.bf16.msra.mxu1 %v6359_v57 }
 0x686   :  { %2938 = vmatprep.subr.bf16.mxu0 %v6363_v58  ;;  %2979 = vmatprep.subr.bf16.mxu1 %v6365_v59 }
 0x689   :  { %2939 = vmatpush1.bf16.msra.mxu0 %v6369_v60  ;;  %2980 = vmatpush1.bf16.msra.mxu1 %v6371_v62 }
 0x68a   :  { %3272 = vmatprep.subr.bf16.mxu0 %v5211_v52  ;;  %3345 = vmatprep.subr.bf16.mxu1 %v5214_v36 }
 0x73f   :  { %v2648_v56 = vpop.f32.mrb[40].mxu0  ;;  %v2689_v31 = vpop.f32.mrb[40].mxu1 }
 0x740   :  { %v2696_v11 = vadd.f32 %v2648_v56, %v7597_v9  ;;  %v2698_v44 = vadd.f32 %v2689_v31, %v7600_v24  ;;  %v2650_v4 = vpop.f32.mrb[41].mxu0  ;;  %v2691_v21 = vpop.f32.mrb[41].mxu1  ;;  %v5233_v56 = vld [vmem:[#allocation8 + $0x80] ss:$16 sps:$4 sm:$0xff]   ;;  %v5236_v31 = vld [vmem:[#allocation8 + $0x88] ss:$16 sps:$4 sm:$0xff]  }
 0x741   :  { %v2697_v61 = vadd.f32 %v2650_v4, %v7603_v48  ;;  %v2699_v41 = vadd.f32 %v2691_v21, %v7606_v40  ;;  %v2652_v42 = vpop.f32.mrb[42].mxu0  ;;  %v2693_v43 = vpop.f32.mrb[42].mxu1  ;;  %v5241_v9 = vld [vmem:[#allocation8 + $0xa4] ss:$16 sps:$4 sm:$0xff]   ;;  %v5245_v4 = vld [vmem:[#allocation8 + $0xc0] ss:$16 sps:$4 sm:$0xff]  }
 0x742   :  { %v2700_v46 = vmul.f32 0.5, %v2696_v11  ;;  %v2653_v49 = vpop.f32.mrb[43].mxu0  ;;  %v2694_v50 = vpop.f32.mrb[43].mxu1  ;;  %v2702_v54 = vmul.f32 0.5, %v2698_v44  ;;  %v5244_v11 = vld [vmem:[#allocation8 + $0xac] ss:$16 sps:$4 sm:$0xff]  }
 0x743   :  { %v2701_v53 = vmul.f32 0.5, %v2697_v61  ;;  %v5247_v24 = vld [vmem:[#allocation8 + $0xc4] ss:$16 sps:$4 sm:$0xff]   ;;  %v5250_v44 = vld [vmem:[#allocation8 + $0xcc] ss:$16 sps:$4 sm:$0xff]  }
 0x744   :  { %5373 = vtanh.f32 %v2700_v46  ;;  %v5248_v21 = vld [vmem:[#allocation8 + $0xc8] ss:$16 sps:$4 sm:$0xff]   ;;  %v5251_v48 = vld [vmem:[#allocation8 + $0xe0] ss:$16 sps:$4 sm:$0xff]  }
 0x745   :  { %5375 = vtanh.f32 %v2701_v53  ;;  %v5254_v61 = vld [vmem:[#allocation8 + $0xe8] ss:$16 sps:$4 sm:$0xff]   ;;  %v7609_v42 = vld [vmem:[#allocation50_spill] sm:$0xff]  ;;  %v7611_v49 = vld [vmem:[#allocation40_spill] sm:$0xff] }
 0x746   :  { %5377 = vtanh.f32 %v2699_v41  ;;  %v7610_v46 = vld [vmem:[#allocation46_spill] sm:$0xff] }
 0x747   :  { %5379 = vtanh.f32 %v2702_v54  ;;  %v7612_v50 = vsel %vm5971_vm1, %v7610_v46, %v7611_v49  ;;  %v6643_v46 = vld [vmem:[#allocation9 + $0x8c] ss:$16 sps:$4 sm:$0xff]  }
 0x748   :  { %v3051_v49 = vld [vmem:[#allocation3 + $0x28] sm:$0xff] }
 0x74e   :  { %v5374_v57 = vpop.eup %5373 }
 0x74f   :  { %v2706_v58 = vmul.f32 0.5, %v5374_v57  ;;  %v5376_v59 = vpop.eup %5375 }
 0x750   :  { %v2707_v62 = vmul.f32 0.5, %v5376_v59  ;;  %v5378_v47 = vpop.eup %5377  ;;  %v7614_v59 = vld [vmem:[#allocation42_spill] sm:$0xff] }
 0x751   :  { %v2709_v60 = vadd.f32 0.5, %v2706_v58  ;;  %v5380_v17 = vpop.eup %5379  ;;  %v7613_v58 = vld [vmem:[#allocation47_spill] sm:$0xff] }
 0x752   :  { %v2710_v18 = vadd.f32 0.5, %v2707_v62  ;;  %v2708_v14 = vmul.f32 0.5, %v5380_v17 }
 0x753   :  { %v2714_v0 = vmul.f32 %v5378_v47, %v2709_v60  ;;  %v7615_v60 = vsel %vm5975_vm2, %v7613_v58, %v7614_v59  ;;  %v7616_v47 = vld [vmem:[#allocation48_spill] sm:$0xff]  ;;  %v6657_v59 = vld [vmem:[#allocation9 + $0xac] ss:$16 sps:$4 sm:$0xff]  }
 0x754   :  { %v2713_v5 = vmul.f32 %v2710_v18, %v6512_v15  ;;  %v2711_v12 = vadd.f32 0.5, %v2708_v14  ;;  %v5221_v15 = vld [vmem:[#allocation8 + $0x40] ss:$16 sps:$4 sm:$0xff]   ;;  %v7617_v18 = vld [vmem:[#allocation43_spill] sm:$0xff]  ;;  %v6655_v58 = vld [vmem:[#allocation9 + $0xa4] ss:$16 sps:$4 sm:$0xff]  }
 0x756   :  { %v6567_v30 = vadd.f32 %v2714_v0, %v2713_v5  ;;  %v7618_v0 = vsel %vm5979_vm3, %v7616_v47, %v7617_v18  ;;  %v6667_v47 = vld [vmem:[#allocation9 + $0xc4] ss:$16 sps:$4 sm:$0xff]   ;;  %v6669_v18 = vld [vmem:[#allocation9 + $0xcc] ss:$16 sps:$4 sm:$0xff]  }
 0x758   :  { %5381 = vtanh.f32 %v6567_v30 }
 0x762   :  { %v5382_v19 = vpop.eup %5381 }
 0x763   :  { %v2717_v25 = vmul.f32 %v5382_v19, %v2711_v12 }
 0x765   :  { %2718 = vst [vmem:[#allocation3 + $0x30] sm:$0xff] %v2717_v25  ;;  %v2731_v51 = vpack.c.bf16 %v2717_v25, %v2717_v25  ;;  %3036 = vst.msk [vmem:[#allocation3 + $0x8] sm:$0xff] %vm3031_vm4, %v2717_v25 }
 0x766   :  { %3037 = vst.msk [vmem:[#allocation3 + $0x30] sm:$0xff] %vm3031_vm4, %v3034_v16 }
 0x767   :  { %2957 = vmatmul.mubr.bf16.vlgmr.msra.gmra.mrb[44].mxu0 %v2731_v51  ;;  %2998 = vmatmul.mubr.bf16.vlgmr.msra.gmra.mrb[44].mxu1 %v2731_v51 }
 0x768   :  { %3304 = vmatprep.mubr.bf16.mxu0 %v7555_v35  ;;  %3377 = vmatprep.mubr.bf16.mxu1 %v7555_v35 }
 0x769   :  { %3273 = vmatpush1.bf16.msra.mxu0 %v5209_v3  ;;  %3346 = vmatpush1.bf16.msra.mxu1 %v5212_v10 }
 0x76a   :  { %3274 = vmatprep.subr.bf16.mxu0 %v5217_v63  ;;  %3347 = vmatprep.subr.bf16.mxu1 %v5220_v22 }
 0x76d   :  { %3275 = vmatpush1.bf16.msra.mxu0 %v5215_v37  ;;  %3348 = vmatpush1.bf16.msra.mxu1 %v5218_v2 }
 0x76e   :  { %3276 = vmatprep.subr.bf16.mxu0 %v5223_v8  ;;  %3349 = vmatprep.subr.bf16.mxu1 %v5226_v45 }
 0x771   :  { %3277 = vmatpush1.bf16.msra.mxu0 %v5221_v15  ;;  %3350 = vmatpush1.bf16.msra.mxu1 %v5224_v1 }
 0x772   :  { %3278 = vmatprep.subr.bf16.mxu0 %v5229_v13  ;;  %3351 = vmatprep.subr.bf16.mxu1 %v5232_v6 }
 0x775   :  { %3279 = vmatpush1.bf16.msra.mxu0 %v5227_v7  ;;  %3352 = vmatpush1.bf16.msra.mxu1 %v5230_v23  ;;  %v3029_v23 = vld [vmem:[#allocation3] sm:$0xff] }
 0x776   :  { %3280 = vmatprep.subr.bf16.mxu0 %v5235_v33  ;;  %3353 = vmatprep.subr.bf16.mxu1 %v5238_v55  ;;  %v3047_v33 = vld [vmem:[#allocation3 + $0x8] sm:$0xff] }
 0x779   :  { %3281 = vmatpush1.bf16.msra.mxu0 %v5233_v56  ;;  %3354 = vmatpush1.bf16.msra.mxu1 %v5236_v31  ;;  %v6599_v56 = vld [vmem:[#allocation9] ss:$16 sps:$4 sm:$0xff]   ;;  %v6601_v31 = vld [vmem:[#allocation9 + $0x8] ss:$16 sps:$4 sm:$0xff]  }
 0x77a   :  { %3282 = vmatprep.subr.bf16.mxu0 %v5241_v9  ;;  %3355 = vmatprep.subr.bf16.mxu1 %v5244_v11  ;;  %v6603_v9 = vld [vmem:[#allocation9 + $0x24] ss:$16 sps:$4 sm:$0xff]   ;;  %v6605_v11 = vld [vmem:[#allocation9 + $0x2c] ss:$16 sps:$4 sm:$0xff]  }
 0x77d   :  { %3283 = vmatpush1.bf16.msra.mxu0 %v5239_v28  ;;  %3356 = vmatpush1.bf16.msra.mxu1 %v5242_v26  ;;  %v6609_v28 = vld [vmem:[#allocation9 + $0x20] ss:$16 sps:$4 sm:$0xff]   ;;  %v6611_v26 = vld [vmem:[#allocation9 + $0x28] ss:$16 sps:$4 sm:$0xff]  }
 0x77e   :  { %3284 = vmatprep.subr.bf16.mxu0 %v5247_v24  ;;  %3357 = vmatprep.subr.bf16.mxu1 %v5250_v44  ;;  %v6615_v24 = vld [vmem:[#allocation9 + $0x44] ss:$16 sps:$4 sm:$0xff]   ;;  %v6617_v44 = vld [vmem:[#allocation9 + $0x4c] ss:$16 sps:$4 sm:$0xff]  }
 0x781   :  { %3285 = vmatpush1.bf16.msra.mxu0 %v5245_v4  ;;  %3358 = vmatpush1.bf16.msra.mxu1 %v5248_v21  ;;  %v3048_v4 = vld [vmem:[#allocation3 + $0x10] sm:$0xff]  ;;  %v3049_v21 = vld [vmem:[#allocation3 + $0x18] sm:$0xff] }
 0x782   :  { %3286 = vmatprep.subr.bf16.mxu0 %v5253_v32  ;;  %3359 = vmatprep.subr.bf16.mxu1 %v5256_v27  ;;  %v6623_v32 = vld [vmem:[#allocation9 + $0x40] ss:$16 sps:$4 sm:$0xff]   ;;  %v6625_v27 = vld [vmem:[#allocation9 + $0x48] ss:$16 sps:$4 sm:$0xff]  }
 0x785   :  { %3287 = vmatpush1.bf16.msra.mxu0 %v5251_v48  ;;  %3360 = vmatpush1.bf16.msra.mxu1 %v5254_v61  ;;  %v3055_v48 = vpack.c.bf16 %v3049_v21, %v3048_v4  ;;  %v6629_v61 = vld [vmem:[#allocation9 + $0x64] ss:$16 sps:$4 sm:$0xff]  }
 0x786   :  { %3654 = vmatprep.subr.bf16.mxu0 %v6574_v38  ;;  %3695 = vmatprep.subr.bf16.mxu1 %v6576_v39 }
 0x83a   :  { %v2958_v40 = vpop.f32.mrb[44].mxu0  ;;  %v2999_v41 = vpop.f32.mrb[44].mxu1 }
 0x83b   :  { %v3006_v43 = vadd.f32 %v2958_v40, %v7609_v42  ;;  %v3008_v53 = vadd.f32 %v2999_v41, %v7612_v50  ;;  %v2960_v54 = vpop.f32.mrb[45].mxu0  ;;  %v3001_v57 = vpop.f32.mrb[45].mxu1  ;;  %v6631_v40 = vld [vmem:[#allocation9 + $0x6c] ss:$16 sps:$4 sm:$0xff]   ;;  %v6635_v41 = vld [vmem:[#allocation9 + $0x60] ss:$16 sps:$4 sm:$0xff]  }
 0x83c   :  { %v3007_v62 = vadd.f32 %v2960_v54, %v7615_v60  ;;  %v3009_v5 = vadd.f32 %v3001_v57, %v7618_v0  ;;  %v2962_v17 = vpop.f32.mrb[46].mxu0  ;;  %v3003_v14 = vpop.f32.mrb[46].mxu1  ;;  %v6637_v42 = vld [vmem:[#allocation9 + $0x68] ss:$16 sps:$4 sm:$0xff]   ;;  %v3050_v50 = vld [vmem:[#allocation3 + $0x20] sm:$0xff] }
 0x83d   :  { %v3010_v12 = vmul.f32 0.5, %v3006_v43  ;;  %v2963_v19 = vpop.f32.mrb[47].mxu0  ;;  %v3004_v25 = vpop.f32.mrb[47].mxu1  ;;  %v3012_v51 = vmul.f32 0.5, %v3008_v53  ;;  %v6641_v43 = vld [vmem:[#allocation9 + $0x84] ss:$16 sps:$4 sm:$0xff]   ;;  %v3056_v57 = vpack.c.bf16 %v3051_v49, %v3050_v50 }
 0x83e   :  { %v3011_v16 = vmul.f32 0.5, %v3007_v62  ;;  %v6649_v53 = vld [vmem:[#allocation9 + $0x80] ss:$16 sps:$4 sm:$0xff]   ;;  %v6651_v54 = vld [vmem:[#allocation9 + $0x88] ss:$16 sps:$4 sm:$0xff]  }
 0x83f   :  { %5383 = vtanh.f32 %v3010_v12  ;;  %v6661_v60 = vld [vmem:[#allocation9 + $0xa0] ss:$16 sps:$4 sm:$0xff]   ;;  %v6663_v62 = vld [vmem:[#allocation9 + $0xa8] ss:$16 sps:$4 sm:$0xff]   ;;  %v6681_v19 = vld [vmem:[#allocation9 + $0xe4] ss:$16 sps:$4 sm:$0xff]  }
 0x840   :  { %5385 = vtanh.f32 %v3011_v16  ;;  %v6675_v17 = vld [vmem:[#allocation9 + $0xc0] ss:$16 sps:$4 sm:$0xff]   ;;  %v6677_v14 = vld [vmem:[#allocation9 + $0xc8] ss:$16 sps:$4 sm:$0xff]   ;;  %7620 = vst [vmem:[#allocation14_spill] sm:$0xff] %v6681_v19 }
 0x841   :  { %5387 = vtanh.f32 %v3009_v5  ;;  %v3052_v5 = vld [vmem:[#allocation3 + $0x30] sm:$0xff]  ;;  %7619 = vst [vmem:[#allocation19_spill] sm:$0xff] %v6677_v14  ;;  %v6683_v25 = vld [vmem:[#allocation9 + $0xec] ss:$16 sps:$4 sm:$0xff]  }
 0x842   :  { %5389 = vtanh.f32 %v3012_v51  ;;  %7621 = vst [vmem:[#allocation15_spill] sm:$0xff] %v6683_v25  ;;  %v6687_v16 = vld [vmem:[#allocation9 + $0xe0] ss:$16 sps:$4 sm:$0xff]   ;;  %v6689_v51 = vld [vmem:[#allocation9 + $0xe8] ss:$16 sps:$4 sm:$0xff]  }
 0x843   :  { %7622 = vst [vmem:[#allocation35_spill] sm:$0xff] %v6687_v16  ;;  %7623 = vst [vmem:[#allocation28_spill] sm:$0xff] %v6689_v51 }
 0x849   :  { %v5384_v52 = vpop.eup %5383 }
 0x84a   :  { %v3016_v36 = vmul.f32 0.5, %v5384_v52  ;;  %v5386_v3 = vpop.eup %5385  ;;  %v3090_v52 = vld [vmem:[%s7406_s5] sm:$0xf] }
 0x84b   :  { %v3017_v63 = vmul.f32 0.5, %v5386_v3  ;;  %v5388_v22 = vpop.eup %5387 }
 0x84c   :  { %v3019_v10 = vadd.f32 0.5, %v3016_v36  ;;  %v5390_v15 = vpop.eup %5389 }
 0x84d   :  { %v3020_v37 = vadd.f32 0.5, %v3017_v63  ;;  %v3018_v1 = vmul.f32 0.5, %v5390_v15 }
 0x84e   :  { %v3024_v2 = vmul.f32 %v5388_v22, %v3019_v10  ;;  %v7624_v10 = vld [vmem:[#allocation20_spill] sm:$0xff] }
 0x84f   :  { %v3023_v8 = vmul.f32 %v3020_v37, %v6567_v30  ;;  %v3021_v13 = vadd.f32 0.5, %v3018_v1  ;;  %v7625_v63 = vsub.s32 0, %v7624_v10  ;;  %v7626_v37 = vsub.s32 2, %v7624_v10 }
 0x850   :  { %v7627_v15 = vsub.s32 1, %v7624_v10 }
 0x851   :  { %v3025_v45 = vadd.f32 %v3024_v2, %v3023_v8  ;;  %v6744_v22 = vrot.slane %v3090_v52, %v7625_v63  ;;  %v6748_v2 = vrot.slane %v3090_v52, %v7626_v37 }
 0x852   :  { %v6756_v1 = vrot.slane %v3090_v52, %v7627_v15 }
 0x853   :  { %5391 = vtanh.f32 %v3025_v45 }
 0x85d   :  { %v5392_v6 = vpop.eup %5391 }
 0x85e   :  { %v3027_v7 = vmul.f32 %v5392_v6, %v3021_v13  ;;  %v7628_v13 = vsub.s32 3, %v7624_v10 }
 0x860   :  { %3028 = vst [vmem:[#allocation3 + $0x38] sm:$0xff] %v3027_v7  ;;  %3032 = vst.msk [vmem:[#allocation3] sm:$0xff] %vm3031_vm4, %v3027_v7  ;;  %v6760_v6 = vrot.slane %v3090_v52, %v7628_v13 }
 0x861   :  { %3033 = vst.msk [vmem:[#allocation3 + $0x38] sm:$0xff] %vm3031_vm4, %v3029_v23 }
 0x867   :  { %v3046_v55 = vld [vmem:[#allocation3] sm:$0xff] }
 0x868   :  { %v3054_v30 = vpack.c.bf16 %v3047_v33, %v3046_v55  ;;  %v3053_v0 = vld [vmem:[#allocation3 + $0x38] sm:$0xff] }
 0x869   :  { %v3057_v12 = vpack.c.bf16 %v3053_v0, %v3052_v5 }
 0x86a   :  { %3305 = vmatmul.mubr.bf16.vlgmr.msra.gmra.mrb[48].mxu0 %v3054_v30  ;;  %3378 = vmatmul.mubr.bf16.vlgmr.msra.gmra.mrb[48].mxu1 %v3054_v30 }
 0x86b   :  { %3655 = vmatpush1.bf16.msra.mxu0 %v6599_v56  ;;  %3696 = vmatpush1.bf16.msra.mxu1 %v6601_v31 }
 0x86c   :  { %3656 = vmatprep.subr.bf16.mxu0 %v6603_v9  ;;  %3697 = vmatprep.subr.bf16.mxu1 %v6605_v11 }
 0x86d   :  { %3314 = vmatprep.mubr.bf16.mxu0 %v7555_v35  ;;  %3387 = vmatprep.mubr.bf16.mxu1 %v7555_v35 }
 0x86f   :  { %3657 = vmatpush1.bf16.msra.mxu0 %v6609_v28  ;;  %3698 = vmatpush1.bf16.msra.mxu1 %v6611_v26 }
 0x870   :  { %3658 = vmatprep.subr.bf16.mxu0 %v6615_v24  ;;  %3699 = vmatprep.subr.bf16.mxu1 %v6617_v44 }
 0x872   :  { %3315 = vmatmul.mubr.bf16.gmra.mrb[52].mxu0 %v3055_v48  ;;  %3388 = vmatmul.mubr.bf16.gmra.mrb[52].mxu1 %v3055_v48 }
 0x873   :  { %3659 = vmatpush1.bf16.msra.mxu0 %v6623_v32  ;;  %3700 = vmatpush1.bf16.msra.mxu1 %v6625_v27 }
 0x874   :  { %3660 = vmatprep.subr.bf16.mxu0 %v6629_v61  ;;  %3701 = vmatprep.subr.bf16.mxu1 %v6631_v40 }
 0x875   :  { %3324 = vmatprep.mubr.bf16.mxu0 %v7555_v35  ;;  %3397 = vmatprep.mubr.bf16.mxu1 %v7555_v35 }
 0x877   :  { %3661 = vmatpush1.bf16.msra.mxu0 %v6635_v41  ;;  %3702 = vmatpush1.bf16.msra.mxu1 %v6637_v42 }
 0x878   :  { %3662 = vmatprep.subr.bf16.mxu0 %v6641_v43  ;;  %3703 = vmatprep.subr.bf16.mxu1 %v6643_v46 }
 0x87a   :  { %3325 = vmatmul.mubr.bf16.gmra.mrb[56].mxu0 %v3056_v57  ;;  %3398 = vmatmul.mubr.bf16.gmra.mrb[56].mxu1 %v3056_v57 }
 0x87b   :  { %3663 = vmatpush1.bf16.msra.mxu0 %v6649_v53  ;;  %3704 = vmatpush1.bf16.msra.mxu1 %v6651_v54 }
 0x87c   :  { %3664 = vmatprep.subr.bf16.mxu0 %v6655_v58  ;;  %3705 = vmatprep.subr.bf16.mxu1 %v6657_v59 }
 0x87d   :  { %3334 = vmatprep.mubr.bf16.mxu0 %v7555_v35  ;;  %3407 = vmatprep.mubr.bf16.mxu1 %v7555_v35 }
 0x87f   :  { %3665 = vmatpush1.bf16.msra.mxu0 %v6661_v60  ;;  %3706 = vmatpush1.bf16.msra.mxu1 %v6663_v62 }
 0x880   :  { %3666 = vmatprep.subr.bf16.mxu0 %v6667_v47  ;;  %3707 = vmatprep.subr.bf16.mxu1 %v6669_v18 }
 0x882   :  { %3335 = vmatmul.mubr.bf16.gmra.mrb[60].mxu0 %v3057_v12  ;;  %3408 = vmatmul.mubr.bf16.gmra.mrb[60].mxu1 %v3057_v12 }
 0x883   :  { %3667 = vmatpush1.bf16.msra.mxu0 %v6675_v17  ;;  %3708 = vmatpush1.bf16.msra.mxu1 %v6677_v14 }
 0x884   :  { %3668 = vmatprep.subr.bf16.mxu0 %v6681_v19  ;;  %3709 = vmatprep.subr.bf16.mxu1 %v6683_v25 }
 0x885   :  { %3686 = vmatprep.mubr.bf16.mxu0 %v7555_v35  ;;  %3727 = vmatprep.mubr.bf16.mxu1 %v7555_v35 }
 0x887   :  { %3669 = vmatpush1.bf16.msra.mxu0 %v6687_v16  ;;  %3710 = vmatpush1.bf16.msra.mxu1 %v6689_v51 }
 0x888   :  { %3771 = vmatprep.subr.bf16.mxu0 %v6574_v38  ;;  %3812 = vmatprep.subr.bf16.mxu1 %v6576_v39 }
 0x88a   :  { %3687 = vmatmul.mubr.bf16.vlgmr.msra.gmra.mrb[64].mxu0 %v7555_v35  ;;  %3728 = vmatmul.mubr.bf16.vlgmr.msra.gmra.mrb[64].mxu1 %v7555_v35 }
 0x88b   :  { %3772 = vmatpush1.bf16.msra.mxu0 %v6599_v56  ;;  %3813 = vmatpush1.bf16.msra.mxu1 %v6601_v31 }
 0x88c   :  { %3773 = vmatprep.subr.bf16.mxu0 %v6603_v9  ;;  %3814 = vmatprep.subr.bf16.mxu1 %v6605_v11 }
 0x88d   :  { %3803 = vmatprep.mubr.bf16.mxu0 %v7555_v35  ;;  %3844 = vmatprep.mubr.bf16.mxu1 %v7555_v35 }
 0x88f   :  { %3774 = vmatpush1.bf16.msra.mxu0 %v6609_v28  ;;  %3815 = vmatpush1.bf16.msra.mxu1 %v6611_v26 }
 0x890   :  { %3775 = vmatprep.subr.bf16.mxu0 %v6615_v24  ;;  %3816 = vmatprep.subr.bf16.mxu1 %v6617_v44 }
 0x893   :  { %3776 = vmatpush1.bf16.msra.mxu0 %v6623_v32  ;;  %3817 = vmatpush1.bf16.msra.mxu1 %v6625_v27 }
 0x894   :  { %3777 = vmatprep.subr.bf16.mxu0 %v6629_v61  ;;  %3818 = vmatprep.subr.bf16.mxu1 %v6631_v40 }
 0x897   :  { %3778 = vmatpush1.bf16.msra.mxu0 %v6635_v41  ;;  %3819 = vmatpush1.bf16.msra.mxu1 %v6637_v42 }
 0x898   :  { %3779 = vmatprep.subr.bf16.mxu0 %v6641_v43  ;;  %3820 = vmatprep.subr.bf16.mxu1 %v6643_v46 }
 0x89b   :  { %3780 = vmatpush1.bf16.msra.mxu0 %v6649_v53  ;;  %3821 = vmatpush1.bf16.msra.mxu1 %v6651_v54 }
 0x89c   :  { %3781 = vmatprep.subr.bf16.mxu0 %v6655_v58  ;;  %3822 = vmatprep.subr.bf16.mxu1 %v6657_v59 }
 0x89f   :  { %3782 = vmatpush1.bf16.msra.mxu0 %v6661_v60  ;;  %3823 = vmatpush1.bf16.msra.mxu1 %v6663_v62 }
 0x8a0   :  { %3783 = vmatprep.subr.bf16.mxu0 %v6667_v47  ;;  %3824 = vmatprep.subr.bf16.mxu1 %v6669_v18 }
 0x8a3   :  { %3784 = vmatpush1.bf16.msra.mxu0 %v6675_v17  ;;  %3825 = vmatpush1.bf16.msra.mxu1 %v6677_v14 }
 0x8a4   :  { %3785 = vmatprep.subr.bf16.mxu0 %v6681_v19  ;;  %3826 = vmatprep.subr.bf16.mxu1 %v6683_v25 }
 0x8a7   :  { %3786 = vmatpush1.bf16.msra.mxu0 %v6687_v16  ;;  %3827 = vmatpush1.bf16.msra.mxu1 %v6689_v51 }
 0x8a8   :  { %3888 = vmatprep.subr.bf16.mxu0 %v6574_v38  ;;  %3929 = vmatprep.subr.bf16.mxu1 %v6576_v39 }
 0x93d   :  { %v6738_v36 = vpop.f32.mrb[48].mxu0  ;;  %v6740_v3 = vpop.f32.mrb[48].mxu1 }
 0x93e   :  { %v6750_v8 = vpop.f32.mrb[49].mxu0  ;;  %v6752_v45 = vpop.f32.mrb[49].mxu1 }
 0x93f   :  { %v3310_v7 = vpop.f32.mrb[50].mxu0  ;;  %v3383_v23 = vpop.f32.mrb[50].mxu1 }
 0x940   :  { %v6763_v33 = vadd.f32 %v3310_v7, %v6744_v22  ;;  %v6766_v55 = vadd.f32 %v3383_v23, %v6748_v2  ;;  %v3312_v30 = vpop.f32.mrb[51].mxu0  ;;  %v3385_v4 = vpop.f32.mrb[51].mxu1 }
 0x941   :  { %v6769_v21 = vadd.f32 %v3312_v30, %v6756_v1  ;;  %v6772_v48 = vadd.f32 %v3385_v4, %v6760_v6 }
 0x942   :  { %7629 = vst [vmem:[#allocation31_spill] sm:$0xff] %v6766_v55 }
 0x943   :  { %7630 = vst [vmem:[#allocation29_spill] sm:$0xff] %v6769_v21  ;;  %7631 = vst [vmem:[#allocation32_spill] sm:$0xff] %v6772_v48 }
 0x945   :  { %v3316_v49 = vpop.f32.mrb[52].mxu0  ;;  %v3389_v50 = vpop.f32.mrb[52].mxu1 }
 0x946   :  { %v3317_v57 = vadd.f32 %v3316_v49, %v6744_v22  ;;  %v6776_v0 = vadd.f32 %v3389_v50, %v6748_v2  ;;  %v3318_v5 = vpop.f32.mrb[53].mxu0  ;;  %v3391_v12 = vpop.f32.mrb[53].mxu1 }
 0x947   :  { %v6779_v52 = vadd.f32 %v3318_v5, %v6756_v1  ;;  %v6782_v10 = vadd.f32 %v3391_v12, %v6760_v6  ;;  %v3320_v63 = vpop.f32.mrb[54].mxu0  ;;  %v3393_v37 = vpop.f32.mrb[54].mxu1 }
 0x948   :  { %v3321_v15 = vadd.f32 %v3320_v63, %v6744_v22  ;;  %v6786_v13 = vadd.f32 %v3393_v37, %v6748_v2  ;;  %v3322_v7 = vpop.f32.mrb[55].mxu0  ;;  %v3395_v23 = vpop.f32.mrb[55].mxu1 }
 0x949   :  { %7632 = vst [vmem:[#allocation30_spill] sm:$0xff] %v6779_v52  ;;  %7633 = vst [vmem:[#allocation33_spill] sm:$0xff] %v6782_v10  ;;  %v6789_v30 = vadd.f32 %v3322_v7, %v6756_v1  ;;  %v6792_v4 = vadd.f32 %v3395_v23, %v6760_v6 }
 0x94a   :  { %7634 = vst [vmem:[#allocation38_spill] sm:$0xff] %v6786_v13 }
 0x94b   :  { %7635 = vst [vmem:[#allocation39_spill] sm:$0xff] %v6789_v30  ;;  %7636 = vst [vmem:[#allocation34_spill] sm:$0xff] %v6792_v4 }
 0x94d   :  { %v3326_v49 = vpop.f32.mrb[56].mxu0  ;;  %v3399_v50 = vpop.f32.mrb[56].mxu1 }
 0x94e   :  { %v3327_v5 = vadd.f32 %v3326_v49, %v6744_v22  ;;  %v6796_v12 = vadd.f32 %v3399_v50, %v6748_v2  ;;  %v3328_v39 = vpop.f32.mrb[57].mxu0  ;;  %v3401_v63 = vpop.f32.mrb[57].mxu1 }
 0x94f   :  { %v6799_v37 = vadd.f32 %v3328_v39, %v6756_v1  ;;  %v6802_v38 = vadd.f32 %v3401_v63, %v6760_v6  ;;  %v3330_v7 = vpop.f32.mrb[58].mxu0  ;;  %v3403_v51 = vpop.f32.mrb[58].mxu1 }
 0x950   :  { %7637 = vst [vmem:[#allocation25_spill] sm:$0xff] %v6796_v12  ;;  %v3331_v23 = vadd.f32 %v3330_v7, %v6744_v22  ;;  %v6806_v16 = vadd.f32 %v3403_v51, %v6748_v2  ;;  %v3332_v25 = vpop.f32.mrb[59].mxu0  ;;  %v3405_v49 = vpop.f32.mrb[59].mxu1  ;;  %v6810_v50 = vsel %vm141_vm0, %v3321_v15, %v3327_v5 }
 0x951   :  { %7638 = vst [vmem:[#allocation36_spill] sm:$0xff] %v6799_v37  ;;  %7639 = vst [vmem:[#allocation26_spill] sm:$0xff] %v6802_v38  ;;  %v6817_v63 = vadd.f32 %v3332_v25, %v6756_v1  ;;  %v6820_v14 = vadd.f32 %v3405_v49, %v6760_v6  ;;  %v6840_v49 = vsel %vm141_vm0, %v3327_v5, %v3321_v15 }
 0x952   :  { %7641 = vst [vmem:[#allocation37_spill] sm:$0xff] %v6810_v50  ;;  %v6832_v50 = vsel %vm141_vm0, %v3317_v57, %v3331_v23  ;;  %7644 = vst [vmem:[#allocation49_spill] sm:$0xff] %v6840_v49  ;;  %v6864_v51 = vsel %vm141_vm0, %v3331_v23, %v3317_v57  ;;  %v3307_v57 = vadd.f32 %v6738_v36, %v6744_v22 }
 0x953   :  { %7642 = vst [vmem:[#allocation27_spill] sm:$0xff] %v6817_v63  ;;  %7643 = vst [vmem:[#allocation16_spill] sm:$0xff] %v6820_v14  ;;  %v6882_v23 = vadd.f32 %v6740_v3, %v6748_v2  ;;  %v6890_v38 = vadd.f32 %v6750_v8, %v6756_v1  ;;  %v6894_v15 = vadd.f32 %v6752_v45, %v6760_v6 }
 0x954   :  { %7645 = vst [vmem:[#allocation41_spill] sm:$0xff] %v6864_v51 }
 0x955   :  { %v3336_v5 = vpop.f32.mrb[60].mxu0  ;;  %v3409_v25 = vpop.f32.mrb[60].mxu1  ;;  %7646 = vst [vmem:[#allocation21_spill] sm:$0xff] %v6882_v23  ;;  %7648 = vst [vmem:[#allocation22_spill] sm:$0xff] %v6890_v38 }
 0x956   :  { %v3337_v7 = vadd.f32 %v3336_v5, %v6744_v22  ;;  %v6886_v51 = vadd.f32 %v3409_v25, %v6748_v2  ;;  %v3338_v39 = vpop.f32.mrb[61].mxu0  ;;  %v3411_v49 = vpop.f32.mrb[61].mxu1  ;;  %7649 = vst [vmem:[#allocation45_spill] sm:$0xff] %v6894_v15 }
 0x957   :  { %v6897_v36 = vadd.f32 %v3338_v39, %v6756_v1  ;;  %v6900_v3 = vadd.f32 %v3411_v49, %v6760_v6  ;;  %v3340_v5 = vpop.f32.mrb[62].mxu0  ;;  %v3413_v4 = vpop.f32.mrb[62].mxu1 }
 0x958   :  { %7647 = vst [vmem:[#allocation44_spill] sm:$0xff] %v6886_v51  ;;  %v3341_v25 = vadd.f32 %v3340_v5, %v6744_v22  ;;  %v6904_v37 = vadd.f32 %v3413_v4, %v6748_v2  ;;  %v3342_v30 = vpop.f32.mrb[63].mxu0  ;;  %v3415_v8 = vpop.f32.mrb[63].mxu1  ;;  %v6909_v45 = vsel %vm141_vm0, %v6763_v33, %v3337_v7 }
 0x959   :  { %7650 = vst [vmem:[#allocation24_spill] sm:$0xff] %v6897_v36  ;;  %7651 = vst [vmem:[#allocation50_spill] sm:$0xff] %v6900_v3  ;;  %v6916_v49 = vadd.f32 %v3342_v30, %v6756_v1  ;;  %v6919_v22 = vadd.f32 %v3415_v8, %v6760_v6  ;;  %v6938_v6 = vsel %vm141_vm0, %v3337_v7, %v6763_v33 }
 0x95a   :  { %7652 = vst [vmem:[#allocation46_spill] sm:$0xff] %v6904_v37  ;;  %v3458_v5 = vsel %vm141_vm0, %v3307_v57, %v3341_v25  ;;  %v3460_v1 = vsel %vm5971_vm1, %v6882_v23, %v6904_v37  ;;  %7655 = vst [vmem:[#allocation42_spill] sm:$0xff] %v6938_v6  ;;  %v6962_v30 = vsel %vm141_vm0, %v3341_v25, %v3307_v57 }
 0x95b   :  { %7653 = vst [vmem:[#allocation40_spill] sm:$0xff] %v6916_v49  ;;  %7654 = vst [vmem:[#allocation47_spill] sm:$0xff] %v6919_v22  ;;  %v3459_v8 = vsel %vm5975_vm2, %v6890_v38, %v6916_v49  ;;  %v3461_v4 = vsel %vm5979_vm3, %v6894_v15, %v6919_v22 }
 0x95c   :  { %7656 = vst [vmem:[#allocation48_spill] sm:$0xff] %v6962_v30 }
 0x95d   :  { %v3688_v7 = vpop.f32.mrb[64].mxu0  ;;  %v3729_v6 = vpop.f32.mrb[64].mxu1 }
 0x95e   :  { %v3736_v19 = vadd.f32 %v3688_v7, %v3458_v5  ;;  %v3738_v57 = vadd.f32 %v3729_v6, %v3460_v1  ;;  %v3690_v25 = vpop.f32.mrb[65].mxu0  ;;  %v3731_v30 = vpop.f32.mrb[65].mxu1 }
 0x95f   :  { %v3737_v12 = vadd.f32 %v3690_v25, %v3459_v8  ;;  %v3739_v13 = vadd.f32 %v3731_v30, %v3461_v4  ;;  %v3692_v14 = vpop.f32.mrb[66].mxu0  ;;  %v3733_v2 = vpop.f32.mrb[66].mxu1  ;;  %v7664_v30 = vld [vmem:[#allocation18_spill] sm:$0xff]  ;;  %v7665_v25 = vsel %vm5971_vm1, %v6766_v55, %v6886_v51 }
 0x960   :  { %v3740_v23 = vmul.f32 0.5, %v3736_v19  ;;  %v3693_v37 = vpop.f32.mrb[67].mxu0  ;;  %v3734_v10 = vpop.f32.mrb[67].mxu1  ;;  %v3742_v39 = vmul.f32 0.5, %v3738_v57  ;;  %v7663_v2 = vld [vmem:[#allocation17_spill] sm:$0xff] }
 0x961   :  { %v3741_v63 = vmul.f32 0.5, %v3737_v12 }
 0x962   :  { %5393 = vtanh.f32 %v3740_v23  ;;  %v7660_v23 = vld [vmem:[#allocation15_spill] sm:$0xff] }
 0x963   :  { %5395 = vtanh.f32 %v3741_v63  ;;  %v7658_v63 = vld [vmem:[#allocation19_spill] sm:$0xff] }
 0x964   :  { %5397 = vtanh.f32 %v3739_v13 }
 0x965   :  { %5399 = vtanh.f32 %v3742_v39  ;;  %v7661_v39 = vld [vmem:[#allocation35_spill] sm:$0xff] }
 0x96c   :  { %v5394_v38 = vpop.eup %5393 }
 0x96d   :  { %v3746_v33 = vmul.f32 0.5, %v5394_v38  ;;  %v5396_v15 = vpop.eup %5395 }
 0x96e   :  { %v3747_v5 = vmul.f32 0.5, %v5396_v15  ;;  %v5398_v1 = vpop.eup %5397  ;;  %v7659_v15 = vld [vmem:[#allocation14_spill] sm:$0xff] }
 0x96f   :  { %v3749_v22 = vadd.f32 0.5, %v3746_v33  ;;  %v5400_v19 = vpop.eup %5399 }
 0x970   :  { %v3750_v6 = vadd.f32 0.5, %v3747_v5  ;;  %v3748_v10 = vmul.f32 0.5, %v5400_v19  ;;  %v7667_v19 = vsel %vm5979_vm3, %v6772_v48, %v6900_v3 }
 0x971   :  { %v3754_v8 = vmul.f32 %v5398_v1, %v3749_v22  ;;  %v7662_v22 = vld [vmem:[#allocation28_spill] sm:$0xff] }
 0x972   :  { %v3753_v4 = vmul.f32 0.0, %v3750_v6  ;;  %v3751_v12 = vadd.f32 0.5, %v3748_v10 }
 0x974   :  { %v6976_v14 = vadd.f32 %v3754_v8, %v3753_v4  ;;  %v7666_v8 = vsel %vm5975_vm2, %v6769_v21, %v6897_v36 }
 0x976   :  { %5401 = vtanh.f32 %v6976_v14 }
 0x980   :  { %v5402_v37 = vpop.eup %5401 }
 0x981   :  { %v6979_v13 = vmul.f32 %v5402_v37, %v3751_v12 }
 0x983   :  { %7657 = vst [vmem:[#allocation43_spill] sm:$0xff] %v6979_v13  ;;  %v3770_v38 = vpack.c.bf16 %v6979_v13, %v6979_v13 }
 0x985   :  { %3804 = vmatmul.mubr.bf16.vlgmr.msra.gmra.mrb[68].mxu0 %v3770_v38  ;;  %3845 = vmatmul.mubr.bf16.vlgmr.msra.gmra.mrb[68].mxu1 %v3770_v38 }
 0x986   :  { %3889 = vmatpush1.bf16.msra.mxu0 %v6599_v56  ;;  %3930 = vmatpush1.bf16.msra.mxu1 %v6601_v31 }
 0x987   :  { %3890 = vmatprep.subr.bf16.mxu0 %v6603_v9  ;;  %3931 = vmatprep.subr.bf16.mxu1 %v6605_v11 }
 0x988   :  { %3920 = vmatprep.mubr.bf16.mxu0 %v7555_v35  ;;  %3961 = vmatprep.mubr.bf16.mxu1 %v7555_v35 }
 0x98a   :  { %3891 = vmatpush1.bf16.msra.mxu0 %v6609_v28  ;;  %3932 = vmatpush1.bf16.msra.mxu1 %v6611_v26 }
 0x98b   :  { %3892 = vmatprep.subr.bf16.mxu0 %v6615_v24  ;;  %3933 = vmatprep.subr.bf16.mxu1 %v6617_v44 }
 0x98e   :  { %3893 = vmatpush1.bf16.msra.mxu0 %v6623_v32  ;;  %3934 = vmatpush1.bf16.msra.mxu1 %v6625_v27 }
 0x98f   :  { %3894 = vmatprep.subr.bf16.mxu0 %v6629_v61  ;;  %3935 = vmatprep.subr.bf16.mxu1 %v6631_v40 }
 0x992   :  { %3895 = vmatpush1.bf16.msra.mxu0 %v6635_v41  ;;  %3936 = vmatpush1.bf16.msra.mxu1 %v6637_v42 }
 0x993   :  { %3896 = vmatprep.subr.bf16.mxu0 %v6641_v43  ;;  %3937 = vmatprep.subr.bf16.mxu1 %v6643_v46 }
 0x996   :  { %3897 = vmatpush1.bf16.msra.mxu0 %v6649_v53  ;;  %3938 = vmatpush1.bf16.msra.mxu1 %v6651_v54 }
 0x997   :  { %3898 = vmatprep.subr.bf16.mxu0 %v6655_v58  ;;  %3939 = vmatprep.subr.bf16.mxu1 %v6657_v59 }
 0x99a   :  { %3899 = vmatpush1.bf16.msra.mxu0 %v6661_v60  ;;  %3940 = vmatpush1.bf16.msra.mxu1 %v6663_v62 }
 0x99b   :  { %3900 = vmatprep.subr.bf16.mxu0 %v6667_v47  ;;  %3941 = vmatprep.subr.bf16.mxu1 %v6669_v18 }
 0x99e   :  { %3901 = vmatpush1.bf16.msra.mxu0 %v6675_v17  ;;  %3942 = vmatpush1.bf16.msra.mxu1 %v7658_v63 }
 0x99f   :  { %3902 = vmatprep.subr.bf16.mxu0 %v7659_v15  ;;  %3943 = vmatprep.subr.bf16.mxu1 %v7660_v23 }
 0x9a2   :  { %3903 = vmatpush1.bf16.msra.mxu0 %v7661_v39  ;;  %3944 = vmatpush1.bf16.msra.mxu1 %v7662_v22 }
 0x9a3   :  { %4005 = vmatprep.subr.bf16.mxu0 %v7663_v2  ;;  %4046 = vmatprep.subr.bf16.mxu1 %v7664_v30 }
 0xa58   :  { %v3805_v33 = vpop.f32.mrb[68].mxu0  ;;  %v3846_v7 = vpop.f32.mrb[68].mxu1 }
 0xa59   :  { %v3853_v57 = vadd.f32 %v3805_v33, %v6909_v45  ;;  %v3855_v5 = vadd.f32 %v3846_v7, %v7665_v25  ;;  %v3807_v1 = vpop.f32.mrb[69].mxu0  ;;  %v3848_v6 = vpop.f32.mrb[69].mxu1 }
 0xa5a   :  { %v3854_v4 = vadd.f32 %v3807_v1, %v7666_v8  ;;  %v3856_v45 = vadd.f32 %v3848_v6, %v7667_v19  ;;  %v3809_v10 = vpop.f32.mrb[70].mxu0  ;;  %v3850_v12 = vpop.f32.mrb[70].mxu1 }
 0xa5b   :  { %v3857_v37 = vmul.f32 0.5, %v3853_v57  ;;  %v3810_v38 = vpop.f32.mrb[71].mxu0  ;;  %v3851_v33 = vpop.f32.mrb[71].mxu1  ;;  %v3859_v25 = vmul.f32 0.5, %v3855_v5 }
 0xa5c   :  { %v3858_v7 = vmul.f32 0.5, %v3854_v4 }
 0xa5d   :  { %5403 = vtanh.f32 %v3857_v37  ;;  %v7669_v37 = vld [vmem:[#allocation27_spill] sm:$0xff] }
 0xa5e   :  { %5405 = vtanh.f32 %v3858_v7  ;;  %v7670_v38 = vsel %vm5975_vm2, %v6779_v52, %v7669_v37  ;;  %v7671_v7 = vld [vmem:[#allocation33_spill] sm:$0xff] }
 0xa5f   :  { %5407 = vtanh.f32 %v3856_v45 }
 0xa60   :  { %5409 = vtanh.f32 %v3859_v25  ;;  %v7672_v25 = vld [vmem:[#allocation16_spill] sm:$0xff] }
 0xa67   :  { %v5404_v13 = vpop.eup %5403 }
 0xa68   :  { %v3863_v49 = vmul.f32 0.5, %v5404_v13  ;;  %v5406_v21 = vpop.eup %5405 }
 0xa69   :  { %v3864_v8 = vmul.f32 0.5, %v5406_v21  ;;  %v5408_v36 = vpop.eup %5407 }
 0xa6a   :  { %v3866_v1 = vadd.f32 0.5, %v3863_v49  ;;  %v5410_v57 = vpop.eup %5409 }
 0xa6b   :  { %v3867_v55 = vadd.f32 0.5, %v3864_v8  ;;  %v3865_v4 = vmul.f32 0.5, %v5410_v57 }
 0xa6c   :  { %v3871_v48 = vmul.f32 %v5408_v36, %v3866_v1  ;;  %v7668_v36 = vsel %vm5971_vm1, %v6776_v0, %v6806_v16  ;;  %v7673_v1 = vsel %vm5979_vm3, %v7671_v7, %v7672_v25 }
 0xa6d   :  { %v3870_v6 = vmul.f32 %v3867_v55, %v6976_v14  ;;  %v3868_v10 = vadd.f32 0.5, %v3865_v4 }
 0xa6f   :  { %v7034_v19 = vadd.f32 %v3871_v48, %v3870_v6 }
 0xa71   :  { %5411 = vtanh.f32 %v7034_v19 }
 0xa7b   :  { %v5412_v45 = vpop.eup %5411 }
 0xa7c   :  { %v3874_v5 = vmul.f32 %v5412_v45, %v3868_v10 }
 0xa7e   :  { %v3887_v12 = vpack.c.bf16 %v3874_v5, %v3874_v5 }
 0xa80   :  { %3921 = vmatmul.mubr.bf16.vlgmr.msra.gmra.mrb[72].mxu0 %v3887_v12  ;;  %3962 = vmatmul.mubr.bf16.vlgmr.msra.gmra.mrb[72].mxu1 %v3887_v12 }
 0xa81   :  { %4006 = vmatpush1.bf16.msra.mxu0 %v6599_v56  ;;  %4047 = vmatpush1.bf16.msra.mxu1 %v6601_v31 }
 0xa82   :  { %4007 = vmatprep.subr.bf16.mxu0 %v6603_v9  ;;  %4048 = vmatprep.subr.bf16.mxu1 %v6605_v11 }
 0xa83   :  { %4037 = vmatprep.mubr.bf16.mxu0 %v7555_v35  ;;  %4078 = vmatprep.mubr.bf16.mxu1 %v7555_v35 }
 0xa85   :  { %4008 = vmatpush1.bf16.msra.mxu0 %v6609_v28  ;;  %4049 = vmatpush1.bf16.msra.mxu1 %v6611_v26 }
 0xa86   :  { %4009 = vmatprep.subr.bf16.mxu0 %v6615_v24  ;;  %4050 = vmatprep.subr.bf16.mxu1 %v6617_v44 }
 0xa89   :  { %4010 = vmatpush1.bf16.msra.mxu0 %v6623_v32  ;;  %4051 = vmatpush1.bf16.msra.mxu1 %v6625_v27 }
 0xa8a   :  { %4011 = vmatprep.subr.bf16.mxu0 %v6629_v61  ;;  %4052 = vmatprep.subr.bf16.mxu1 %v6631_v40 }
 0xa8d   :  { %4012 = vmatpush1.bf16.msra.mxu0 %v6635_v41  ;;  %4053 = vmatpush1.bf16.msra.mxu1 %v6637_v42 }
 0xa8e   :  { %4013 = vmatprep.subr.bf16.mxu0 %v6641_v43  ;;  %4054 = vmatprep.subr.bf16.mxu1 %v6643_v46 }
 0xa91   :  { %4014 = vmatpush1.bf16.msra.mxu0 %v6649_v53  ;;  %4055 = vmatpush1.bf16.msra.mxu1 %v6651_v54 }
 0xa92   :  { %4015 = vmatprep.subr.bf16.mxu0 %v6655_v58  ;;  %4056 = vmatprep.subr.bf16.mxu1 %v6657_v59 }
 0xa95   :  { %4016 = vmatpush1.bf16.msra.mxu0 %v6661_v60  ;;  %4057 = vmatpush1.bf16.msra.mxu1 %v6663_v62 }
 0xa96   :  { %4017 = vmatprep.subr.bf16.mxu0 %v6667_v47  ;;  %4058 = vmatprep.subr.bf16.mxu1 %v6669_v18 }
 0xa99   :  { %4018 = vmatpush1.bf16.msra.mxu0 %v6675_v17  ;;  %4059 = vmatpush1.bf16.msra.mxu1 %v7658_v63 }
 0xa9a   :  { %4019 = vmatprep.subr.bf16.mxu0 %v7659_v15  ;;  %4060 = vmatprep.subr.bf16.mxu1 %v7660_v23 }
 0xa9d   :  { %4020 = vmatpush1.bf16.msra.mxu0 %v7661_v39  ;;  %4061 = vmatpush1.bf16.msra.mxu1 %v7662_v22 }
 0xa9e   :  { %4114 = vmatprep.subr.bf16.mxu0 %v7663_v2  ;;  %4155 = vmatprep.subr.bf16.mxu1 %v7664_v30 }
 0xb53   :  { %v3922_v55 = vpop.f32.mrb[72].mxu0  ;;  %v3963_v21 = vpop.f32.mrb[72].mxu1 }
 0xb54   :  { %v3970_v48 = vadd.f32 %v3922_v55, %v6832_v50  ;;  %v3972_v49 = vadd.f32 %v3963_v21, %v7668_v36  ;;  %v3924_v14 = vpop.f32.mrb[73].mxu0  ;;  %v3965_v13 = vpop.f32.mrb[73].mxu1 }
 0xb55   :  { %v3971_v33 = vadd.f32 %v3924_v14, %v7670_v38  ;;  %v3973_v50 = vadd.f32 %v3965_v13, %v7673_v1  ;;  %v3926_v8 = vpop.f32.mrb[74].mxu0  ;;  %v3967_v6 = vpop.f32.mrb[74].mxu1 }
 0xb56   :  { %v3974_v57 = vmul.f32 0.5, %v3970_v48  ;;  %v3927_v4 = vpop.f32.mrb[75].mxu0  ;;  %v3968_v10 = vpop.f32.mrb[75].mxu1  ;;  %v3976_v5 = vmul.f32 0.5, %v3972_v49 }
 0xb57   :  { %v3975_v45 = vmul.f32 0.5, %v3971_v33  ;;  %v7675_v4 = vld [vmem:[#allocation38_spill] sm:$0xff]  ;;  %v7676_v10 = vld [vmem:[#allocation25_spill] sm:$0xff] }
 0xb58   :  { %5413 = vtanh.f32 %v3974_v57 }
 0xb59   :  { %5415 = vtanh.f32 %v3975_v45  ;;  %v7677_v45 = vsel %vm5971_vm1, %v7675_v4, %v7676_v10 }
 0xb5a   :  { %5417 = vtanh.f32 %v3973_v50 }
 0xb5b   :  { %5419 = vtanh.f32 %v3976_v5 }
 0xb62   :  { %v5414_v12 = vpop.eup %5413 }
 0xb63   :  { %v3980_v55 = vmul.f32 0.5, %v5414_v12  ;;  %v5416_v21 = vpop.eup %5415 }
 0xb64   :  { %v3981_v14 = vmul.f32 0.5, %v5416_v21  ;;  %v5418_v38 = vpop.eup %5417  ;;  %v7678_v21 = vld [vmem:[#allocation39_spill] sm:$0xff] }
 0xb65   :  { %v3983_v36 = vadd.f32 0.5, %v3980_v55  ;;  %v5420_v48 = vpop.eup %5419 }
 0xb66   :  { %v3984_v3 = vadd.f32 0.5, %v3981_v14  ;;  %v3982_v33 = vmul.f32 0.5, %v5420_v48 }
 0xb67   :  { %v3988_v51 = vmul.f32 %v5418_v38, %v3983_v36  ;;  %v7679_v36 = vld [vmem:[#allocation36_spill] sm:$0xff]  ;;  %v7682_v38 = vld [vmem:[#allocation26_spill] sm:$0xff] }
 0xb68   :  { %v3987_v13 = vmul.f32 %v3984_v3, %v7034_v19  ;;  %v3985_v8 = vadd.f32 0.5, %v3982_v33  ;;  %v7674_v19 = vld [vmem:[#allocation37_spill] sm:$0xff]  ;;  %v7680_v14 = vsel %vm5975_vm2, %v7678_v21, %v7679_v36 }
 0xb6a   :  { %v7088_v1 = vadd.f32 %v3988_v51, %v3987_v13 }
 0xb6c   :  { %5421 = vtanh.f32 %v7088_v1 }
 0xb76   :  { %v5422_v50 = vpop.eup %5421 }
 0xb77   :  { %v3991_v49 = vmul.f32 %v5422_v50, %v3985_v8 }
 0xb79   :  { %v4004_v6 = vpack.c.bf16 %v3991_v49, %v3991_v49 }
 0xb7b   :  { %4038 = vmatmul.mubr.bf16.vlgmr.msra.gmra.mrb[76].mxu0 %v4004_v6  ;;  %4079 = vmatmul.mubr.bf16.vlgmr.msra.gmra.mrb[76].mxu1 %v4004_v6 }
 0xb7c   :  { %4115 = vmatpush1.bf16.msra.mxu0 %v6599_v56  ;;  %4156 = vmatpush1.bf16.msra.mxu1 %v6601_v31 }
 0xb7d   :  { %4116 = vmatprep.subr.bf16.mxu0 %v6603_v9  ;;  %4157 = vmatprep.subr.bf16.mxu1 %v6605_v11 }
 0xb7e   :  { %4146 = vmatprep.mubr.bf16.mxu0 %v7555_v35  ;;  %4187 = vmatprep.mubr.bf16.mxu1 %v7555_v35 }
 0xb80   :  { %4117 = vmatpush1.bf16.msra.mxu0 %v6609_v28  ;;  %4158 = vmatpush1.bf16.msra.mxu1 %v6611_v26 }
 0xb81   :  { %4118 = vmatprep.subr.bf16.mxu0 %v6615_v24  ;;  %4159 = vmatprep.subr.bf16.mxu1 %v6617_v44 }
 0xb84   :  { %4119 = vmatpush1.bf16.msra.mxu0 %v6623_v32  ;;  %4160 = vmatpush1.bf16.msra.mxu1 %v6625_v27 }
 0xb85   :  { %4120 = vmatprep.subr.bf16.mxu0 %v6629_v61  ;;  %4161 = vmatprep.subr.bf16.mxu1 %v6631_v40 }
 0xb88   :  { %4121 = vmatpush1.bf16.msra.mxu0 %v6635_v41  ;;  %4162 = vmatpush1.bf16.msra.mxu1 %v6637_v42 }
 0xb89   :  { %4122 = vmatprep.subr.bf16.mxu0 %v6641_v43  ;;  %4163 = vmatprep.subr.bf16.mxu1 %v6643_v46 }
 0xb8c   :  { %4123 = vmatpush1.bf16.msra.mxu0 %v6649_v53  ;;  %4164 = vmatpush1.bf16.msra.mxu1 %v6651_v54 }
 0xb8d   :  { %4124 = vmatprep.subr.bf16.mxu0 %v6655_v58  ;;  %4165 = vmatprep.subr.bf16.mxu1 %v6657_v59 }
 0xb90   :  { %4125 = vmatpush1.bf16.msra.mxu0 %v6661_v60  ;;  %4166 = vmatpush1.bf16.msra.mxu1 %v6663_v62 }
 0xb91   :  { %4126 = vmatprep.subr.bf16.mxu0 %v6667_v47  ;;  %4167 = vmatprep.subr.bf16.mxu1 %v6669_v18 }
 0xb94   :  { %4127 = vmatpush1.bf16.msra.mxu0 %v6675_v17  ;;  %4168 = vmatpush1.bf16.msra.mxu1 %v7658_v63 }
 0xb95   :  { %4128 = vmatprep.subr.bf16.mxu0 %v7659_v15  ;;  %4169 = vmatprep.subr.bf16.mxu1 %v7660_v23 }
 0xb98   :  { %4129 = vmatpush1.bf16.msra.mxu0 %v7661_v39  ;;  %4170 = vmatpush1.bf16.msra.mxu1 %v7662_v22 }
 0xb99   :  { %4223 = vmatprep.subr.bf16.mxu0 %v7663_v2  ;;  %4264 = vmatprep.subr.bf16.mxu1 %v7664_v30  ;;  %v7681_v30 = vld [vmem:[#allocation34_spill] sm:$0xff] }
 0xb9a   :  { %v7683_v13 = vsel %vm5979_vm3, %v7681_v30, %v7682_v38 }
 0xc4e   :  { %v4039_v51 = vpop.f32.mrb[76].mxu0  ;;  %v4080_v3 = vpop.f32.mrb[76].mxu1 }
 0xc4f   :  { %v4087_v57 = vadd.f32 %v4039_v51, %v7674_v19  ;;  %v4089_v5 = vadd.f32 %v4080_v3, %v7677_v45  ;;  %v4041_v12 = vpop.f32.mrb[77].mxu0  ;;  %v4082_v55 = vpop.f32.mrb[77].mxu1 }
 0xc50   :  { %v4088_v2 = vadd.f32 %v4041_v12, %v7680_v14  ;;  %v4090_v48 = vadd.f32 %v4082_v55, %v7683_v13  ;;  %v4043_v33 = vpop.f32.mrb[78].mxu0  ;;  %v4084_v8 = vpop.f32.mrb[78].mxu1 }
 0xc51   :  { %v4091_v50 = vmul.f32 0.5, %v4087_v57  ;;  %v4044_v49 = vpop.f32.mrb[79].mxu0  ;;  %v4085_v6 = vpop.f32.mrb[79].mxu1  ;;  %v4093_v3 = vmul.f32 0.5, %v4089_v5 }
 0xc52   :  { %v4092_v51 = vmul.f32 0.5, %v4088_v2  ;;  %v7203_v6 = vld [vmem:[#allocation9] ss:$16 sps:$4 sm:$0xff]  }
 0xc53   :  { %5423 = vtanh.f32 %v4091_v50 }
 0xc54   :  { %5425 = vtanh.f32 %v4092_v51  ;;  %v7206_v51 = vld [vmem:[#allocation9 + $0x8] ss:$16 sps:$4 sm:$0xff]  }
 0xc55   :  { %5427 = vtanh.f32 %v4090_v48 }
 0xc56   :  { %5429 = vtanh.f32 %v4093_v3  ;;  %v7209_v3 = vld [vmem:[#allocation9 + $0x24] ss:$16 sps:$4 sm:$0xff]  }
 0xc5d   :  { %v5424_v19 = vpop.eup %5423 }
 0xc5e   :  { %v4097_v45 = vmul.f32 0.5, %v5424_v19  ;;  %v5426_v7 = vpop.eup %5425  ;;  %v7212_v19 = vld [vmem:[#allocation9 + $0x2c] ss:$16 sps:$4 sm:$0xff]  }
 0xc5f   :  { %v4098_v14 = vmul.f32 0.5, %v5426_v7  ;;  %v5428_v25 = vpop.eup %5427 }
 0xc60   :  { %v4100_v12 = vadd.f32 0.5, %v4097_v45  ;;  %v5430_v57 = vpop.eup %5429  ;;  %v7217_v45 = vld [vmem:[#allocation9 + $0x20] ss:$16 sps:$4 sm:$0xff]  }
 0xc61   :  { %v4101_v52 = vadd.f32 0.5, %v4098_v14  ;;  %v4099_v2 = vmul.f32 0.5, %v5430_v57  ;;  %v7223_v14 = vld [vmem:[#allocation9 + $0x44] ss:$16 sps:$4 sm:$0xff]   ;;  %v7232_v57 = vld [vmem:[#allocation9 + $0x48] ss:$16 sps:$4 sm:$0xff]  }
 0xc62   :  { %v4105_v37 = vmul.f32 %v5428_v25, %v4100_v12  ;;  %v7220_v12 = vld [vmem:[#allocation9 + $0x28] ss:$16 sps:$4 sm:$0xff]  }
 0xc63   :  { %v4104_v55 = vmul.f32 %v4101_v52, %v7088_v1  ;;  %v4102_v33 = vadd.f32 0.5, %v4099_v2  ;;  %v7235_v2 = vld [vmem:[#allocation9 + $0x64] ss:$16 sps:$4 sm:$0xff]  }
 0xc65   :  { %v7142_v13 = vadd.f32 %v4105_v37, %v4104_v55  ;;  %v7226_v55 = vld [vmem:[#allocation9 + $0x4c] ss:$16 sps:$4 sm:$0xff]  }
 0xc67   :  { %5431 = vtanh.f32 %v7142_v13 }
 0xc71   :  { %v5432_v48 = vpop.eup %5431 }
 0xc72   :  { %v4108_v5 = vmul.f32 %v5432_v48, %v4102_v33  ;;  %v7238_v33 = vld [vmem:[#allocation9 + $0x6c] ss:$16 sps:$4 sm:$0xff]   ;;  %v7241_v48 = vld [vmem:[#allocation9 + $0x60] ss:$16 sps:$4 sm:$0xff]  }
 0xc74   :  { %v4113_v8 = vpack.c.bf16 %v4108_v5, %v4108_v5  ;;  %v7244_v5 = vld [vmem:[#allocation9 + $0x68] ss:$16 sps:$4 sm:$0xff]  }
 0xc76   :  { %4147 = vmatmul.mubr.bf16.vlgmr.msra.gmra.mrb[80].mxu0 %v4113_v8  ;;  %4188 = vmatmul.mubr.bf16.vlgmr.msra.gmra.mrb[80].mxu1 %v4113_v8  ;;  %v7247_v8 = vld [vmem:[#allocation9 + $0x84] ss:$16 sps:$4 sm:$0xff]  }
 0xc77   :  { %4224 = vmatpush1.bf16.msra.mxu0 %v6599_v56  ;;  %4265 = vmatpush1.bf16.msra.mxu1 %v6601_v31  ;;  %v7177_v56 = vld [vmem:[#allocation9 + $0x4] ss:$16 sps:$4 sm:$0xff]   ;;  %v7180_v31 = vld [vmem:[#allocation9 + $0xc] ss:$16 sps:$4 sm:$0xff]  }
 0xc78   :  { %4225 = vmatprep.subr.bf16.mxu0 %v6603_v9  ;;  %4266 = vmatprep.subr.bf16.mxu1 %v6605_v11 }
 0xc79   :  { %4255 = vmatprep.mubr.bf16.mxu0 %v7555_v35  ;;  %4296 = vmatprep.mubr.bf16.mxu1 %v7555_v35 }
 0xc7b   :  { %4226 = vmatpush1.bf16.msra.mxu0 %v6609_v28  ;;  %4267 = vmatpush1.bf16.msra.mxu1 %v6611_v26  ;;  %v7684_v28 = vld [vmem:[#allocation49_spill] sm:$0xff] }
 0xc7c   :  { %4227 = vmatprep.subr.bf16.mxu0 %v6615_v24  ;;  %4268 = vmatprep.subr.bf16.mxu1 %v6617_v44  ;;  %v7685_v24 = vsel %vm5971_vm1, %v7676_v10, %v7675_v4 }
 0xc7f   :  { %4228 = vmatpush1.bf16.msra.mxu0 %v6623_v32  ;;  %4269 = vmatpush1.bf16.msra.mxu1 %v6625_v27 }
 0xc80   :  { %4229 = vmatprep.subr.bf16.mxu0 %v6629_v61  ;;  %4270 = vmatprep.subr.bf16.mxu1 %v6631_v40  ;;  %v7686_v61 = vsel %vm5975_vm2, %v7679_v36, %v7678_v21 }
 0xc83   :  { %4230 = vmatpush1.bf16.msra.mxu0 %v6635_v41  ;;  %4271 = vmatpush1.bf16.msra.mxu1 %v6637_v42  ;;  %v7687_v41 = vsel %vm5979_vm3, %v7682_v38, %v7681_v30 }
 0xc84   :  { %4231 = vmatprep.subr.bf16.mxu0 %v6641_v43  ;;  %4272 = vmatprep.subr.bf16.mxu1 %v6643_v46 }
 0xc87   :  { %4232 = vmatpush1.bf16.msra.mxu0 %v6649_v53  ;;  %4273 = vmatpush1.bf16.msra.mxu1 %v6651_v54 }
 0xc88   :  { %4233 = vmatprep.subr.bf16.mxu0 %v6655_v58  ;;  %4274 = vmatprep.subr.bf16.mxu1 %v6657_v59 }
 0xc8b   :  { %4234 = vmatpush1.bf16.msra.mxu0 %v6661_v60  ;;  %4275 = vmatpush1.bf16.msra.mxu1 %v6663_v62 }
 0xc8c   :  { %4235 = vmatprep.subr.bf16.mxu0 %v6667_v47  ;;  %4276 = vmatprep.subr.bf16.mxu1 %v6669_v18 }
 0xc8f   :  { %4236 = vmatpush1.bf16.msra.mxu0 %v6675_v17  ;;  %4277 = vmatpush1.bf16.msra.mxu1 %v7658_v63 }
 0xc90   :  { %4237 = vmatprep.subr.bf16.mxu0 %v7659_v15  ;;  %4278 = vmatprep.subr.bf16.mxu1 %v7660_v23 }
 0xc93   :  { %4238 = vmatpush1.bf16.msra.mxu0 %v7661_v39  ;;  %4279 = vmatpush1.bf16.msra.mxu1 %v7662_v22 }
 0xc94   :  { %4332 = vmatprep.subr.bf16.mxu0 %v7177_v56  ;;  %4373 = vmatprep.subr.bf16.mxu1 %v7180_v31 }
 0xd49   :  { %v4148_v9 = vpop.f32.mrb[80].mxu0  ;;  %v4189_v11 = vpop.f32.mrb[80].mxu1 }
 0xd4a   :  { %v4196_v26 = vadd.f32 %v4148_v9, %v7684_v28  ;;  %v4198_v44 = vadd.f32 %v4189_v11, %v7685_v24  ;;  %v4150_v32 = vpop.f32.mrb[81].mxu0  ;;  %v4191_v27 = vpop.f32.mrb[81].mxu1  ;;  %v7250_v9 = vld [vmem:[#allocation9 + $0x8c] ss:$16 sps:$4 sm:$0xff]   ;;  %v7253_v11 = vld [vmem:[#allocation9 + $0x80] ss:$16 sps:$4 sm:$0xff]  }
 0xd4b   :  { %v4197_v40 = vadd.f32 %v4150_v32, %v7686_v61  ;;  %v4199_v42 = vadd.f32 %v4191_v27, %v7687_v41  ;;  %v4152_v43 = vpop.f32.mrb[82].mxu0  ;;  %v4193_v46 = vpop.f32.mrb[82].mxu1  ;;  %v7256_v28 = vld [vmem:[#allocation9 + $0x88] ss:$16 sps:$4 sm:$0xff]   ;;  %v7262_v24 = vld [vmem:[#allocation9 + $0xac] ss:$16 sps:$4 sm:$0xff]  }
 0xd4c   :  { %v4200_v53 = vmul.f32 0.5, %v4196_v26  ;;  %v4153_v54 = vpop.f32.mrb[83].mxu0  ;;  %v4194_v58 = vpop.f32.mrb[83].mxu1  ;;  %v4202_v60 = vmul.f32 0.5, %v4198_v44  ;;  %v7259_v26 = vld [vmem:[#allocation9 + $0xa4] ss:$16 sps:$4 sm:$0xff]  }
 0xd4d   :  { %v4201_v59 = vmul.f32 0.5, %v4197_v40  ;;  %v7265_v44 = vld [vmem:[#allocation9 + $0xa0] ss:$16 sps:$4 sm:$0xff]   ;;  %v7268_v32 = vld [vmem:[#allocation9 + $0xa8] ss:$16 sps:$4 sm:$0xff]  }
 0xd4e   :  { %5433 = vtanh.f32 %v4200_v53  ;;  %v7271_v27 = vld [vmem:[#allocation9 + $0xc4] ss:$16 sps:$4 sm:$0xff]   ;;  %v7274_v61 = vld [vmem:[#allocation9 + $0xcc] ss:$16 sps:$4 sm:$0xff]  }
 0xd4f   :  { %5435 = vtanh.f32 %v4201_v59  ;;  %v7694_v53 = vld [vmem:[#allocation33_spill] sm:$0xff] }
 0xd50   :  { %5437 = vtanh.f32 %v4199_v42  ;;  %v7688_v42 = vld [vmem:[#allocation41_spill] sm:$0xff] }
 0xd51   :  { %5439 = vtanh.f32 %v4202_v60 }
 0xd58   :  { %v5434_v62 = vpop.eup %5433 }
 0xd59   :  { %v4206_v47 = vmul.f32 0.5, %v5434_v62  ;;  %v5436_v18 = vpop.eup %5435 }
 0xd5a   :  { %v4207_v37 = vmul.f32 0.5, %v5436_v18  ;;  %v5438_v7 = vpop.eup %5437 }
 0xd5b   :  { %v4209_v52 = vadd.f32 0.5, %v4206_v47  ;;  %v5440_v21 = vpop.eup %5439 }
 0xd5c   :  { %v4210_v25 = vadd.f32 0.5, %v4207_v37  ;;  %v4208_v36 = vmul.f32 0.5, %v5440_v21 }
 0xd5d   :  { %v4214_v1 = vmul.f32 %v5438_v7, %v4209_v52 }
 0xd5e   :  { %v4213_v4 = vmul.f32 %v4210_v25, %v7142_v13  ;;  %v4211_v30 = vadd.f32 0.5, %v4208_v36  ;;  %v7229_v13 = vld [vmem:[#allocation9 + $0x40] ss:$16 sps:$4 sm:$0xff]  }
 0xd60   :  { %v7200_v10 = vadd.f32 %v4214_v1, %v4213_v4 }
 0xd62   :  { %5441 = vtanh.f32 %v7200_v10 }
 0xd6c   :  { %v5442_v38 = vpop.eup %5441 }
 0xd6d   :  { %v4217_v50 = vmul.f32 %v5442_v38, %v4211_v30 }
 0xd6f   :  { %v4222_v49 = vpack.c.bf16 %v4217_v50, %v4217_v50 }
 0xd71   :  { %4256 = vmatmul.mubr.bf16.vlgmr.msra.gmra.mrb[84].mxu0 %v4222_v49  ;;  %4297 = vmatmul.mubr.bf16.vlgmr.msra.gmra.mrb[84].mxu1 %v4222_v49 }
 0xd72   :  { %4333 = vmatpush1.bf16.msra.mxu0 %v7203_v6  ;;  %4374 = vmatpush1.bf16.msra.mxu1 %v7206_v51 }
 0xd73   :  { %4334 = vmatprep.subr.bf16.mxu0 %v7209_v3  ;;  %4375 = vmatprep.subr.bf16.mxu1 %v7212_v19 }
 0xd74   :  { %4364 = vmatprep.mubr.bf16.mxu0 %v7555_v35  ;;  %4405 = vmatprep.mubr.bf16.mxu1 %v7555_v35 }
 0xd76   :  { %4335 = vmatpush1.bf16.msra.mxu0 %v7217_v45  ;;  %4376 = vmatpush1.bf16.msra.mxu1 %v7220_v12 }
 0xd77   :  { %4336 = vmatprep.subr.bf16.mxu0 %v7223_v14  ;;  %4377 = vmatprep.subr.bf16.mxu1 %v7226_v55 }
 0xd7a   :  { %4337 = vmatpush1.bf16.msra.mxu0 %v7229_v13  ;;  %4378 = vmatpush1.bf16.msra.mxu1 %v7232_v57 }
 0xd7b   :  { %4338 = vmatprep.subr.bf16.mxu0 %v7235_v2  ;;  %4379 = vmatprep.subr.bf16.mxu1 %v7238_v33 }
 0xd7e   :  { %4339 = vmatpush1.bf16.msra.mxu0 %v7241_v48  ;;  %4380 = vmatpush1.bf16.msra.mxu1 %v7244_v5 }
 0xd7f   :  { %4340 = vmatprep.subr.bf16.mxu0 %v7247_v8  ;;  %4381 = vmatprep.subr.bf16.mxu1 %v7250_v9 }
 0xd82   :  { %4341 = vmatpush1.bf16.msra.mxu0 %v7253_v11  ;;  %4382 = vmatpush1.bf16.msra.mxu1 %v7256_v28 }
 0xd83   :  { %4342 = vmatprep.subr.bf16.mxu0 %v7259_v26  ;;  %4383 = vmatprep.subr.bf16.mxu1 %v7262_v24 }
 0xd86   :  { %4343 = vmatpush1.bf16.msra.mxu0 %v7265_v44  ;;  %4384 = vmatpush1.bf16.msra.mxu1 %v7268_v32 }
 0xd87   :  { %4344 = vmatprep.subr.bf16.mxu0 %v7271_v27  ;;  %4385 = vmatprep.subr.bf16.mxu1 %v7274_v61 }
 0xd8a   :  { %4345 = vmatpush1.bf16.msra.mxu0 %v6675_v17  ;;  %4386 = vmatpush1.bf16.msra.mxu1 %v7658_v63  ;;  %v7689_v17 = vsel %vm5971_vm1, %v6806_v16, %v6776_v0 }
 0xd8b   :  { %4346 = vmatprep.subr.bf16.mxu0 %v7659_v15  ;;  %4387 = vmatprep.subr.bf16.mxu1 %v7660_v23 }
 0xd8e   :  { %4347 = vmatpush1.bf16.msra.mxu0 %v7661_v39  ;;  %4388 = vmatpush1.bf16.msra.mxu1 %v7662_v22  ;;  %v7690_v39 = vld [vmem:[#allocation27_spill] sm:$0xff]  ;;  %v7691_v22 = vld [vmem:[#allocation30_spill] sm:$0xff] }
 0xd8f   :  { %4441 = vmatprep.subr.bf16.mxu0 %v7177_v56  ;;  %4482 = vmatprep.subr.bf16.mxu1 %v7180_v31  ;;  %v7692_v46 = vsel %vm5975_vm2, %v7690_v39, %v7691_v22  ;;  %v7693_v31 = vld [vmem:[#allocation16_spill] sm:$0xff] }
 0xd90   :  { %v7695_v54 = vsel %vm5979_vm3, %v7693_v31, %v7694_v53 }
 0xe44   :  { %v4257_v40 = vpop.f32.mrb[84].mxu0  ;;  %v4298_v41 = vpop.f32.mrb[84].mxu1 }
 0xe45   :  { %v4305_v43 = vadd.f32 %v4257_v40, %v7688_v42  ;;  %v4307_v63 = vadd.f32 %v4298_v41, %v7689_v17  ;;  %v4259_v15 = vpop.f32.mrb[85].mxu0  ;;  %v4300_v23 = vpop.f32.mrb[85].mxu1 }
 0xe46   :  { %v4306_v56 = vadd.f32 %v4259_v15, %v7692_v46  ;;  %v4308_v58 = vadd.f32 %v4300_v23, %v7695_v54  ;;  %v4261_v59 = vpop.f32.mrb[86].mxu0  ;;  %v4302_v60 = vpop.f32.mrb[86].mxu1 }
 0xe47   :  { %v4309_v62 = vmul.f32 0.5, %v4305_v43  ;;  %v4262_v47 = vpop.f32.mrb[87].mxu0  ;;  %v4303_v16 = vpop.f32.mrb[87].mxu1  ;;  %v4311_v18 = vmul.f32 0.5, %v4307_v63 }
 0xe48   :  { %v4310_v0 = vmul.f32 0.5, %v4306_v56 }
 0xe49   :  { %5443 = vtanh.f32 %v4309_v62 }
 0xe4a   :  { %5445 = vtanh.f32 %v4310_v0 }
 0xe4b   :  { %5447 = vtanh.f32 %v4308_v58 }
 0xe4c   :  { %5449 = vtanh.f32 %v4311_v18 }
 0xe53   :  { %v5444_v52 = vpop.eup %5443 }
 0xe54   :  { %v4315_v37 = vmul.f32 0.5, %v5444_v52  ;;  %v5446_v7 = vpop.eup %5445 }
 0xe55   :  { %v4316_v1 = vmul.f32 0.5, %v5446_v7  ;;  %v5448_v4 = vpop.eup %5447  ;;  %v5305_v7 = vld [vmem:[%s7408_s7] sm:$0xff]  }
 0xe56   :  { %v4318_v25 = vadd.f32 0.5, %v4315_v37  ;;  %v5450_v50 = vpop.eup %5449 }
 0xe57   :  { %v4319_v21 = vadd.f32 0.5, %v4316_v1  ;;  %v4317_v49 = vmul.f32 0.5, %v5450_v50  ;;  %v5306_v1 = vld [vmem:[%s7408_s7 + $0x8] sm:$0xff]   ;;  %v5312_v50 = vld [vmem:[%s7408_s7 + $0x38] sm:$0xff]  }
 0xe58   :  { %v4323_v36 = vmul.f32 %v5448_v4, %v4318_v25  ;;  %v5606_v25 = vmov 0.0   ;;  %v5307_v4 = vld [vmem:[%s7408_s7 + $0x10] sm:$0xff]  }
 0xe59   :  { %v4322_v30 = vmul.f32 %v4319_v21, %v7200_v10  ;;  %v4320_v40 = vadd.f32 0.5, %v4317_v49  ;;  %v5500_v10 = vld [vmem:[#allocation9 + $0xc8] ss:$16 sps:$4 sm:$0xff]  }
 0xe5a   :  { %v5308_v21 = vld [vmem:[%s7408_s7 + $0x18] sm:$0xff]  }
 0xe5b   :  { %v7302_v38 = vadd.f32 %v4323_v36, %v4322_v30  ;;  %v5309_v36 = vld [vmem:[%s7408_s7 + $0x20] sm:$0xff]   ;;  %v5310_v30 = vld [vmem:[%s7408_s7 + $0x28] sm:$0xff]  }
 0xe5d   :  { %5451 = vtanh.f32 %v7302_v38 }
 0xe67   :  { %v5452_v41 = vpop.eup %5451 }
 0xe68   :  { %v4326_v42 = vmul.f32 %v5452_v41, %v4320_v40  ;;  %v7706_v41 = vld [vmem:[#allocation48_spill] sm:$0xff] }
 0xe6a   :  { %v4331_v43 = vpack.c.bf16 %v4326_v42, %v4326_v42 }
 0xe6c   :  { %4365 = vmatmul.mubr.bf16.vlgmr.msra.gmra.mrb[88].mxu0 %v4331_v43  ;;  %4406 = vmatmul.mubr.bf16.vlgmr.msra.gmra.mrb[88].mxu1 %v4331_v43  ;;  %v7707_v43 = vld [vmem:[#allocation46_spill] sm:$0xff] }
 0xe6d   :  { %4442 = vmatpush1.bf16.msra.mxu0 %v7203_v6  ;;  %4483 = vmatpush1.bf16.msra.mxu1 %v7206_v51  ;;  %v5501_v6 = vld [vmem:[#allocation9 + $0xe4] ss:$16 sps:$4 sm:$0xff]   ;;  %v5502_v51 = vld [vmem:[#allocation9 + $0xec] ss:$16 sps:$4 sm:$0xff]  }
 0xe6e   :  { %4443 = vmatprep.subr.bf16.mxu0 %v7209_v3  ;;  %4484 = vmatprep.subr.bf16.mxu1 %v7212_v19  ;;  %v5503_v3 = vld [vmem:[#allocation9 + $0xe0] ss:$16 sps:$4 sm:$0xff]   ;;  %v5504_v19 = vld [vmem:[#allocation9 + $0xe8] ss:$16 sps:$4 sm:$0xff]  }
 0xe6f   :  { %4473 = vmatprep.mubr.bf16.mxu0 %v7555_v35  ;;  %4514 = vmatprep.mubr.bf16.mxu1 %v7555_v35  ;;  %v5499_v35 = vld [vmem:[#allocation9 + $0xc0] ss:$16 sps:$4 sm:$0xff]  }
 0xe71   :  { %4444 = vmatpush1.bf16.msra.mxu0 %v7217_v45  ;;  %4485 = vmatpush1.bf16.msra.mxu1 %v7220_v12 }
 0xe72   :  { %4445 = vmatprep.subr.bf16.mxu0 %v7223_v14  ;;  %4486 = vmatprep.subr.bf16.mxu1 %v7226_v55  ;;  %v7696_v14 = vld [vmem:[#allocation42_spill] sm:$0xff] }
 0xe75   :  { %4446 = vmatpush1.bf16.msra.mxu0 %v7229_v13  ;;  %4487 = vmatpush1.bf16.msra.mxu1 %v7232_v57  ;;  %v7697_v13 = vld [vmem:[#allocation44_spill] sm:$0xff]  ;;  %v7698_v57 = vld [vmem:[#allocation31_spill] sm:$0xff] }
 0xe76   :  { %4447 = vmatprep.subr.bf16.mxu0 %v7235_v2  ;;  %4488 = vmatprep.subr.bf16.mxu1 %v7238_v33  ;;  %v7699_v2 = vsel %vm5971_vm1, %v7697_v13, %v7698_v57  ;;  %v7714_v13 = vld [vmem:[#allocation45_spill] sm:$0xff] }
 0xe79   :  { %4448 = vmatpush1.bf16.msra.mxu0 %v7241_v48  ;;  %4489 = vmatpush1.bf16.msra.mxu1 %v7244_v5 }
 0xe7a   :  { %4449 = vmatprep.subr.bf16.mxu0 %v7247_v8  ;;  %4490 = vmatprep.subr.bf16.mxu1 %v7250_v9  ;;  %v7700_v8 = vld [vmem:[#allocation24_spill] sm:$0xff]  ;;  %v7701_v9 = vld [vmem:[#allocation29_spill] sm:$0xff] }
 0xe7d   :  { %4450 = vmatpush1.bf16.msra.mxu0 %v7253_v11  ;;  %4491 = vmatpush1.bf16.msra.mxu1 %v7256_v28  ;;  %v7702_v11 = vsel %vm5975_vm2, %v7700_v8, %v7701_v9 }
 0xe7e   :  { %4451 = vmatprep.subr.bf16.mxu0 %v7259_v26  ;;  %4492 = vmatprep.subr.bf16.mxu1 %v7262_v24  ;;  %v7703_v26 = vld [vmem:[#allocation50_spill] sm:$0xff]  ;;  %v7704_v24 = vld [vmem:[#allocation32_spill] sm:$0xff] }
 0xe81   :  { %4452 = vmatpush1.bf16.msra.mxu0 %v7265_v44  ;;  %4493 = vmatpush1.bf16.msra.mxu1 %v7268_v32  ;;  %v7705_v44 = vsel %vm5979_vm3, %v7703_v26, %v7704_v24 }
 0xe82   :  { %4453 = vmatprep.subr.bf16.mxu0 %v7271_v27  ;;  %4494 = vmatprep.subr.bf16.mxu1 %v7274_v61 }
 0xe85   :  { %4454 = vmatpush1.bf16.msra.mxu0 %v5499_v35  ;;  %4495 = vmatpush1.bf16.msra.mxu1 %v5500_v10  ;;  %v7708_v35 = vld [vmem:[#allocation21_spill] sm:$0xff] }
 0xe86   :  { %4455 = vmatprep.subr.bf16.mxu0 %v5501_v6  ;;  %4496 = vmatprep.subr.bf16.mxu1 %v5502_v51  ;;  %v7709_v10 = vsel %vm5971_vm1, %v7707_v43, %v7708_v35 }
 0xe89   :  { %4456 = vmatpush1.bf16.msra.mxu0 %v5503_v3  ;;  %4497 = vmatpush1.bf16.msra.mxu1 %v5504_v19  ;;  %v7710_v19 = vld [vmem:[#allocation40_spill] sm:$0xff] }
 0xe8a   :  { %5036 = vmatprep.subr.bf16.mxu0 %v5606_v25 }
 0xf3f   :  { %v4366_v45 = vpop.f32.mrb[88].mxu0  ;;  %v4407_v12 = vpop.f32.mrb[88].mxu1 }
 0xf40   :  { %v4414_v55 = vadd.f32 %v4366_v45, %v7696_v14  ;;  %v4416_v33 = vadd.f32 %v4407_v12, %v7699_v2  ;;  %v4368_v48 = vpop.f32.mrb[89].mxu0  ;;  %v4409_v5 = vpop.f32.mrb[89].mxu1  ;;  %v7711_v45 = vld [vmem:[#allocation22_spill] sm:$0xff] }
 0xf41   :  { %v4415_v28 = vadd.f32 %v4368_v48, %v7702_v11  ;;  %v4417_v32 = vadd.f32 %v4409_v5, %v7705_v44  ;;  %v4370_v27 = vpop.f32.mrb[90].mxu0  ;;  %v4411_v61 = vpop.f32.mrb[90].mxu1  ;;  %v7712_v12 = vsel %vm5975_vm2, %v7710_v19, %v7711_v45 }
 0xf42   :  { %v4418_v17 = vmul.f32 0.5, %v4414_v55  ;;  %v4371_v63 = vpop.f32.mrb[91].mxu0  ;;  %v4412_v15 = vpop.f32.mrb[91].mxu1  ;;  %v4420_v39 = vmul.f32 0.5, %v4416_v33  ;;  %v7713_v55 = vld [vmem:[#allocation47_spill] sm:$0xff] }
 0xf43   :  { %v4419_v23 = vmul.f32 0.5, %v4415_v28  ;;  %v7715_v57 = vsel %vm5979_vm3, %v7713_v55, %v7714_v13 }
 0xf44   :  { %5453 = vtanh.f32 %v4418_v17 }
 0xf45   :  { %5455 = vtanh.f32 %v4419_v23 }
 0xf46   :  { %5457 = vtanh.f32 %v4417_v32 }
 0xf47   :  { %5459 = vtanh.f32 %v4420_v39 }
 0xf4e   :  { %v5454_v22 = vpop.eup %5453 }
 0xf4f   :  { %v4424_v46 = vmul.f32 0.5, %v5454_v22  ;;  %v5456_v56 = vpop.eup %5455 }
 0xf50   :  { %v4425_v53 = vmul.f32 0.5, %v5456_v56  ;;  %v5458_v54 = vpop.eup %5457 }
 0xf51   :  { %v4427_v31 = vadd.f32 0.5, %v4424_v46  ;;  %v5460_v47 = vpop.eup %5459  ;;  %v7716_v46 = vld [vmem:[#allocation43_spill] sm:$0xff] }
 0xf52   :  { %v4428_v58 = vadd.f32 0.5, %v4425_v53  ;;  %v4426_v16 = vmul.f32 0.5, %v5460_v47 }
 0xf53   :  { %v4432_v59 = vmul.f32 %v5458_v54, %v4427_v31  ;;  %v5018_v54 = vld [vmem:[%s7409_s8] ss:$0 sm:$0xff] }
 0xf54   :  { %v4431_v60 = vmul.f32 %v4428_v58, %v7302_v38  ;;  %v4429_v0 = vadd.f32 0.5, %v4426_v16  ;;  %v5311_v38 = vld [vmem:[%s7408_s7 + $0x30] sm:$0xff]  }
 0xf56   :  { %v7348_v62 = vadd.f32 %v4432_v59, %v4431_v60 }
 0xf58   :  { %5461 = vtanh.f32 %v7348_v62 }
 0xf62   :  { %v5462_v18 = vpop.eup %5461 }
 0xf63   :  { %v4435_v52 = vmul.f32 %v5462_v18, %v4429_v0 }
 0xf65   :  { %v4440_v37 = vpack.c.bf16 %v4435_v52, %v4435_v52 }
 0xf67   :  { %4474 = vmatmul.mubr.bf16.vlgmr.msra.gmra.mrb[92].mxu0 %v4440_v37  ;;  %4515 = vmatmul.mubr.bf16.vlgmr.msra.gmra.mrb[92].mxu1 %v4440_v37 }
 0xf68   :  { %5037 = vmatpush3.bf16.msra.mxu0 %v5305_v7  ;;  %5052 = vmatprep.mubr.msk.bf16.mxu0 %vm5607_vm5, %v5606_v25 }
 0xf69   :  { %5038 = vmatprep.subr.bf16.mxu0 %v5606_v25 }
 0xf6c   :  { %5039 = vmatpush3.bf16.msra.mxu0 %v5306_v1 }
 0xf6d   :  { %5040 = vmatprep.subr.bf16.mxu0 %v5606_v25 }
 0xf70   :  { %5041 = vmatpush3.bf16.msra.mxu0 %v5307_v4 }
 0xf71   :  { %5042 = vmatprep.subr.bf16.mxu0 %v5606_v25 }
 0xf74   :  { %5043 = vmatpush3.bf16.msra.mxu0 %v5308_v21 }
 0xf75   :  { %5044 = vmatprep.subr.bf16.mxu0 %v5606_v25 }
 0xf78   :  { %5045 = vmatpush3.bf16.msra.mxu0 %v5309_v36 }
 0xf79   :  { %5046 = vmatprep.subr.bf16.mxu0 %v5606_v25 }
 0xf7c   :  { %5047 = vmatpush3.bf16.msra.mxu0 %v5310_v30 }
 0xf7d   :  { %5048 = vmatprep.subr.bf16.mxu0 %v5606_v25 }
 0xf80   :  { %5049 = vmatpush3.bf16.msra.mxu0 %v5311_v38 }
 0xf81   :  { %5050 = vmatprep.subr.bf16.mxu0 %v5606_v25 }
 0xf84   :  { %5051 = vmatpush3.bf16.msra.mxu0 %v5312_v50 }
0x103a   :  { %v4475_v49 = vpop.f32.mrb[92].mxu0  ;;  %v4516_v40 = vpop.f32.mrb[92].mxu1 }
0x103b   :  { %v4523_v42 = vadd.f32 %v4475_v49, %v7706_v41  ;;  %v4525_v6 = vadd.f32 %v4516_v40, %v7709_v10  ;;  %v4477_v51 = vpop.f32.mrb[93].mxu0  ;;  %v4518_v3 = vpop.f32.mrb[93].mxu1 }
0x103c   :  { %v4524_v14 = vadd.f32 %v4477_v51, %v7712_v12  ;;  %v4526_v2 = vadd.f32 %v4518_v3, %v7715_v57  ;;  %v4479_v33 = vpop.f32.mrb[94].mxu0  ;;  %v4520_v29 = vpop.f32.mrb[94].mxu1 }
0x103d   :  { %v4527_v48 = vmul.f32 0.5, %v4523_v42  ;;  %v4480_v5 = vpop.f32.mrb[95].mxu0  ;;  %v4521_v8 = vpop.f32.mrb[95].mxu1  ;;  %v4529_v34 = vmul.f32 0.5, %v4525_v6 }
0x103e   :  { %v4528_v9 = vmul.f32 0.5, %v4524_v14 }
0x103f   :  { %5463 = vtanh.f32 %v4527_v48 }
0x1040   :  { %5465 = vtanh.f32 %v4528_v9 }
0x1041   :  { %5467 = vtanh.f32 %v4526_v2 }
0x1042   :  { %5469 = vtanh.f32 %v4529_v34 }
0x1049   :  { %v5464_v11 = vpop.eup %5463 }
0x104a   :  { %v4533_v28 = vmul.f32 0.5, %v5464_v11  ;;  %v5466_v26 = vpop.eup %5465 }
0x104b   :  { %v4534_v20 = vmul.f32 0.5, %v5466_v26  ;;  %v5468_v44 = vpop.eup %5467 }
0x104c   :  { %v4536_v24 = vadd.f32 0.5, %v4533_v28  ;;  %v5470_v63 = vpop.eup %5469 }
0x104d   :  { %v4537_v32 = vadd.f32 0.5, %v4534_v20  ;;  %v4535_v15 = vmul.f32 0.5, %v5470_v63 }
0x104e   :  { %v4541_v27 = vmul.f32 %v5468_v44, %v4536_v24 }
0x104f   :  { %v4540_v61 = vmul.f32 %v4537_v32, %v7348_v62  ;;  %v4538_v23 = vadd.f32 0.5, %v4535_v15 }
0x1051   :  { %v4542_v17 = vadd.f32 %v4541_v27, %v4540_v61 }
0x1053   :  { %5471 = vtanh.f32 %v4542_v17 }
0x105d   :  { %v5472_v39 = vpop.eup %5471 }
0x105e   :  { %v4544_v22 = vmul.f32 %v5472_v39, %v4538_v23 }
0x1060   :  { %v4545_v31 = vsel %vm141_vm0, %v4544_v22, %v7716_v46 }
0x1061   :  { %v4546_v53 = vpack.c.bf16 %v4545_v31, %v4545_v31 }
0x1063   :  { %5053 = vmatmul.mubr.bf16.vlgmr.msra.gmra.mrb[96].mxu0 %v4546_v53 }
0x1136   :  { %v4652_v58 = vpop.f32.mrb[96].mxu0 }
0x1137   :  { %v4653_v59 = vadd.f32 %v5018_v54, %v4652_v58  ;;  %v5054_v60 = vpop.f32.mrb[97].mxu0 }
0x1138   :  { %v4655_v62 = vpop.f32.mrb[98].mxu0 }
0x1139   :  { %4658 = vst [vmem:[%s7410_s9] sm:$0xff] %v4653_v59  ;;  %v5055_v47 = vpop.f32.mrb[99].mxu0 }
0x113a   :  { %4663 = vsyncpa [#allocation5], 1 }
0x113b   :  { %4664 = vsyncpa [#allocation7], 1 }
0x113c   :  { %4665 = vsyncpa [#allocation10], 1 }

</bundles_post_ra>
